<compile_context>
chip_gen: v6e
topology: v6e:2x2x1
jax: 0.10.0
libtpu: 0.0.40
codegen_flags: <defaults>
</compile_context>

<pallas_src>
import functools

import jax
import jax.numpy as jnp
from jax.experimental import pallas as pl
from jax.experimental.pallas import tpu as pltpu


# ----------------------------------------------------------------------------- tiling

_TM = 256                         # row tile (tokens)
_TN = 512                         # col tile (lane-dense, multiple of 128)
_TK = 1024                        # K tile for the plain GEMM (only used when K % _TK == 0)
_VMEM_LIMIT = 32 * 1024 * 1024    # explicit scoped-VMEM budget


def _tile(dim, pref):
    return dim if dim <= pref else pref


def _layernorm_affine(x, g, b):
    """f32 LayerNorm (torch eps) with folded affine params."""
    mu = jnp.mean(x, axis=-1, keepdims=True)
    var = jnp.mean(jnp.square(x - mu), axis=-1, keepdims=True)
    return (x - mu) * jax.lax.rsqrt(var + 1e-5) * g + b


# ----------------------------------------------------------------------------- kernels

def _make_matmul_kernel(nk):
    """out = x @ w + b; K-tiled with an f32 VMEM accumulator (patchify GEMM)."""

    def kernel(x_ref, w_ref, b_ref, o_ref, acc_ref):
        k = pl.program_id(2)

        @pl.when(k == 0)
        def _init():
            acc_ref[...] = jnp.zeros_like(acc_ref)

        acc_ref[...] += jnp.dot(x_ref[...].astype(jnp.bfloat16), w_ref[...],
                                preferred_element_type=jnp.float32)

        @pl.when(k == nk - 1)
        def _finalize():
            o_ref[...] = (acc_ref[...] + b_ref[...]).astype(o_ref.dtype)

    return kernel


def linear(x, w, b=None):
    """Tiled bf16 GEMM: y = x @ w + b.  x f32; w bf16; y f32."""
    m, k = x.shape
    n = w.shape[1]
    if b is None:
        b = jnp.zeros((n,), jnp.float32)
    tm, tn = _tile(m, _TM), _tile(n, _TN)
    tk = _TK if (k > _TK and k % _TK == 0) else k          # never a partial K block
    nk = k // tk
    grid = (pl.cdiv(m, tm), pl.cdiv(n, tn), nk)
    return pl.pallas_call(
        _make_matmul_kernel(nk),
        grid=grid,
        in_specs=[
            pl.BlockSpec((tm, tk), lambda i, j, kk: (i, kk)),
            pl.BlockSpec((tk, tn), lambda i, j, kk: (kk, j)),
            pl.BlockSpec((1, tn), lambda i, j, kk: (0, j)),
        ],
        out_specs=pl.BlockSpec((tm, tn), lambda i, j, kk: (i, j)),
        out_shape=jax.ShapeDtypeStruct((m, n), jnp.float32),
        scratch_shapes=[pltpu.VMEM((tm, tn), jnp.float32)],
        compiler_params=pltpu.CompilerParams(
            dimension_semantics=("parallel", "parallel", "arbitrary"),
            vmem_limit_bytes=_VMEM_LIMIT),
    )(x, w, b.reshape(1, n))


def _make_ln_linear_kernel(activation):
    """out = act((LayerNorm(x) * gamma + beta) @ w + b); K = full feature dim."""

    def kernel(x_ref, g_ref, beta_ref, w_ref, b_ref, o_ref):
        xn = _layernorm_affine(x_ref[...].astype(jnp.float32), g_ref[...], beta_ref[...])
        y = jnp.dot(xn.astype(jnp.bfloat16), w_ref[...],
                    preferred_element_type=jnp.float32) + b_ref[...]
        if activation == "quickgelu":                       # QuickGELU: x * sigmoid(1.702 x)
            y = y * jax.nn.sigmoid(1.702 * y)
        o_ref[...] = y.astype(o_ref.dtype)

    return kernel


def ln_linear(x, gamma, beta, w, b=None, activation=None):
    """LayerNorm fused into the consuming GEMM; tiled over (M, N), K un-tiled (LN needs it)."""
    m, k = x.shape
    n = w.shape[1]
    if b is None:
        b = jnp.zeros((n,), jnp.float32)
    tm, tn = _tile(m, _TM), _tile(n, _TN)
    grid = (pl.cdiv(m, tm), pl.cdiv(n, tn))
    return pl.pallas_call(
        _make_ln_linear_kernel(activation),
        grid=grid,
        in_specs=[
            pl.BlockSpec((tm, k), lambda i, j: (i, 0)),
            pl.BlockSpec((1, k), lambda i, j: (0, 0)),
            pl.BlockSpec((1, k), lambda i, j: (0, 0)),
            pl.BlockSpec((k, tn), lambda i, j: (0, j)),
            pl.BlockSpec((1, tn), lambda i, j: (0, j)),
        ],
        out_specs=pl.BlockSpec((tm, tn), lambda i, j: (i, j)),
        out_shape=jax.ShapeDtypeStruct((m, n), jnp.float32),
        compiler_params=pltpu.CompilerParams(
            dimension_semantics=("parallel", "parallel"),
            vmem_limit_bytes=_VMEM_LIMIT),
    )(x, gamma.reshape(1, k), beta.reshape(1, k), w, b.reshape(1, n))


def _qkv_lora_kernel(x_ref, g_ref, beta_ref, inw_ref, inb_ref,
                     wd_ref, bd_ref, wu_ref, bu_ref, o_ref):
    """qkv = LN1(x)@in_w + in_b + relu(LN1(x)@wd + bd)@wu + bu (SSF/q-scale pre-folded)."""
    xn = _layernorm_affine(x_ref[...].astype(jnp.float32), g_ref[...], beta_ref[...])
    xb = xn.astype(jnp.bfloat16)
    down = jnp.maximum(
        jnp.dot(xb, wd_ref[...], preferred_element_type=jnp.float32) + bd_ref[...], 0.0)
    y = jnp.dot(xb, inw_ref[...], preferred_element_type=jnp.float32) + inb_ref[...]
    y += jnp.dot(down.astype(jnp.bfloat16), wu_ref[...],
                 preferred_element_type=jnp.float32) + bu_ref[...]
    o_ref[...] = y.astype(o_ref.dtype)


def qkv_lora(x, gamma, beta, in_w, in_b, wd, bd, wu, bu):
    """Fused LN1 + in-proj GEMM + LoRA1 adapter.  x: (M, d) -> qkv: (M, 3d)."""
    m, k = x.shape
    n = in_w.shape[1]
    r = wd.shape[1]                                        # adapter bottleneck
    tm, tn = _tile(m, _TM), _tile(n, _TN)
    grid = (pl.cdiv(m, tm), pl.cdiv(n, tn))
    return pl.pallas_call(
        _qkv_lora_kernel,
        grid=grid,
        in_specs=[
            pl.BlockSpec((tm, k), lambda i, j: (i, 0)),
            pl.BlockSpec((1, k), lambda i, j: (0, 0)),
            pl.BlockSpec((1, k), lambda i, j: (0, 0)),
            pl.BlockSpec((k, tn), lambda i, j: (0, j)),
            pl.BlockSpec((1, tn), lambda i, j: (0, j)),
            pl.BlockSpec((k, r), lambda i, j: (0, 0)),
            pl.BlockSpec((1, r), lambda i, j: (0, 0)),
            pl.BlockSpec((r, tn), lambda i, j: (0, j)),
            pl.BlockSpec((1, tn), lambda i, j: (0, j)),
        ],
        out_specs=pl.BlockSpec((tm, tn), lambda i, j: (i, j)),
        out_shape=jax.ShapeDtypeStruct((m, n), jnp.float32),
        compiler_params=pltpu.CompilerParams(
            dimension_semantics=("parallel", "parallel"),
            vmem_limit_bytes=_VMEM_LIMIT),
    )(x, gamma.reshape(1, k), beta.reshape(1, k), in_w, in_b.reshape(1, n),
      wd, bd.reshape(1, r), wu, bu.reshape(1, n))


def _proj_adapter_res_kernel(a_ref, xadp_ref, res_ref, w_ref, b_ref,
                             wd_ref, bd_ref, wu_ref, bu_ref, o_ref):
    """out = a@w + b + relu(xadp@wd + bd)@wu + bu + res."""
    ab = a_ref[...].astype(jnp.bfloat16)
    xb = xadp_ref[...].astype(jnp.bfloat16)
    down = jnp.maximum(
        jnp.dot(xb, wd_ref[...], preferred_element_type=jnp.float32) + bd_ref[...], 0.0)
    y = jnp.dot(ab, w_ref[...], preferred_element_type=jnp.float32) + b_ref[...]
    y += jnp.dot(down.astype(jnp.bfloat16), wu_ref[...],
                 preferred_element_type=jnp.float32) + bu_ref[...]
    y += res_ref[...]
    o_ref[...] = y.astype(o_ref.dtype)


def proj_adapter_residual(a, xadp, res, w, b, wd, bd, wu, bu):
    """Fused projection GEMM + adapter (on xadp) + residual add.  -> (M, n)."""
    m, kmain = a.shape
    kadp = xadp.shape[1]
    n = w.shape[1]
    r = wd.shape[1]
    tm, tn = _tile(m, _TM), _tile(n, _TN)
    grid = (pl.cdiv(m, tm), pl.cdiv(n, tn))
    return pl.pallas_call(
        _proj_adapter_res_kernel,
        grid=grid,
        in_specs=[
            pl.BlockSpec((tm, kmain), lambda i, j: (i, 0)),
            pl.BlockSpec((tm, kadp), lambda i, j: (i, 0)),
            pl.BlockSpec((tm, tn), lambda i, j: (i, j)),
            pl.BlockSpec((kmain, tn), lambda i, j: (0, j)),
            pl.BlockSpec((1, tn), lambda i, j: (0, j)),
            pl.BlockSpec((kadp, r), lambda i, j: (0, 0)),
            pl.BlockSpec((1, r), lambda i, j: (0, 0)),
            pl.BlockSpec((r, tn), lambda i, j: (0, j)),
            pl.BlockSpec((1, tn), lambda i, j: (0, j)),
        ],
        out_specs=pl.BlockSpec((tm, tn), lambda i, j: (i, j)),
        out_shape=jax.ShapeDtypeStruct((m, n), jnp.float32),
        compiler_params=pltpu.CompilerParams(
            dimension_semantics=("parallel", "parallel"),
            vmem_limit_bytes=_VMEM_LIMIT),
    )(a, xadp, res, w, b.reshape(1, n), wd, bd.reshape(1, r), wu, bu.reshape(1, n))


def _pre_ln_kernel(x_ref, pos_ref, g_ref, b_ref, o_ref):
    x = x_ref[0].astype(jnp.float32) + pos_ref[...].astype(jnp.float32)
    o_ref[0] = _layernorm_affine(x, g_ref[...], b_ref[...]).astype(o_ref.dtype)


def pre_ln(x, pos, gamma, beta):
    """ln_pre(x + positional_embedding), with the pos-add fused.  x: (B, L, d)."""
    B, L, d = x.shape
    tl = _tile(L, _TM)
    return pl.pallas_call(
        _pre_ln_kernel,
        grid=(B, pl.cdiv(L, tl)),
        in_specs=[
            pl.BlockSpec((1, tl, d), lambda b, r: (b, r, 0)),
            pl.BlockSpec((tl, d), lambda b, r: (r, 0)),
            pl.BlockSpec((1, d), lambda b, r: (0, 0)),
            pl.BlockSpec((1, d), lambda b, r: (0, 0)),
        ],
        out_specs=pl.BlockSpec((1, tl, d), lambda b, r: (b, r, 0)),
        out_shape=jax.ShapeDtypeStruct((B, L, d), jnp.float32),
        compiler_params=pltpu.CompilerParams(
            dimension_semantics=("parallel", "parallel"),
            vmem_limit_bytes=_VMEM_LIMIT),
    )(x, pos, gamma.reshape(1, d), beta.reshape(1, d))


def _make_attn_kernel(heads, d):
    hd = d // heads

    def kernel(qkv_ref, o_ref):
        # qkv_ref block: (1, L, 3*d), columns [q | k | v]; q is pre-scaled (folded).
        for h in range(heads):                              # static unroll over heads
            q = qkv_ref[0, :, h * hd:(h + 1) * hd].astype(jnp.bfloat16)
            k = qkv_ref[0, :, d + h * hd:d + (h + 1) * hd].astype(jnp.bfloat16)
            v = qkv_ref[0, :, 2 * d + h * hd:2 * d + (h + 1) * hd].astype(jnp.bfloat16)
            s = jax.lax.dot_general(q, k, (((1,), (1,)), ((), ())),
                                    preferred_element_type=jnp.float32)    # (L, L)
            s = s - jnp.max(s, axis=-1, keepdims=True)
            p = jnp.exp(s)
            p = p * pl.reciprocal(jnp.sum(p, axis=-1, keepdims=True), approx=True)
            o = jnp.dot(p.astype(jnp.bfloat16), v,
                        preferred_element_type=jnp.float32)                # (L, hd)
            o_ref[0, :, h * hd:(h + 1) * hd] = o.astype(o_ref.dtype)

    return kernel


def attention(qkv, heads):
    """qkv: (B, L, 3*d) straight from the qkv GEMM (no HBM head transposes) -> (B, L, d)."""
    B, L, threed = qkv.shape
    d = threed // 3
    # TODO(synk): flash-style online-softmax over KV tiles (plus a query-tile grid axis)
    # is required for long sequences; at the shipped L the (L, L) score tile fits VMEM.
    return pl.pallas_call(
        _make_attn_kernel(heads, d),
        grid=(B,),
        in_specs=[pl.BlockSpec((1, L, threed), lambda b: (b, 0, 0))],
        out_specs=pl.BlockSpec((1, L, d), lambda b: (b, 0, 0)),
        out_shape=jax.ShapeDtypeStruct((B, L, d), jnp.float32),
        compiler_params=pltpu.CompilerParams(
            dimension_semantics=("parallel",),
            vmem_limit_bytes=_VMEM_LIMIT),
    )(qkv)


# ----------------------------------------------------------------------------- model

def residual_attention_block(xf, blk, B, L, heads):
    """One ResidualAttentionBlock (mode='lorass_qkvattn').  xf: (B*L, D), folded params."""
    m, d = xf.shape

    # Attention branch: LN1(+ssf1/ssf3 folded) + in-proj(+mha-ssf1, q-scale folded)
    # + LoRA1 adapter, all in one fused kernel producing qkv.
    qkv = qkv_lora(xf, blk["ln1_g"], blk["ln1_b"], blk["in_w"], blk["in_b"],
                   blk["lora1_wd"], blk["lora1_bd"], blk["lora1_wu"], blk["lora1_bu"])

    attn_out = attention(qkv.reshape(B, L, 3 * d), heads).reshape(m, d)

    # out-proj(+mha-ssf2 folded) + LoRA2 adapter + residual (x) in one fused kernel.
    x = proj_adapter_residual(attn_out, attn_out, xf, blk["out_w"], blk["out_b"],
                              blk["lora2_wd"], blk["lora2_bd"],
                              blk["lora2_wu"], blk["lora2_bu"])

    # MLP branch: LN2(+ssf2 folded) + c_fc(+fc_ss1 folded) + QuickGELU ...
    h = ln_linear(x, blk["ln2_g"], blk["ln2_b"], blk["fc_w"], blk["fc_b"],
                  activation="quickgelu")
    # ... then c_proj(+fc_ss2 folded) + block-level adapter (input = post-attn x)
    # + residual (x) in one fused kernel.
    x = proj_adapter_residual(h, x, x, blk["proj_w"], blk["proj_b"],
                              blk["lora_wd"], blk["lora_bd"],
                              blk["lora_wu"], blk["lora_bu"])
    return x


def vit3d_forward(x, params):
    B, C, Dd, H, W = x.shape
    p = params["patch_size"]
    heads = params["heads"]
    d = params["conv_w"].shape[1]

    # conv3d(kernel=stride=patch_size, bias=False) == patchify + tiled GEMM.
    # TODO(synk): express the patch gather via the GEMM's input BlockSpec to avoid this
    # XLA transpose copy at large resolutions.
    xp = x.reshape(B, C, Dd // p, p, H // p, p, W // p, p)
    xp = xp.transpose(0, 2, 4, 6, 1, 3, 5, 7)                 # (B, D', H', W', C, p, p, p)
    n = (Dd // p) * (H // p) * (W // p)
    patches = xp.reshape(B * n, C * p ** 3)
    tok = linear(patches, params["conv_w"]).reshape(B, n, d)

    cls = jnp.broadcast_to(params["class_embedding"], (B, 1, d)).astype(tok.dtype)
    xt = jnp.concatenate([cls, tok], axis=1)                  # (B, L, D)
    L = n + 1

    xf = pre_ln(xt, params["pos_embedding"], params["ln_pre_g"], params["ln_pre_b"])
    xf = xf.reshape(B * L, d)

    for blk in params["blocks"]:
        xf = residual_attention_block(xf, blk, B, L, heads)

    cls_out = xf.reshape(B, L, d)[:, 0, :]
    # ln_post fused into the final projection GEMM.
    out = ln_linear(cls_out, params["ln_post_g"], params["ln_post_b"], params["proj"])
    return out


# ----------------------------------------------------------------------------- params

class _KeyGen:
    def __init__(self, key):
        self.key = key
        self.i = 0

    def __call__(self):
        self.i += 1
        return jax.random.fold_in(self.key, self.i)


def init_params(key, *, in_chans, depth_chans, input_resolution, patch_size,
                width, layers, heads, output_dim):
    """Raw (un-folded) parameters mirroring the PyTorch module's parameterization."""
    kg = _KeyGen(key)
    d = width
    p = patch_size
    n_tok = (input_resolution // p) ** 2 * (depth_chans // p) + 1
    scale0 = d ** -0.5
    bott = 64

    def nrm(shape, std=0.02, mean=0.0):
        return mean + std * jax.random.normal(kg(), shape, dtype=jnp.float32)

    params = dict(
        patch_size=p,
        heads=heads,
        conv_w=nrm((in_chans * p ** 3, d)),                   # (C*p^3, width) == conv weight.T
        class_embedding=scale0 * jax.random.normal(kg(), (d,), jnp.float32),
        pos_embedding=scale0 * jax.random.normal(kg(), (n_tok, d), jnp.float32),
        ln_pre_g=jnp.ones((d,), jnp.float32), ln_pre_b=jnp.zeros((d,), jnp.float32),
        ln_post_g=jnp.ones((d,), jnp.float32), ln_post_b=jnp.zeros((d,), jnp.float32),
        proj=scale0 * jax.random.normal(kg(), (d, output_dim), jnp.float32),
        blocks=[],
    )
    for _ in range(layers):
        # NOTE: torch init zeroes the LoRA up-proj; we use non-zero synthetic values so
        # the adapter path is actually exercised.  Adapter scalar scale (=1.0) is folded
        # into the up-proj weights/biases at fold time.
        blk = dict(
            ln1_g=jnp.ones((d,), jnp.float32), ln1_b=jnp.zeros((d,), jnp.float32),
            ln2_g=jnp.ones((d,), jnp.float32), ln2_b=jnp.zeros((d,), jnp.float32),
            ssf_s1=nrm((d,), mean=1.0), ssf_sh1=nrm((d,)),
            ssf_s2=nrm((d,), mean=1.0), ssf_sh2=nrm((d,)),
            ssf_s3=nrm((d,), mean=1.0), ssf_sh3=nrm((d,)),
            # ssf_scale_4/5 & shift_4/5 exist in the reference but only touch the k/v
            # args, which multi_head_attention_forward ignores -> omitted (no effect).
            in_w=nrm((d, 3 * d)), in_b=nrm((3 * d,)),
            mha_s1=nrm((3 * d,), mean=1.0), mha_sh1=nrm((3 * d,)),
            out_w=nrm((d, d)), out_b=nrm((d,)),
            mha_s2=nrm((d,), mean=1.0), mha_sh2=nrm((d,)),
            lora1_wd=nrm((d, bott)), lora1_bd=nrm((bott,)),
            lora1_wu=nrm((bott, 3 * d)), lora1_bu=nrm((3 * d,)),
            lora2_wd=nrm((d, bott)), lora2_bd=nrm((bott,)),
            lora2_wu=nrm((bott, d)), lora2_bu=nrm((d,)),
            lora_wd=nrm((d, bott)), lora_bd=nrm((bott,)),
            lora_wu=nrm((bott, d)), lora_bu=nrm((d,)),
            fc_w=nrm((d, 4 * d)), fc_b=nrm((4 * d,)),
            fcss1_s=nrm((4 * d,), mean=1.0), fcss1_sh=nrm((4 * d,)),
            proj_w=nrm((4 * d, d)), proj_b=nrm((d,)),
            fcss2_s=nrm((d,), mean=1.0), fcss2_sh=nrm((d,)),
        )
        params["blocks"].append(blk)
    return params


def fold_params(raw):
    """Fold SSF / q-scaling / adapter-scale into weights, biases and LN affines; cast
    all GEMM weights to bf16 (biases / LN params stay f32)."""
    d = raw["conv_w"].shape[1]
    heads = raw["heads"]
    hd = d // heads
    scaling = float(hd) ** -0.5
    bf = jnp.bfloat16

    fp = dict(
        patch_size=raw["patch_size"],
        heads=raw["heads"],
        conv_w=raw["conv_w"].astype(bf),
        class_embedding=raw["class_embedding"],
        pos_embedding=raw["pos_embedding"],
        ln_pre_g=raw["ln_pre_g"], ln_pre_b=raw["ln_pre_b"],
        ln_post_g=raw["ln_post_g"], ln_post_b=raw["ln_post_b"],
        proj=raw["proj"].astype(bf),
        blocks=[],
    )
    for rb in raw["blocks"]:
        # q path = ssf3(ssf1(LN1(x)))  ->  fold both affines into the LN's gamma/beta.
        g1 = rb["ln1_g"] * rb["ssf_s1"] * rb["ssf_s3"]
        b1 = (rb["ln1_b"] * rb["ssf_s1"] + rb["ssf_sh1"]) * rb["ssf_s3"] + rb["ssf_sh3"]
        # in-proj with the MHA qkv-SSF folded; q-scaling folded into the first d columns
        # of both the in-proj and the LoRA1 up-proj (adapter scalar 1.0 folded too).
        qscale = jnp.concatenate(
            [jnp.full((d,), scaling, jnp.float32), jnp.ones((2 * d,), jnp.float32)])
        in_w = rb["in_w"] * rb["mha_s1"][None, :] * qscale[None, :]
        in_b = (rb["in_b"] * rb["mha_s1"] + rb["mha_sh1"]) * qscale
        l1wu = rb["lora1_wu"] * qscale[None, :]
        l1bu = rb["lora1_bu"] * qscale
        # out-proj with the MHA out-SSF folded.
        out_w = rb["out_w"] * rb["mha_s2"][None, :]
        out_b = rb["out_b"] * rb["mha_s2"] + rb["mha_sh2"]
        # MLP path: LN2 + ssf2 folded; fc_ss1 / fc_ss2 folded into c_fc / c_proj.
        g2 = rb["ln2_g"] * rb["ssf_s2"]
        b2 = rb["ln2_b"] * rb["ssf_s2"] + rb["ssf_sh2"]
        fc_w = rb["fc_w"] * rb["fcss1_s"][None, :]
        fc_b = rb["fc_b"] * rb["fcss1_s"] + rb["fcss1_sh"]
        pr_w = rb["proj_w"] * rb["fcss2_s"][None, :]
        pr_b = rb["proj_b"] * rb["fcss2_s"] + rb["fcss2_sh"]

        fp["blocks"].append(dict(
            ln1_g=g1, ln1_b=b1,
            in_w=in_w.astype(bf), in_b=in_b,
            lora1_wd=rb["lora1_wd"].astype(bf), lora1_bd=rb["lora1_bd"],
            lora1_wu=l1wu.astype(bf), lora1_bu=l1bu,
            out_w=out_w.astype(bf), out_b=out_b,
            lora2_wd=rb["lora2_wd"].astype(bf), lora2_bd=rb["lora2_bd"],
            lora2_wu=rb["lora2_wu"].astype(bf), lora2_bu=rb["lora2_bu"],
            ln2_g=g2, ln2_b=b2,
            fc_w=fc_w.astype(bf), fc_b=fc_b,
            proj_w=pr_w.astype(bf), proj_b=pr_b,
            lora_wd=rb["lora_wd"].astype(bf), lora_bd=rb["lora_bd"],
            lora_wu=rb["lora_wu"].astype(bf), lora_bu=rb["lora_bu"],
        ))
    return fp


# ----------------------------------------------------------------------------- main

if __name__ == "__main__":
    key = jax.random.PRNGKey(0)
    k_inp, k_par = jax.random.split(key)

    B = 2
    in_chans, depth_chans, input_resolution, patch_size = 4, 8, 16, 4
    width, layers, heads, output_dim = 32, 2, 2, 16

    x = jax.random.normal(
        k_inp, (B, in_chans, depth_chans, input_resolution, input_resolution),
        dtype=jnp.float32)                                    # NCDHW, like the PyTorch module

    raw = init_params(
        k_par, in_chans=in_chans, depth_chans=depth_chans,
        input_resolution=input_resolution, patch_size=patch_size,
        width=width, layers=layers, heads=heads, output_dim=output_dim)
    params = fold_params(raw)

    fwd = jax.jit(functools.partial(vit3d_forward, params=params))
    out = jax.block_until_ready(fwd(x))
    assert out.shape == (B, output_dim), out.shape
    assert bool(jnp.all(jnp.isfinite(out)))
    print("KERNEL_OK")
</pallas_src>

<mosaic_0001>
module attributes {stable_mosaic.version = 11 : i64} {
  func.func @kernel(%arg0: i32, %arg1: i32, %arg2: i32, %arg3: memref<64x256xf32, #tpu.memory_space<vmem>>, %arg4: memref<256x32xbf16, #tpu.memory_space<vmem>>, %arg5: memref<1x32xf32, #tpu.memory_space<vmem>>, %arg6: memref<64x32xf32, #tpu.memory_space<vmem>>, %arg7: memref<64x32xf32, #tpu.memory_space<vmem>>) attributes {dimension_semantics = [#tpu.dimension_semantics<parallel>, #tpu.dimension_semantics<parallel>, #tpu.dimension_semantics<arbitrary>], iteration_bounds = array<i64: 1, 1, 1>, scalar_prefetch = 0 : i64, scratch_operands = 1 : i64, tpu.core_type = #tpu.core_type<tc>, window_params = [{transform_indices = @transform_0, window_bounds = array<i64: 64, 256>}, {transform_indices = @transform_1, window_bounds = array<i64: 256, 32>}, {transform_indices = @transform_2, window_bounds = array<i64: 1, 32>}, {transform_indices = @transform_3, window_bounds = array<i64: 64, 32>}]} {
    %c0_i32 = arith.constant 0 : i32
    %0 = arith.cmpi eq, %arg2, %c0_i32 : i32
    %1 = arith.extui %0 : i1 to i32
    %c0_i32_0 = arith.constant 0 : i32
    %2 = arith.cmpi ne, %1, %c0_i32_0 : i32
    scf.if %2 {
      %cst_10 = arith.constant 0.000000e+00 : f32
      %13 = vector.broadcast %cst_10 : f32 to vector<64x32xf32>
      %c0_11 = arith.constant 0 : index
      %c0_12 = arith.constant 0 : index
      %14 = vector.load %arg7[%c0_11, %c0_12] : memref<64x32xf32, #tpu.memory_space<vmem>>, vector<64x32xf32>
      tpu.vector_store %arg7[%c0_11, %c0_12], %13 {strides = array<i32>} : memref<64x32xf32, #tpu.memory_space<vmem>>, vector<64x32xf32>,
    } else {
    }
    %c0 = arith.constant 0 : index
    %c0_1 = arith.constant 0 : index
    %3 = vector.load %arg7[%c0, %c0_1] : memref<64x32xf32, #tpu.memory_space<vmem>>, vector<64x32xf32>
    %c0_2 = arith.constant 0 : index
    %c0_3 = arith.constant 0 : index
    %4 = vector.load %arg3[%c0_2, %c0_3] : memref<64x256xf32, #tpu.memory_space<vmem>>, vector<64x256xf32>
    %5 = arith.truncf %4 : vector<64x256xf32> to vector<64x256xbf16>
    %c0_4 = arith.constant 0 : index
    %c0_5 = arith.constant 0 : index
    %6 = vector.load %arg4[%c0_4, %c0_5] : memref<256x32xbf16, #tpu.memory_space<vmem>>, vector<256x32xbf16>
    %cst = arith.constant dense<0.000000e+00> : vector<64x32xf32>
    %7 = tpu.matmul %5, %6, %cst {dimension_numbers = #tpu.dot_dimension_numbers<[1], [0], [0], [1], [0, 0, 1, 1], [], []>} : vector<64x256xbf16>, vector<256x32xbf16>, vector<64x32xf32> -> vector<64x32xf32>
    %8 = arith.addf %3, %7 : vector<64x32xf32>
    %c0_6 = arith.constant 0 : index
    %c0_7 = arith.constant 0 : index
    %9 = vector.load %arg7[%c0_6, %c0_7] : memref<64x32xf32, #tpu.memory_space<vmem>>, vector<64x32xf32>
    tpu.vector_store %arg7[%c0_6, %c0_7], %8 {strides = array<i32>} : memref<64x32xf32, #tpu.memory_space<vmem>>, vector<64x32xf32>,
    %c0_i32_8 = arith.constant 0 : i32
    %10 = arith.cmpi eq, %arg2, %c0_i32_8 : i32
    %11 = arith.extui %10 : i1 to i32
    %c0_i32_9 = arith.constant 0 : i32
    %12 = arith.cmpi ne, %11, %c0_i32_9 : i32
    scf.if %12 {
      %c0_10 = arith.constant 0 : index
      %c0_11 = arith.constant 0 : index
      %13 = vector.load %arg7[%c0_10, %c0_11] : memref<64x32xf32, #tpu.memory_space<vmem>>, vector<64x32xf32>
      %c0_12 = arith.constant 0 : index
      %c0_13 = arith.constant 0 : index
      %14 = vector.load %arg5[%c0_12, %c0_13] : memref<1x32xf32, #tpu.memory_space<vmem>>, vector<1x32xf32>
      %15 = vector.broadcast %14 : vector<1x32xf32> to vector<64x32xf32>
      %16 = arith.addf %13, %15 : vector<64x32xf32>
      %c0_14 = arith.constant 0 : index
      %c0_15 = arith.constant 0 : index
      %17 = vector.load %arg6[%c0_14, %c0_15] : memref<64x32xf32, #tpu.memory_space<vmem>>, vector<64x32xf32>
      tpu.vector_store %arg6[%c0_14, %c0_15], %16 {strides = array<i32>} : memref<64x32xf32, #tpu.memory_space<vmem>>, vector<64x32xf32>,
    } else {
    }
    return
  }
  func.func @transform_0(%arg0: i32, %arg1: i32, %arg2: i32) -> (i32, i32) {
    %c0_i32 = arith.constant 0 : i32
    return %arg0, %arg2 : i32, i32
  }
  func.func @transform_1(%arg0: i32, %arg1: i32, %arg2: i32) -> (i32, i32) {
    %c0_i32 = arith.constant 0 : i32
    return %arg2, %arg1 : i32, i32
  }
  func.func @transform_2(%arg0: i32, %arg1: i32, %arg2: i32) -> (i32, i32) {
    %c0_i32 = arith.constant 0 : i32
    %c0_i32_0 = arith.constant 0 : i32
    return %c0_i32, %arg1 : i32, i32
  }
  func.func @transform_3(%arg0: i32, %arg1: i32, %arg2: i32) -> (i32, i32) {
    %c0_i32 = arith.constant 0 : i32
    return %arg0, %arg1 : i32, i32
  }
}

module attributes {stable_mosaic.version = 11 : i64} {
  func.func @_pre_ln_kernel(%arg0: i32, %arg1: i32, %arg2: memref<1x33x32xf32, #tpu.memory_space<vmem>>, %arg3: memref<33x32xf32, #tpu.memory_space<vmem>>, %arg4: memref<1x32xf32, #tpu.memory_space<vmem>>, %arg5: memref<1x32xf32, #tpu.memory_space<vmem>>, %arg6: memref<1x33x32xf32, #tpu.memory_space<vmem>>) attributes {dimension_semantics = [#tpu.dimension_semantics<parallel>, #tpu.dimension_semantics<parallel>], iteration_bounds = array<i64: 2, 1>, scalar_prefetch = 0 : i64, scratch_operands = 0 : i64, tpu.core_type = #tpu.core_type<tc>, window_params = [{transform_indices = @transform_0, window_bounds = array<i64: 1, 33, 32>}, {transform_indices = @transform_1, window_bounds = array<i64: 33, 32>}, {pipeline_mode = #tpu.pipeline_mode<synchronous>, transform_indices = @transform_2, window_bounds = array<i64: 1, 32>}, {pipeline_mode = #tpu.pipeline_mode<synchronous>, transform_indices = @transform_3, window_bounds = array<i64: 1, 32>}, {transform_indices = @transform_4, window_bounds = array<i64: 1, 33, 32>}]} {
    %c0 = arith.constant 0 : index
    %c0_0 = arith.constant 0 : index
    %c0_1 = arith.constant 0 : index
    %0 = vector.load %arg2[%c0, %c0_0, %c0_1] : memref<1x33x32xf32, #tpu.memory_space<vmem>>, vector<1x33x32xf32>
    %1 = vector.shape_cast %0 : vector<1x33x32xf32> to vector<33x32xf32>
    %c0_2 = arith.constant 0 : index
    %c0_3 = arith.constant 0 : index
    %2 = vector.load %arg3[%c0_2, %c0_3] : memref<33x32xf32, #tpu.memory_space<vmem>>, vector<33x32xf32>
    %3 = arith.addf %1, %2 : vector<33x32xf32>
    %c0_4 = arith.constant 0 : index
    %c0_5 = arith.constant 0 : index
    %4 = vector.load %arg4[%c0_4, %c0_5] : memref<1x32xf32, #tpu.memory_space<vmem>>, vector<1x32xf32>
    %c0_6 = arith.constant 0 : index
    %c0_7 = arith.constant 0 : index
    %5 = vector.load %arg5[%c0_6, %c0_7] : memref<1x32xf32, #tpu.memory_space<vmem>>, vector<1x32xf32>
    %cst = arith.constant dense<0.000000e+00> : vector<33xf32>
    %6 = vector.multi_reduction <add>, %3, %cst [1] : vector<33x32xf32> to vector<33xf32>
    %7 = vector.shape_cast %6 : vector<33xf32> to vector<33x1xf32>
    %cst_8 = arith.constant 3.200000e+01 : f32
    %8 = vector.broadcast %cst_8 : f32 to vector<33x1xf32>
    %9 = arith.divf %7, %8 : vector<33x1xf32>
    %10 = vector.broadcast %9 : vector<33x1xf32> to vector<33x32xf32>
    %11 = arith.subf %3, %10 : vector<33x32xf32>
    %12 = arith.mulf %11, %11 : vector<33x32xf32>
    %cst_9 = arith.constant dense<0.000000e+00> : vector<33xf32>
    %13 = vector.multi_reduction <add>, %12, %cst_9 [1] : vector<33x32xf32> to vector<33xf32>
    %14 = vector.shape_cast %13 : vector<33xf32> to vector<33x1xf32>
    %cst_10 = arith.constant 3.200000e+01 : f32
    %15 = vector.broadcast %cst_10 : f32 to vector<33x1xf32>
    %16 = arith.divf %14, %15 : vector<33x1xf32>
    %17 = vector.broadcast %9 : vector<33x1xf32> to vector<33x32xf32>
    %18 = arith.subf %3, %17 : vector<33x32xf32>
    %cst_11 = arith.constant 9.99999974E-6 : f32
    %19 = vector.broadcast %cst_11 : f32 to vector<33x1xf32>
    %20 = arith.addf %16, %19 : vector<33x1xf32>
    %21 = math.rsqrt %20 : vector<33x1xf32>
    %22 = vector.broadcast %21 : vector<33x1xf32> to vector<33x32xf32>
    %23 = arith.mulf %18, %22 : vector<33x32xf32>
    %24 = vector.broadcast %4 : vector<1x32xf32> to vector<33x32xf32>
    %25 = arith.mulf %23, %24 : vector<33x32xf32>
    %26 = vector.broadcast %5 : vector<1x32xf32> to vector<33x32xf32>
    %27 = arith.addf %25, %26 : vector<33x32xf32>
    %c0_12 = arith.constant 0 : index
    %c0_13 = arith.constant 0 : index
    %c0_14 = arith.constant 0 : index
    %28 = vector.load %arg6[%c0_12, %c0_13, %c0_14] : memref<1x33x32xf32, #tpu.memory_space<vmem>>, vector<1x33x32xf32>
    %29 = vector.shape_cast %28 : vector<1x33x32xf32> to vector<33x32xf32>
    %30 = vector.shape_cast %27 : vector<33x32xf32> to vector<1x33x32xf32>
    tpu.vector_store %arg6[%c0_12, %c0_13, %c0_14], %30 {strides = array<i32>} : memref<1x33x32xf32, #tpu.memory_space<vmem>>, vector<1x33x32xf32>,
    return
  }
  func.func @transform_0(%arg0: i32, %arg1: i32) -> (i32, i32, i32) {
    %c0_i32 = arith.constant 0 : i32
    %c0_i32_0 = arith.constant 0 : i32
    return %arg0, %arg1, %c0_i32 : i32, i32, i32
  }
  func.func @transform_1(%arg0: i32, %arg1: i32) -> (i32, i32) {
    %c0_i32 = arith.constant 0 : i32
    %c0_i32_0 = arith.constant 0 : i32
    return %arg1, %c0_i32 : i32, i32
  }
  func.func @transform_2(%arg0: i32, %arg1: i32) -> (i32, i32) {
    %c0_i32 = arith.constant 0 : i32
    %c0_i32_0 = arith.constant 0 : i32
    %c0_i32_1 = arith.constant 0 : i32
    return %c0_i32, %c0_i32_0 : i32, i32
  }
  func.func @transform_3(%arg0: i32, %arg1: i32) -> (i32, i32) {
    %c0_i32 = arith.constant 0 : i32
    %c0_i32_0 = arith.constant 0 : i32
    %c0_i32_1 = arith.constant 0 : i32
    return %c0_i32, %c0_i32_0 : i32, i32
  }
  func.func @transform_4(%arg0: i32, %arg1: i32) -> (i32, i32, i32) {
    %c0_i32 = arith.constant 0 : i32
    %c0_i32_0 = arith.constant 0 : i32
    return %arg0, %arg1, %c0_i32 : i32, i32, i32
  }
}

module attributes {stable_mosaic.version = 11 : i64} {
  func.func @_qkv_lora_kernel(%arg0: i32, %arg1: i32, %arg2: memref<66x32xf32, #tpu.memory_space<vmem>>, %arg3: memref<1x32xf32, #tpu.memory_space<vmem>>, %arg4: memref<1x32xf32, #tpu.memory_space<vmem>>, %arg5: memref<32x96xbf16, #tpu.memory_space<vmem>>, %arg6: memref<1x96xf32, #tpu.memory_space<vmem>>, %arg7: memref<32x64xbf16, #tpu.memory_space<vmem>>, %arg8: memref<1x64xf32, #tpu.memory_space<vmem>>, %arg9: memref<64x96xbf16, #tpu.memory_space<vmem>>, %arg10: memref<1x96xf32, #tpu.memory_space<vmem>>, %arg11: memref<66x96xf32, #tpu.memory_space<vmem>>) attributes {dimension_semantics = [#tpu.dimension_semantics<parallel>, #tpu.dimension_semantics<parallel>], iteration_bounds = array<i64: 1, 1>, scalar_prefetch = 0 : i64, scratch_operands = 0 : i64, tpu.core_type = #tpu.core_type<tc>, window_params = [{transform_indices = @transform_0, window_bounds = array<i64: 66, 32>}, {pipeline_mode = #tpu.pipeline_mode<synchronous>, transform_indices = @transform_1, window_bounds = array<i64: 1, 32>}, {pipeline_mode = #tpu.pipeline_mode<synchronous>, transform_indices = @transform_2, window_bounds = array<i64: 1, 32>}, {transform_indices = @transform_3, window_bounds = array<i64: 32, 96>}, {transform_indices = @transform_4, window_bounds = array<i64: 1, 96>}, {pipeline_mode = #tpu.pipeline_mode<synchronous>, transform_indices = @transform_5, window_bounds = array<i64: 32, 64>}, {pipeline_mode = #tpu.pipeline_mode<synchronous>, transform_indices = @transform_6, window_bounds = array<i64: 1, 64>}, {transform_indices = @transform_7, window_bounds = array<i64: 64, 96>}, {transform_indices = @transform_8, window_bounds = array<i64: 1, 96>}, {transform_indices = @transform_9, window_bounds = array<i64: 66, 96>}]} {
    %c0 = arith.constant 0 : index
    %c0_0 = arith.constant 0 : index
    %0 = vector.load %arg2[%c0, %c0_0] : memref<66x32xf32, #tpu.memory_space<vmem>>, vector<66x32xf32>
    %c0_1 = arith.constant 0 : index
    %c0_2 = arith.constant 0 : index
    %1 = vector.load %arg3[%c0_1, %c0_2] : memref<1x32xf32, #tpu.memory_space<vmem>>, vector<1x32xf32>
    %c0_3 = arith.constant 0 : index
    %c0_4 = arith.constant 0 : index
    %2 = vector.load %arg4[%c0_3, %c0_4] : memref<1x32xf32, #tpu.memory_space<vmem>>, vector<1x32xf32>
    %cst = arith.constant dense<0.000000e+00> : vector<66xf32>
    %3 = vector.multi_reduction <add>, %0, %cst [1] : vector<66x32xf32> to vector<66xf32>
    %4 = vector.shape_cast %3 : vector<66xf32> to vector<66x1xf32>
    %cst_5 = arith.constant 3.200000e+01 : f32
    %5 = vector.broadcast %cst_5 : f32 to vector<66x1xf32>
    %6 = arith.divf %4, %5 : vector<66x1xf32>
    %7 = vector.broadcast %6 : vector<66x1xf32> to vector<66x32xf32>
    %8 = arith.subf %0, %7 : vector<66x32xf32>
    %9 = arith.mulf %8, %8 : vector<66x32xf32>
    %cst_6 = arith.constant dense<0.000000e+00> : vector<66xf32>
    %10 = vector.multi_reduction <add>, %9, %cst_6 [1] : vector<66x32xf32> to vector<66xf32>
    %11 = vector.shape_cast %10 : vector<66xf32> to vector<66x1xf32>
    %cst_7 = arith.constant 3.200000e+01 : f32
    %12 = vector.broadcast %cst_7 : f32 to vector<66x1xf32>
    %13 = arith.divf %11, %12 : vector<66x1xf32>
    %14 = vector.broadcast %6 : vector<66x1xf32> to vector<66x32xf32>
    %15 = arith.subf %0, %14 : vector<66x32xf32>
    %cst_8 = arith.constant 9.99999974E-6 : f32
    %16 = vector.broadcast %cst_8 : f32 to vector<66x1xf32>
    %17 = arith.addf %13, %16 : vector<66x1xf32>
    %18 = math.rsqrt %17 : vector<66x1xf32>
    %19 = vector.broadcast %18 : vector<66x1xf32> to vector<66x32xf32>
    %20 = arith.mulf %15, %19 : vector<66x32xf32>
    %21 = vector.broadcast %1 : vector<1x32xf32> to vector<66x32xf32>
    %22 = arith.mulf %20, %21 : vector<66x32xf32>
    %23 = vector.broadcast %2 : vector<1x32xf32> to vector<66x32xf32>
    %24 = arith.addf %22, %23 : vector<66x32xf32>
    %25 = arith.truncf %24 : vector<66x32xf32> to vector<66x32xbf16>
    %c0_9 = arith.constant 0 : index
    %c0_10 = arith.constant 0 : index
    %26 = vector.load %arg7[%c0_9, %c0_10] : memref<32x64xbf16, #tpu.memory_space<vmem>>, vector<32x64xbf16>
    %cst_11 = arith.constant dense<0.000000e+00> : vector<66x64xf32>
    %27 = tpu.matmul %25, %26, %cst_11 {dimension_numbers = #tpu.dot_dimension_numbers<[1], [0], [0], [1], [0, 0, 1, 1], [], []>} : vector<66x32xbf16>, vector<32x64xbf16>, vector<66x64xf32> -> vector<66x64xf32>
    %c0_12 = arith.constant 0 : index
    %c0_13 = arith.constant 0 : index
    %28 = vector.load %arg8[%c0_12, %c0_13] : memref<1x64xf32, #tpu.memory_space<vmem>>, vector<1x64xf32>
    %29 = vector.broadcast %28 : vector<1x64xf32> to vector<66x64xf32>
    %30 = arith.addf %27, %29 : vector<66x64xf32>
    %cst_14 = arith.constant 0.000000e+00 : f32
    %31 = vector.broadcast %cst_14 : f32 to vector<66x64xf32>
    %32 = arith.maximumf %30, %31 : vector<66x64xf32>
    %c0_15 = arith.constant 0 : index
    %c0_16 = arith.constant 0 : index
    %33 = vector.load %arg5[%c0_15, %c0_16] : memref<32x96xbf16, #tpu.memory_space<vmem>>, vector<32x96xbf16>
    %cst_17 = arith.constant dense<0.000000e+00> : vector<66x96xf32>
    %34 = tpu.matmul %25, %33, %cst_17 {dimension_numbers = #tpu.dot_dimension_numbers<[1], [0], [0], [1], [0, 0, 1, 1], [], []>} : vector<66x32xbf16>, vector<32x96xbf16>, vector<66x96xf32> -> vector<66x96xf32>
    %c0_18 = arith.constant 0 : index
    %c0_19 = arith.constant 0 : index
    %35 = vector.load %arg6[%c0_18, %c0_19] : memref<1x96xf32, #tpu.memory_space<vmem>>, vector<1x96xf32>
    %36 = vector.broadcast %35 : vector<1x96xf32> to vector<66x96xf32>
    %37 = arith.addf %34, %36 : vector<66x96xf32>
    %38 = arith.truncf %32 : vector<66x64xf32> to vector<66x64xbf16>
    %c0_20 = arith.constant 0 : index
    %c0_21 = arith.constant 0 : index
    %39 = vector.load %arg9[%c0_20, %c0_21] : memref<64x96xbf16, #tpu.memory_space<vmem>>, vector<64x96xbf16>
    %cst_22 = arith.constant dense<0.000000e+00> : vector<66x96xf32>
    %40 = tpu.matmul %38, %39, %cst_22 {dimension_numbers = #tpu.dot_dimension_numbers<[1], [0], [0], [1], [0, 0, 1, 1], [], []>} : vector<66x64xbf16>, vector<64x96xbf16>, vector<66x96xf32> -> vector<66x96xf32>
    %c0_23 = arith.constant 0 : index
    %c0_24 = arith.constant 0 : index
    %41 = vector.load %arg10[%c0_23, %c0_24] : memref<1x96xf32, #tpu.memory_space<vmem>>, vector<1x96xf32>
    %42 = vector.broadcast %41 : vector<1x96xf32> to vector<66x96xf32>
    %43 = arith.addf %40, %42 : vector<66x96xf32>
    %44 = arith.addf %37, %43 : vector<66x96xf32>
    %c0_25 = arith.constant 0 : index
    %c0_26 = arith.constant 0 : index
    %45 = vector.load %arg11[%c0_25, %c0_26] : memref<66x96xf32, #tpu.memory_space<vmem>>, vector<66x96xf32>
    tpu.vector_store %arg11[%c0_25, %c0_26], %44 {strides = array<i32>} : memref<66x96xf32, #tpu.memory_space<vmem>>, vector<66x96xf32>,
    return
  }
  func.func @transform_0(%arg0: i32, %arg1: i32) -> (i32, i32) {
    %c0_i32 = arith.constant 0 : i32
    %c0_i32_0 = arith.constant 0 : i32
    return %arg0, %c0_i32 : i32, i32
  }
  func.func @transform_1(%arg0: i32, %arg1: i32) -> (i32, i32) {
    %c0_i32 = arith.constant 0 : i32
    %c0_i32_0 = arith.constant 0 : i32
    %c0_i32_1 = arith.constant 0 : i32
    return %c0_i32, %c0_i32_0 : i32, i32
  }
  func.func @transform_2(%arg0: i32, %arg1: i32) -> (i32, i32) {
    %c0_i32 = arith.constant 0 : i32
    %c0_i32_0 = arith.constant 0 : i32
    %c0_i32_1 = arith.constant 0 : i32
    return %c0_i32, %c0_i32_0 : i32, i32
  }
  func.func @transform_3(%arg0: i32, %arg1: i32) -> (i32, i32) {
    %c0_i32 = arith.constant 0 : i32
    %c0_i32_0 = arith.constant 0 : i32
    return %c0_i32, %arg1 : i32, i32
  }
  func.func @transform_4(%arg0: i32, %arg1: i32) -> (i32, i32) {
    %c0_i32 = arith.constant 0 : i32
    %c0_i32_0 = arith.constant 0 : i32
    return %c0_i32, %arg1 : i32, i32
  }
  func.func @transform_5(%arg0: i32, %arg1: i32) -> (i32, i32) {
    %c0_i32 = arith.constant 0 : i32
    %c0_i32_0 = arith.constant 0 : i32
    %c0_i32_1 = arith.constant 0 : i32
    return %c0_i32, %c0_i32_0 : i32, i32
  }
  func.func @transform_6(%arg0: i32, %arg1: i32) -> (i32, i32) {
    %c0_i32 = arith.constant 0 : i32
    %c0_i32_0 = arith.constant 0 : i32
    %c0_i32_1 = arith.constant 0 : i32
    return %c0_i32, %c0_i32_0 : i32, i32
  }
  func.func @transform_7(%arg0: i32, %arg1: i32) -> (i32, i32) {
    %c0_i32 = arith.constant 0 : i32
    %c0_i32_0 = arith.constant 0 : i32
    return %c0_i32, %arg1 : i32, i32
  }
  func.func @transform_8(%arg0: i32, %arg1: i32) -> (i32, i32) {
    %c0_i32 = arith.constant 0 : i32
    %c0_i32_0 = arith.constant 0 : i32
    return %c0_i32, %arg1 : i32, i32
  }
  func.func @transform_9(%arg0: i32, %arg1: i32) -> (i32, i32) {
    %c0_i32 = arith.constant 0 : i32
    return %arg0, %arg1 : i32, i32
  }
}

module attributes {stable_mosaic.version = 11 : i64} {
  func.func @kernel(%arg0: i32, %arg1: memref<1x33x96xf32, #tpu.memory_space<vmem>>, %arg2: memref<1x33x32xf32, #tpu.memory_space<vmem>>) attributes {dimension_semantics = [#tpu.dimension_semantics<parallel>], iteration_bounds = array<i64: 2>, scalar_prefetch = 0 : i64, scratch_operands = 0 : i64, tpu.core_type = #tpu.core_type<tc>, window_params = [{transform_indices = @transform_0, window_bounds = array<i64: 1, 33, 96>}, {transform_indices = @transform_1, window_bounds = array<i64: 1, 33, 32>}]} {
    %c0 = arith.constant 0 : index
    %c0_0 = arith.constant 0 : index
    %c0_1 = arith.constant 0 : index
    %0 = vector.load %arg1[%c0, %c0_0, %c0_1] : memref<1x33x96xf32, #tpu.memory_space<vmem>>, vector<1x33x16xf32>
    %1 = vector.shape_cast %0 : vector<1x33x16xf32> to vector<33x16xf32>
    %2 = arith.truncf %1 : vector<33x16xf32> to vector<33x16xbf16>
    %c0_2 = arith.constant 0 : index
    %c0_3 = arith.constant 0 : index
    %c32 = arith.constant 32 : index
    %3 = vector.load %arg1[%c0_2, %c0_3, %c32] : memref<1x33x96xf32, #tpu.memory_space<vmem>>, vector<1x33x16xf32>
    %4 = vector.shape_cast %3 : vector<1x33x16xf32> to vector<33x16xf32>
    %5 = arith.truncf %4 : vector<33x16xf32> to vector<33x16xbf16>
    %c0_4 = arith.constant 0 : index
    %c0_5 = arith.constant 0 : index
    %c64 = arith.constant 64 : index
    %6 = vector.load %arg1[%c0_4, %c0_5, %c64] : memref<1x33x96xf32, #tpu.memory_space<vmem>>, vector<1x33x16xf32>
    %7 = vector.shape_cast %6 : vector<1x33x16xf32> to vector<33x16xf32>
    %8 = arith.truncf %7 : vector<33x16xf32> to vector<33x16xbf16>
    %cst = arith.constant dense<0.000000e+00> : vector<33x33xf32>
    %9 = tpu.matmul %2, %5, %cst {dimension_numbers = #tpu.dot_dimension_numbers<[1], [1], [0], [0], [0, 0, 1, 0], [], []>} : vector<33x16xbf16>, vector<33x16xbf16>, vector<33x33xf32> -> vector<33x33xf32>
    %cst_6 = arith.constant dense<0xFF800000> : vector<33xf32>
    %10 = vector.multi_reduction <maximumf>, %9, %cst_6 [1] : vector<33x33xf32> to vector<33xf32>
    %11 = vector.shape_cast %10 : vector<33xf32> to vector<33x1xf32>
    %12 = vector.broadcast %11 : vector<33x1xf32> to vector<33x33xf32>
    %13 = arith.subf %9, %12 : vector<33x33xf32>
    %14 = math.exp %13 : vector<33x33xf32>
    %cst_7 = arith.constant dense<0.000000e+00> : vector<33xf32>
    %15 = vector.multi_reduction <add>, %14, %cst_7 [1] : vector<33x33xf32> to vector<33xf32>
    %16 = vector.shape_cast %15 : vector<33xf32> to vector<33x1xf32>
    %17 = tpu.reciprocal %16 {approx = true} : vector<33x1xf32> -> vector<33x1xf32>
    %18 = vector.broadcast %17 : vector<33x1xf32> to vector<33x33xf32>
    %19 = arith.mulf %14, %18 : vector<33x33xf32>
    %20 = arith.truncf %19 : vector<33x33xf32> to vector<33x33xbf16>
    %cst_8 = arith.constant dense<0.000000e+00> : vector<33x16xf32>
    %21 = tpu.matmul %20, %8, %cst_8 {dimension_numbers = #tpu.dot_dimension_numbers<[1], [0], [0], [1], [0, 0, 1, 1], [], []>} : vector<33x33xbf16>, vector<33x16xbf16>, vector<33x16xf32> -> vector<33x16xf32>
    %c0_9 = arith.constant 0 : index
    %c0_10 = arith.constant 0 : index
    %c0_11 = arith.constant 0 : index
    %22 = vector.load %arg2[%c0_9, %c0_10, %c0_11] : memref<1x33x32xf32, #tpu.memory_space<vmem>>, vector<1x33x16xf32>
    %23 = vector.shape_cast %22 : vector<1x33x16xf32> to vector<33x16xf32>
    %24 = vector.shape_cast %21 : vector<33x16xf32> to vector<1x33x16xf32>
    tpu.vector_store %arg2[%c0_9, %c0_10, %c0_11], %24 {strides = array<i32>} : memref<1x33x32xf32, #tpu.memory_space<vmem>>, vector<1x33x16xf32>,
    %c0_12 = arith.constant 0 : index
    %c0_13 = arith.constant 0 : index
    %c16 = arith.constant 16 : index
    %25 = vector.load %arg1[%c0_12, %c0_13, %c16] : memref<1x33x96xf32, #tpu.memory_space<vmem>>, vector<1x33x16xf32>
    %26 = vector.shape_cast %25 : vector<1x33x16xf32> to vector<33x16xf32>
    %27 = arith.truncf %26 : vector<33x16xf32> to vector<33x16xbf16>
    %c0_14 = arith.constant 0 : index
    %c0_15 = arith.constant 0 : index
    %c48 = arith.constant 48 : index
    %28 = vector.load %arg1[%c0_14, %c0_15, %c48] : memref<1x33x96xf32, #tpu.memory_space<vmem>>, vector<1x33x16xf32>
    %29 = vector.shape_cast %28 : vector<1x33x16xf32> to vector<33x16xf32>
    %30 = arith.truncf %29 : vector<33x16xf32> to vector<33x16xbf16>
    %c0_16 = arith.constant 0 : index
    %c0_17 = arith.constant 0 : index
    %c80 = arith.constant 80 : index
    %31 = vector.load %arg1[%c0_16, %c0_17, %c80] : memref<1x33x96xf32, #tpu.memory_space<vmem>>, vector<1x33x16xf32>
    %32 = vector.shape_cast %31 : vector<1x33x16xf32> to vector<33x16xf32>
    %33 = arith.truncf %32 : vector<33x16xf32> to vector<33x16xbf16>
    %cst_18 = arith.constant dense<0.000000e+00> : vector<33x33xf32>
    %34 = tpu.matmul %27, %30, %cst_18 {dimension_numbers = #tpu.dot_dimension_numbers<[1], [1], [0], [0], [0, 0, 1, 0], [], []>} : vector<33x16xbf16>, vector<33x16xbf16>, vector<33x33xf32> -> vector<33x33xf32>
    %cst_19 = arith.constant dense<0xFF800000> : vector<33xf32>
    %35 = vector.multi_reduction <maximumf>, %34, %cst_19 [1] : vector<33x33xf32> to vector<33xf32>
    %36 = vector.shape_cast %35 : vector<33xf32> to vector<33x1xf32>
    %37 = vector.broadcast %36 : vector<33x1xf32> to vector<33x33xf32>
    %38 = arith.subf %34, %37 : vector<33x33xf32>
    %39 = math.exp %38 : vector<33x33xf32>
    %cst_20 = arith.constant dense<0.000000e+00> : vector<33xf32>
    %40 = vector.multi_reduction <add>, %39, %cst_20 [1] : vector<33x33xf32> to vector<33xf32>
    %41 = vector.shape_cast %40 : vector<33xf32> to vector<33x1xf32>
    %42 = tpu.reciprocal %41 {approx = true} : vector<33x1xf32> -> vector<33x1xf32>
    %43 = vector.broadcast %42 : vector<33x1xf32> to vector<33x33xf32>
    %44 = arith.mulf %39, %43 : vector<33x33xf32>
    %45 = arith.truncf %44 : vector<33x33xf32> to vector<33x33xbf16>
    %cst_21 = arith.constant dense<0.000000e+00> : vector<33x16xf32>
    %46 = tpu.matmul %45, %33, %cst_21 {dimension_numbers = #tpu.dot_dimension_numbers<[1], [0], [0], [1], [0, 0, 1, 1], [], []>} : vector<33x33xbf16>, vector<33x16xbf16>, vector<33x16xf32> -> vector<33x16xf32>
    %c0_22 = arith.constant 0 : index
    %c0_23 = arith.constant 0 : index
    %c16_24 = arith.constant 16 : index
    %47 = vector.load %arg2[%c0_22, %c0_23, %c16_24] : memref<1x33x32xf32, #tpu.memory_space<vmem>>, vector<1x33x16xf32>
    %48 = vector.shape_cast %47 : vector<1x33x16xf32> to vector<33x16xf32>
    %49 = vector.shape_cast %46 : vector<33x16xf32> to vector<1x33x16xf32>
    tpu.vector_store %arg2[%c0_22, %c0_23, %c16_24], %49 {strides = array<i32>} : memref<1x33x32xf32, #tpu.memory_space<vmem>>, vector<1x33x16xf32>,
    return
  }
  func.func @transform_0(%arg0: i32) -> (i32, i32, i32) {
    %c0_i32 = arith.constant 0 : i32
    %c0_i32_0 = arith.constant 0 : i32
    %c0_i32_1 = arith.constant 0 : i32
    return %arg0, %c0_i32, %c0_i32_0 : i32, i32, i32
  }
  func.func @transform_1(%arg0: i32) -> (i32, i32, i32) {
    %c0_i32 = arith.constant 0 : i32
    %c0_i32_0 = arith.constant 0 : i32
    %c0_i32_1 = arith.constant 0 : i32
    return %arg0, %c0_i32, %c0_i32_0 : i32, i32, i32
  }
}

module attributes {stable_mosaic.version = 11 : i64} {
  func.func @_proj_adapter_res_kernel(%arg0: i32, %arg1: i32, %arg2: memref<66x32xf32, #tpu.memory_space<vmem>>, %arg3: memref<66x32xf32, #tpu.memory_space<vmem>>, %arg4: memref<66x32xf32, #tpu.memory_space<vmem>>, %arg5: memref<32x32xbf16, #tpu.memory_space<vmem>>, %arg6: memref<1x32xf32, #tpu.memory_space<vmem>>, %arg7: memref<32x64xbf16, #tpu.memory_space<vmem>>, %arg8: memref<1x64xf32, #tpu.memory_space<vmem>>, %arg9: memref<64x32xbf16, #tpu.memory_space<vmem>>, %arg10: memref<1x32xf32, #tpu.memory_space<vmem>>, %arg11: memref<66x32xf32, #tpu.memory_space<vmem>>) attributes {dimension_semantics = [#tpu.dimension_semantics<parallel>, #tpu.dimension_semantics<parallel>], iteration_bounds = array<i64: 1, 1>, scalar_prefetch = 0 : i64, scratch_operands = 0 : i64, tpu.core_type = #tpu.core_type<tc>, window_params = [{transform_indices = @transform_0, window_bounds = array<i64: 66, 32>}, {transform_indices = @transform_1, window_bounds = array<i64: 66, 32>}, {transform_indices = @transform_2, window_bounds = array<i64: 66, 32>}, {transform_indices = @transform_3, window_bounds = array<i64: 32, 32>}, {transform_indices = @transform_4, window_bounds = array<i64: 1, 32>}, {pipeline_mode = #tpu.pipeline_mode<synchronous>, transform_indices = @transform_5, window_bounds = array<i64: 32, 64>}, {pipeline_mode = #tpu.pipeline_mode<synchronous>, transform_indices = @transform_6, window_bounds = array<i64: 1, 64>}, {transform_indices = @transform_7, window_bounds = array<i64: 64, 32>}, {transform_indices = @transform_8, window_bounds = array<i64: 1, 32>}, {transform_indices = @transform_9, window_bounds = array<i64: 66, 32>}]} {
    %c0 = arith.constant 0 : index
    %c0_0 = arith.constant 0 : index
    %0 = vector.load %arg2[%c0, %c0_0] : memref<66x32xf32, #tpu.memory_space<vmem>>, vector<66x32xf32>
    %1 = arith.truncf %0 : vector<66x32xf32> to vector<66x32xbf16>
    %c0_1 = arith.constant 0 : index
    %c0_2 = arith.constant 0 : index
    %2 = vector.load %arg3[%c0_1, %c0_2] : memref<66x32xf32, #tpu.memory_space<vmem>>, vector<66x32xf32>
    %3 = arith.truncf %2 : vector<66x32xf32> to vector<66x32xbf16>
    %c0_3 = arith.constant 0 : index
    %c0_4 = arith.constant 0 : index
    %4 = vector.load %arg7[%c0_3, %c0_4] : memref<32x64xbf16, #tpu.memory_space<vmem>>, vector<32x64xbf16>
    %cst = arith.constant dense<0.000000e+00> : vector<66x64xf32>
    %5 = tpu.matmul %3, %4, %cst {dimension_numbers = #tpu.dot_dimension_numbers<[1], [0], [0], [1], [0, 0, 1, 1], [], []>} : vector<66x32xbf16>, vector<32x64xbf16>, vector<66x64xf32> -> vector<66x64xf32>
    %c0_5 = arith.constant 0 : index
    %c0_6 = arith.constant 0 : index
    %6 = vector.load %arg8[%c0_5, %c0_6] : memref<1x64xf32, #tpu.memory_space<vmem>>, vector<1x64xf32>
    %7 = vector.broadcast %6 : vector<1x64xf32> to vector<66x64xf32>
    %8 = arith.addf %5, %7 : vector<66x64xf32>
    %cst_7 = arith.constant 0.000000e+00 : f32
    %9 = vector.broadcast %cst_7 : f32 to vector<66x64xf32>
    %10 = arith.maximumf %8, %9 : vector<66x64xf32>
    %c0_8 = arith.constant 0 : index
    %c0_9 = arith.constant 0 : index
    %11 = vector.load %arg5[%c0_8, %c0_9] : memref<32x32xbf16, #tpu.memory_space<vmem>>, vector<32x32xbf16>
    %cst_10 = arith.constant dense<0.000000e+00> : vector<66x32xf32>
    %12 = tpu.matmul %1, %11, %cst_10 {dimension_numbers = #tpu.dot_dimension_numbers<[1], [0], [0], [1], [0, 0, 1, 1], [], []>} : vector<66x32xbf16>, vector<32x32xbf16>, vector<66x32xf32> -> vector<66x32xf32>
    %c0_11 = arith.constant 0 : index
    %c0_12 = arith.constant 0 : index
    %13 = vector.load %arg6[%c0_11, %c0_12] : memref<1x32xf32, #tpu.memory_space<vmem>>, vector<1x32xf32>
    %14 = vector.broadcast %13 : vector<1x32xf32> to vector<66x32xf32>
    %15 = arith.addf %12, %14 : vector<66x32xf32>
    %16 = arith.truncf %10 : vector<66x64xf32> to vector<66x64xbf16>
    %c0_13 = arith.constant 0 : index
    %c0_14 = arith.constant 0 : index
    %17 = vector.load %arg9[%c0_13, %c0_14] : memref<64x32xbf16, #tpu.memory_space<vmem>>, vector<64x32xbf16>
    %cst_15 = arith.constant dense<0.000000e+00> : vector<66x32xf32>
    %18 = tpu.matmul %16, %17, %cst_15 {dimension_numbers = #tpu.dot_dimension_numbers<[1], [0], [0], [1], [0, 0, 1, 1], [], []>} : vector<66x64xbf16>, vector<64x32xbf16>, vector<66x32xf32> -> vector<66x32xf32>
    %c0_16 = arith.constant 0 : index
    %c0_17 = arith.constant 0 : index
    %19 = vector.load %arg10[%c0_16, %c0_17] : memref<1x32xf32, #tpu.memory_space<vmem>>, vector<1x32xf32>
    %20 = vector.broadcast %19 : vector<1x32xf32> to vector<66x32xf32>
    %21 = arith.addf %18, %20 : vector<66x32xf32>
    %22 = arith.addf %15, %21 : vector<66x32xf32>
    %c0_18 = arith.constant 0 : index
    %c0_19 = arith.constant 0 : index
    %23 = vector.load %arg4[%c0_18, %c0_19] : memref<66x32xf32, #tpu.memory_space<vmem>>, vector<66x32xf32>
    %24 = arith.addf %22, %23 : vector<66x32xf32>
    %c0_20 = arith.constant 0 : index
    %c0_21 = arith.constant 0 : index
    %25 = vector.load %arg11[%c0_20, %c0_21] : memref<66x32xf32, #tpu.memory_space<vmem>>, vector<66x32xf32>
    tpu.vector_store %arg11[%c0_20, %c0_21], %24 {strides = array<i32>} : memref<66x32xf32, #tpu.memory_space<vmem>>, vector<66x32xf32>,
    return
  }
  func.func @transform_0(%arg0: i32, %arg1: i32) -> (i32, i32) {
    %c0_i32 = arith.constant 0 : i32
    %c0_i32_0 = arith.constant 0 : i32
    return %arg0, %c0_i32 : i32, i32
  }
  func.func @transform_1(%arg0: i32, %arg1: i32) -> (i32, i32) {
    %c0_i32 = arith.constant 0 : i32
    %c0_i32_0 = arith.constant 0 : i32
    return %arg0, %c0_i32 : i32, i32
  }
  func.func @transform_2(%arg0: i32, %arg1: i32) -> (i32, i32) {
    %c0_i32 = arith.constant 0 : i32
    return %arg0, %arg1 : i32, i32
  }
  func.func @transform_3(%arg0: i32, %arg1: i32) -> (i32, i32) {
    %c0_i32 = arith.constant 0 : i32
    %c0_i32_0 = arith.constant 0 : i32
    return %c0_i32, %arg1 : i32, i32
  }
  func.func @transform_4(%arg0: i32, %arg1: i32) -> (i32, i32) {
    %c0_i32 = arith.constant 0 : i32
    %c0_i32_0 = arith.constant 0 : i32
    return %c0_i32, %arg1 : i32, i32
  }
  func.func @transform_5(%arg0: i32, %arg1: i32) -> (i32, i32) {
    %c0_i32 = arith.constant 0 : i32
    %c0_i32_0 = arith.constant 0 : i32
    %c0_i32_1 = arith.constant 0 : i32
    return %c0_i32, %c0_i32_0 : i32, i32
  }
  func.func @transform_6(%arg0: i32, %arg1: i32) -> (i32, i32) {
    %c0_i32 = arith.constant 0 : i32
    %c0_i32_0 = arith.constant 0 : i32
    %c0_i32_1 = arith.constant 0 : i32
    return %c0_i32, %c0_i32_0 : i32, i32
  }
  func.func @transform_7(%arg0: i32, %arg1: i32) -> (i32, i32) {
    %c0_i32 = arith.constant 0 : i32
    %c0_i32_0 = arith.constant 0 : i32
    return %c0_i32, %arg1 : i32, i32
  }
  func.func @transform_8(%arg0: i32, %arg1: i32) -> (i32, i32) {
    %c0_i32 = arith.constant 0 : i32
    %c0_i32_0 = arith.constant 0 : i32
    return %c0_i32, %arg1 : i32, i32
  }
  func.func @transform_9(%arg0: i32, %arg1: i32) -> (i32, i32) {
    %c0_i32 = arith.constant 0 : i32
    return %arg0, %arg1 : i32, i32
  }
}

module attributes {stable_mosaic.version = 11 : i64} {
  func.func @kernel(%arg0: i32, %arg1: i32, %arg2: memref<66x32xf32, #tpu.memory_space<vmem>>, %arg3: memref<1x32xf32, #tpu.memory_space<vmem>>, %arg4: memref<1x32xf32, #tpu.memory_space<vmem>>, %arg5: memref<32x128xbf16, #tpu.memory_space<vmem>>, %arg6: memref<1x128xf32, #tpu.memory_space<vmem>>, %arg7: memref<66x128xf32, #tpu.memory_space<vmem>>) attributes {dimension_semantics = [#tpu.dimension_semantics<parallel>, #tpu.dimension_semantics<parallel>], iteration_bounds = array<i64: 1, 1>, scalar_prefetch = 0 : i64, scratch_operands = 0 : i64, tpu.core_type = #tpu.core_type<tc>, window_params = [{transform_indices = @transform_0, window_bounds = array<i64: 66, 32>}, {pipeline_mode = #tpu.pipeline_mode<synchronous>, transform_indices = @transform_1, window_bounds = array<i64: 1, 32>}, {pipeline_mode = #tpu.pipeline_mode<synchronous>, transform_indices = @transform_2, window_bounds = array<i64: 1, 32>}, {transform_indices = @transform_3, window_bounds = array<i64: 32, 128>}, {transform_indices = @transform_4, window_bounds = array<i64: 1, 128>}, {transform_indices = @transform_5, window_bounds = array<i64: 66, 128>}]} {
    %c0 = arith.constant 0 : index
    %c0_0 = arith.constant 0 : index
    %0 = vector.load %arg2[%c0, %c0_0] : memref<66x32xf32, #tpu.memory_space<vmem>>, vector<66x32xf32>
    %c0_1 = arith.constant 0 : index
    %c0_2 = arith.constant 0 : index
    %1 = vector.load %arg3[%c0_1, %c0_2] : memref<1x32xf32, #tpu.memory_space<vmem>>, vector<1x32xf32>
    %c0_3 = arith.constant 0 : index
    %c0_4 = arith.constant 0 : index
    %2 = vector.load %arg4[%c0_3, %c0_4] : memref<1x32xf32, #tpu.memory_space<vmem>>, vector<1x32xf32>
    %cst = arith.constant dense<0.000000e+00> : vector<66xf32>
    %3 = vector.multi_reduction <add>, %0, %cst [1] : vector<66x32xf32> to vector<66xf32>
    %4 = vector.shape_cast %3 : vector<66xf32> to vector<66x1xf32>
    %cst_5 = arith.constant 3.200000e+01 : f32
    %5 = vector.broadcast %cst_5 : f32 to vector<66x1xf32>
    %6 = arith.divf %4, %5 : vector<66x1xf32>
    %7 = vector.broadcast %6 : vector<66x1xf32> to vector<66x32xf32>
    %8 = arith.subf %0, %7 : vector<66x32xf32>
    %9 = arith.mulf %8, %8 : vector<66x32xf32>
    %cst_6 = arith.constant dense<0.000000e+00> : vector<66xf32>
    %10 = vector.multi_reduction <add>, %9, %cst_6 [1] : vector<66x32xf32> to vector<66xf32>
    %11 = vector.shape_cast %10 : vector<66xf32> to vector<66x1xf32>
    %cst_7 = arith.constant 3.200000e+01 : f32
    %12 = vector.broadcast %cst_7 : f32 to vector<66x1xf32>
    %13 = arith.divf %11, %12 : vector<66x1xf32>
    %14 = vector.broadcast %6 : vector<66x1xf32> to vector<66x32xf32>
    %15 = arith.subf %0, %14 : vector<66x32xf32>
    %cst_8 = arith.constant 9.99999974E-6 : f32
    %16 = vector.broadcast %cst_8 : f32 to vector<66x1xf32>
    %17 = arith.addf %13, %16 : vector<66x1xf32>
    %18 = math.rsqrt %17 : vector<66x1xf32>
    %19 = vector.broadcast %18 : vector<66x1xf32> to vector<66x32xf32>
    %20 = arith.mulf %15, %19 : vector<66x32xf32>
    %21 = vector.broadcast %1 : vector<1x32xf32> to vector<66x32xf32>
    %22 = arith.mulf %20, %21 : vector<66x32xf32>
    %23 = vector.broadcast %2 : vector<1x32xf32> to vector<66x32xf32>
    %24 = arith.addf %22, %23 : vector<66x32xf32>
    %25 = arith.truncf %24 : vector<66x32xf32> to vector<66x32xbf16>
    %c0_9 = arith.constant 0 : index
    %c0_10 = arith.constant 0 : index
    %26 = vector.load %arg5[%c0_9, %c0_10] : memref<32x128xbf16, #tpu.memory_space<vmem>>, vector<32x128xbf16>
    %cst_11 = arith.constant dense<0.000000e+00> : vector<66x128xf32>
    %27 = tpu.matmul %25, %26, %cst_11 {dimension_numbers = #tpu.dot_dimension_numbers<[1], [0], [0], [1], [0, 0, 1, 1], [], []>} : vector<66x32xbf16>, vector<32x128xbf16>, vector<66x128xf32> -> vector<66x128xf32>
    %c0_12 = arith.constant 0 : index
    %c0_13 = arith.constant 0 : index
    %28 = vector.load %arg6[%c0_12, %c0_13] : memref<1x128xf32, #tpu.memory_space<vmem>>, vector<1x128xf32>
    %29 = vector.broadcast %28 : vector<1x128xf32> to vector<66x128xf32>
    %30 = arith.addf %27, %29 : vector<66x128xf32>
    %cst_14 = arith.constant 1.702000e+00 : f32
    %31 = vector.broadcast %cst_14 : f32 to vector<66x128xf32>
    %32 = arith.mulf %31, %30 : vector<66x128xf32>
    %33 = arith.negf %32 : vector<66x128xf32>
    %34 = math.exp %33 : vector<66x128xf32>
    %cst_15 = arith.constant 1.000000e+00 : f32
    %35 = vector.broadcast %cst_15 : f32 to vector<66x128xf32>
    %36 = arith.addf %35, %34 : vector<66x128xf32>
    %37 = arith.divf %35, %36 : vector<66x128xf32>
    %38 = arith.mulf %30, %37 : vector<66x128xf32>
    %c0_16 = arith.constant 0 : index
    %c0_17 = arith.constant 0 : index
    %39 = vector.load %arg7[%c0_16, %c0_17] : memref<66x128xf32, #tpu.memory_space<vmem>>, vector<66x128xf32>
    tpu.vector_store %arg7[%c0_16, %c0_17], %38 {strides = array<i32>} : memref<66x128xf32, #tpu.memory_space<vmem>>, vector<66x128xf32>,
    return
  }
  func.func @transform_0(%arg0: i32, %arg1: i32) -> (i32, i32) {
    %c0_i32 = arith.constant 0 : i32
    %c0_i32_0 = arith.constant 0 : i32
    return %arg0, %c0_i32 : i32, i32
  }
  func.func @transform_1(%arg0: i32, %arg1: i32) -> (i32, i32) {
    %c0_i32 = arith.constant 0 : i32
    %c0_i32_0 = arith.constant 0 : i32
    %c0_i32_1 = arith.constant 0 : i32
    return %c0_i32, %c0_i32_0 : i32, i32
  }
  func.func @transform_2(%arg0: i32, %arg1: i32) -> (i32, i32) {
    %c0_i32 = arith.constant 0 : i32
    %c0_i32_0 = arith.constant 0 : i32
    %c0_i32_1 = arith.constant 0 : i32
    return %c0_i32, %c0_i32_0 : i32, i32
  }
  func.func @transform_3(%arg0: i32, %arg1: i32) -> (i32, i32) {
    %c0_i32 = arith.constant 0 : i32
    %c0_i32_0 = arith.constant 0 : i32
    return %c0_i32, %arg1 : i32, i32
  }
  func.func @transform_4(%arg0: i32, %arg1: i32) -> (i32, i32) {
    %c0_i32 = arith.constant 0 : i32
    %c0_i32_0 = arith.constant 0 : i32
    return %c0_i32, %arg1 : i32, i32
  }
  func.func @transform_5(%arg0: i32, %arg1: i32) -> (i32, i32) {
    %c0_i32 = arith.constant 0 : i32
    return %arg0, %arg1 : i32, i32
  }
}

module attributes {stable_mosaic.version = 11 : i64} {
  func.func @_proj_adapter_res_kernel(%arg0: i32, %arg1: i32, %arg2: memref<66x128xf32, #tpu.memory_space<vmem>>, %arg3: memref<66x32xf32, #tpu.memory_space<vmem>>, %arg4: memref<66x32xf32, #tpu.memory_space<vmem>>, %arg5: memref<128x32xbf16, #tpu.memory_space<vmem>>, %arg6: memref<1x32xf32, #tpu.memory_space<vmem>>, %arg7: memref<32x64xbf16, #tpu.memory_space<vmem>>, %arg8: memref<1x64xf32, #tpu.memory_space<vmem>>, %arg9: memref<64x32xbf16, #tpu.memory_space<vmem>>, %arg10: memref<1x32xf32, #tpu.memory_space<vmem>>, %arg11: memref<66x32xf32, #tpu.memory_space<vmem>>) attributes {dimension_semantics = [#tpu.dimension_semantics<parallel>, #tpu.dimension_semantics<parallel>], iteration_bounds = array<i64: 1, 1>, scalar_prefetch = 0 : i64, scratch_operands = 0 : i64, tpu.core_type = #tpu.core_type<tc>, window_params = [{transform_indices = @transform_0, window_bounds = array<i64: 66, 128>}, {transform_indices = @transform_1, window_bounds = array<i64: 66, 32>}, {transform_indices = @transform_2, window_bounds = array<i64: 66, 32>}, {transform_indices = @transform_3, window_bounds = array<i64: 128, 32>}, {transform_indices = @transform_4, window_bounds = array<i64: 1, 32>}, {pipeline_mode = #tpu.pipeline_mode<synchronous>, transform_indices = @transform_5, window_bounds = array<i64: 32, 64>}, {pipeline_mode = #tpu.pipeline_mode<synchronous>, transform_indices = @transform_6, window_bounds = array<i64: 1, 64>}, {transform_indices = @transform_7, window_bounds = array<i64: 64, 32>}, {transform_indices = @transform_8, window_bounds = array<i64: 1, 32>}, {transform_indices = @transform_9, window_bounds = array<i64: 66, 32>}]} {
    %c0 = arith.constant 0 : index
    %c0_0 = arith.constant 0 : index
    %0 = vector.load %arg2[%c0, %c0_0] : memref<66x128xf32, #tpu.memory_space<vmem>>, vector<66x128xf32>
    %1 = arith.truncf %0 : vector<66x128xf32> to vector<66x128xbf16>
    %c0_1 = arith.constant 0 : index
    %c0_2 = arith.constant 0 : index
    %2 = vector.load %arg3[%c0_1, %c0_2] : memref<66x32xf32, #tpu.memory_space<vmem>>, vector<66x32xf32>
    %3 = arith.truncf %2 : vector<66x32xf32> to vector<66x32xbf16>
    %c0_3 = arith.constant 0 : index
    %c0_4 = arith.constant 0 : index
    %4 = vector.load %arg7[%c0_3, %c0_4] : memref<32x64xbf16, #tpu.memory_space<vmem>>, vector<32x64xbf16>
    %cst = arith.constant dense<0.000000e+00> : vector<66x64xf32>
    %5 = tpu.matmul %3, %4, %cst {dimension_numbers = #tpu.dot_dimension_numbers<[1], [0], [0], [1], [0, 0, 1, 1], [], []>} : vector<66x32xbf16>, vector<32x64xbf16>, vector<66x64xf32> -> vector<66x64xf32>
    %c0_5 = arith.constant 0 : index
    %c0_6 = arith.constant 0 : index
    %6 = vector.load %arg8[%c0_5, %c0_6] : memref<1x64xf32, #tpu.memory_space<vmem>>, vector<1x64xf32>
    %7 = vector.broadcast %6 : vector<1x64xf32> to vector<66x64xf32>
    %8 = arith.addf %5, %7 : vector<66x64xf32>
    %cst_7 = arith.constant 0.000000e+00 : f32
    %9 = vector.broadcast %cst_7 : f32 to vector<66x64xf32>
    %10 = arith.maximumf %8, %9 : vector<66x64xf32>
    %c0_8 = arith.constant 0 : index
    %c0_9 = arith.constant 0 : index
    %11 = vector.load %arg5[%c0_8, %c0_9] : memref<128x32xbf16, #tpu.memory_space<vmem>>, vector<128x32xbf16>
    %cst_10 = arith.constant dense<0.000000e+00> : vector<66x32xf32>
    %12 = tpu.matmul %1, %11, %cst_10 {dimension_numbers = #tpu.dot_dimension_numbers<[1], [0], [0], [1], [0, 0, 1, 1], [], []>} : vector<66x128xbf16>, vector<128x32xbf16>, vector<66x32xf32> -> vector<66x32xf32>
    %c0_11 = arith.constant 0 : index
    %c0_12 = arith.constant 0 : index
    %13 = vector.load %arg6[%c0_11, %c0_12] : memref<1x32xf32, #tpu.memory_space<vmem>>, vector<1x32xf32>
    %14 = vector.broadcast %13 : vector<1x32xf32> to vector<66x32xf32>
    %15 = arith.addf %12, %14 : vector<66x32xf32>
    %16 = arith.truncf %10 : vector<66x64xf32> to vector<66x64xbf16>
    %c0_13 = arith.constant 0 : index
    %c0_14 = arith.constant 0 : index
    %17 = vector.load %arg9[%c0_13, %c0_14] : memref<64x32xbf16, #tpu.memory_space<vmem>>, vector<64x32xbf16>
    %cst_15 = arith.constant dense<0.000000e+00> : vector<66x32xf32>
    %18 = tpu.matmul %16, %17, %cst_15 {dimension_numbers = #tpu.dot_dimension_numbers<[1], [0], [0], [1], [0, 0, 1, 1], [], []>} : vector<66x64xbf16>, vector<64x32xbf16>, vector<66x32xf32> -> vector<66x32xf32>
    %c0_16 = arith.constant 0 : index
    %c0_17 = arith.constant 0 : index
    %19 = vector.load %arg10[%c0_16, %c0_17] : memref<1x32xf32, #tpu.memory_space<vmem>>, vector<1x32xf32>
    %20 = vector.broadcast %19 : vector<1x32xf32> to vector<66x32xf32>
    %21 = arith.addf %18, %20 : vector<66x32xf32>
    %22 = arith.addf %15, %21 : vector<66x32xf32>
    %c0_18 = arith.constant 0 : index
    %c0_19 = arith.constant 0 : index
    %23 = vector.load %arg4[%c0_18, %c0_19] : memref<66x32xf32, #tpu.memory_space<vmem>>, vector<66x32xf32>
    %24 = arith.addf %22, %23 : vector<66x32xf32>
    %c0_20 = arith.constant 0 : index
    %c0_21 = arith.constant 0 : index
    %25 = vector.load %arg11[%c0_20, %c0_21] : memref<66x32xf32, #tpu.memory_space<vmem>>, vector<66x32xf32>
    tpu.vector_store %arg11[%c0_20, %c0_21], %24 {strides = array<i32>} : memref<66x32xf32, #tpu.memory_space<vmem>>, vector<66x32xf32>,
    return
  }
  func.func @transform_0(%arg0: i32, %arg1: i32) -> (i32, i32) {
    %c0_i32 = arith.constant 0 : i32
    %c0_i32_0 = arith.constant 0 : i32
    return %arg0, %c0_i32 : i32, i32
  }
  func.func @transform_1(%arg0: i32, %arg1: i32) -> (i32, i32) {
    %c0_i32 = arith.constant 0 : i32
    %c0_i32_0 = arith.constant 0 : i32
    return %arg0, %c0_i32 : i32, i32
  }
  func.func @transform_2(%arg0: i32, %arg1: i32) -> (i32, i32) {
    %c0_i32 = arith.constant 0 : i32
    return %arg0, %arg1 : i32, i32
  }
  func.func @transform_3(%arg0: i32, %arg1: i32) -> (i32, i32) {
    %c0_i32 = arith.constant 0 : i32
    %c0_i32_0 = arith.constant 0 : i32
    return %c0_i32, %arg1 : i32, i32
  }
  func.func @transform_4(%arg0: i32, %arg1: i32) -> (i32, i32) {
    %c0_i32 = arith.constant 0 : i32
    %c0_i32_0 = arith.constant 0 : i32
    return %c0_i32, %arg1 : i32, i32
  }
  func.func @transform_5(%arg0: i32, %arg1: i32) -> (i32, i32) {
    %c0_i32 = arith.constant 0 : i32
    %c0_i32_0 = arith.constant 0 : i32
    %c0_i32_1 = arith.constant 0 : i32
    return %c0_i32, %c0_i32_0 : i32, i32
  }
  func.func @transform_6(%arg0: i32, %arg1: i32) -> (i32, i32) {
    %c0_i32 = arith.constant 0 : i32
    %c0_i32_0 = arith.constant 0 : i32
    %c0_i32_1 = arith.constant 0 : i32
    return %c0_i32, %c0_i32_0 : i32, i32
  }
  func.func @transform_7(%arg0: i32, %arg1: i32) -> (i32, i32) {
    %c0_i32 = arith.constant 0 : i32
    %c0_i32_0 = arith.constant 0 : i32
    return %c0_i32, %arg1 : i32, i32
  }
  func.func @transform_8(%arg0: i32, %arg1: i32) -> (i32, i32) {
    %c0_i32 = arith.constant 0 : i32
    %c0_i32_0 = arith.constant 0 : i32
    return %c0_i32, %arg1 : i32, i32
  }
  func.func @transform_9(%arg0: i32, %arg1: i32) -> (i32, i32) {
    %c0_i32 = arith.constant 0 : i32
    return %arg0, %arg1 : i32, i32
  }
}

module attributes {stable_mosaic.version = 11 : i64} {
  func.func @kernel(%arg0: i32, %arg1: i32, %arg2: memref<66x32xf32, #tpu.memory_space<vmem>>, %arg3: memref<1x32xf32, #tpu.memory_space<vmem>>, %arg4: memref<1x32xf32, #tpu.memory_space<vmem>>, %arg5: memref<32x128xbf16, #tpu.memory_space<vmem>>, %arg6: memref<1x128xf32, #tpu.memory_space<vmem>>, %arg7: memref<66x128xf32, #tpu.memory_space<vmem>>) attributes {dimension_semantics = [#tpu.dimension_semantics<parallel>, #tpu.dimension_semantics<parallel>], iteration_bounds = array<i64: 1, 1>, scalar_prefetch = 0 : i64, scratch_operands = 0 : i64, tpu.core_type = #tpu.core_type<tc>, window_params = [{transform_indices = @transform_0, window_bounds = array<i64: 66, 32>}, {pipeline_mode = #tpu.pipeline_mode<synchronous>, transform_indices = @transform_1, window_bounds = array<i64: 1, 32>}, {pipeline_mode = #tpu.pipeline_mode<synchronous>, transform_indices = @transform_2, window_bounds = array<i64: 1, 32>}, {transform_indices = @transform_3, window_bounds = array<i64: 32, 128>}, {transform_indices = @transform_4, window_bounds = array<i64: 1, 128>}, {transform_indices = @transform_5, window_bounds = array<i64: 66, 128>}]} {
    %c0 = arith.constant 0 : index
    %c0_0 = arith.constant 0 : index
    %0 = vector.load %arg2[%c0, %c0_0] : memref<66x32xf32, #tpu.memory_space<vmem>>, vector<66x32xf32>
    %c0_1 = arith.constant 0 : index
    %c0_2 = arith.constant 0 : index
    %1 = vector.load %arg3[%c0_1, %c0_2] : memref<1x32xf32, #tpu.memory_space<vmem>>, vector<1x32xf32>
    %c0_3 = arith.constant 0 : index
    %c0_4 = arith.constant 0 : index
    %2 = vector.load %arg4[%c0_3, %c0_4] : memref<1x32xf32, #tpu.memory_space<vmem>>, vector<1x32xf32>
    %cst = arith.constant dense<0.000000e+00> : vector<66xf32>
    %3 = vector.multi_reduction <add>, %0, %cst [1] : vector<66x32xf32> to vector<66xf32>
    %4 = vector.shape_cast %3 : vector<66xf32> to vector<66x1xf32>
    %cst_5 = arith.constant 3.200000e+01 : f32
    %5 = vector.broadcast %cst_5 : f32 to vector<66x1xf32>
    %6 = arith.divf %4, %5 : vector<66x1xf32>
    %7 = vector.broadcast %6 : vector<66x1xf32> to vector<66x32xf32>
    %8 = arith.subf %0, %7 : vector<66x32xf32>
    %9 = arith.mulf %8, %8 : vector<66x32xf32>
    %cst_6 = arith.constant dense<0.000000e+00> : vector<66xf32>
    %10 = vector.multi_reduction <add>, %9, %cst_6 [1] : vector<66x32xf32> to vector<66xf32>
    %11 = vector.shape_cast %10 : vector<66xf32> to vector<66x1xf32>
    %cst_7 = arith.constant 3.200000e+01 : f32
    %12 = vector.broadcast %cst_7 : f32 to vector<66x1xf32>
    %13 = arith.divf %11, %12 : vector<66x1xf32>
    %14 = vector.broadcast %6 : vector<66x1xf32> to vector<66x32xf32>
    %15 = arith.subf %0, %14 : vector<66x32xf32>
    %cst_8 = arith.constant 9.99999974E-6 : f32
    %16 = vector.broadcast %cst_8 : f32 to vector<66x1xf32>
    %17 = arith.addf %13, %16 : vector<66x1xf32>
    %18 = math.rsqrt %17 : vector<66x1xf32>
    %19 = vector.broadcast %18 : vector<66x1xf32> to vector<66x32xf32>
    %20 = arith.mulf %15, %19 : vector<66x32xf32>
    %21 = vector.broadcast %1 : vector<1x32xf32> to vector<66x32xf32>
    %22 = arith.mulf %20, %21 : vector<66x32xf32>
    %23 = vector.broadcast %2 : vector<1x32xf32> to vector<66x32xf32>
    %24 = arith.addf %22, %23 : vector<66x32xf32>
    %25 = arith.truncf %24 : vector<66x32xf32> to vector<66x32xbf16>
    %c0_9 = arith.constant 0 : index
    %c0_10 = arith.constant 0 : index
    %26 = vector.load %arg5[%c0_9, %c0_10] : memref<32x128xbf16, #tpu.memory_space<vmem>>, vector<32x128xbf16>
    %cst_11 = arith.constant dense<0.000000e+00> : vector<66x128xf32>
    %27 = tpu.matmul %25, %26, %cst_11 {dimension_numbers = #tpu.dot_dimension_numbers<[1], [0], [0], [1], [0, 0, 1, 1], [], []>} : vector<66x32xbf16>, vector<32x128xbf16>, vector<66x128xf32> -> vector<66x128xf32>
    %c0_12 = arith.constant 0 : index
    %c0_13 = arith.constant 0 : index
    %28 = vector.load %arg6[%c0_12, %c0_13] : memref<1x128xf32, #tpu.memory_space<vmem>>, vector<1x128xf32>
    %29 = vector.broadcast %28 : vector<1x128xf32> to vector<66x128xf32>
    %30 = arith.addf %27, %29 : vector<66x128xf32>
    %cst_14 = arith.constant 1.702000e+00 : f32
    %31 = vector.broadcast %cst_14 : f32 to vector<66x128xf32>
    %32 = arith.mulf %31, %30 : vector<66x128xf32>
    %33 = arith.negf %32 : vector<66x128xf32>
    %34 = math.exp %33 : vector<66x128xf32>
    %cst_15 = arith.constant 1.000000e+00 : f32
    %35 = vector.broadcast %cst_15 : f32 to vector<66x128xf32>
    %36 = arith.addf %35, %34 : vector<66x128xf32>
    %37 = arith.divf %35, %36 : vector<66x128xf32>
    %38 = arith.mulf %30, %37 : vector<66x128xf32>
    %c0_16 = arith.constant 0 : index
    %c0_17 = arith.constant 0 : index
    %39 = vector.load %arg7[%c0_16, %c0_17] : memref<66x128xf32, #tpu.memory_space<vmem>>, vector<66x128xf32>
    tpu.vector_store %arg7[%c0_16, %c0_17], %38 {strides = array<i32>} : memref<66x128xf32, #tpu.memory_space<vmem>>, vector<66x128xf32>,
    return
  }
  func.func @transform_0(%arg0: i32, %arg1: i32) -> (i32, i32) {
    %c0_i32 = arith.constant 0 : i32
    %c0_i32_0 = arith.constant 0 : i32
    return %arg0, %c0_i32 : i32, i32
  }
  func.func @transform_1(%arg0: i32, %arg1: i32) -> (i32, i32) {
    %c0_i32 = arith.constant 0 : i32
    %c0_i32_0 = arith.constant 0 : i32
    %c0_i32_1 = arith.constant 0 : i32
    return %c0_i32, %c0_i32_0 : i32, i32
  }
  func.func @transform_2(%arg0: i32, %arg1: i32) -> (i32, i32) {
    %c0_i32 = arith.constant 0 : i32
    %c0_i32_0 = arith.constant 0 : i32
    %c0_i32_1 = arith.constant 0 : i32
    return %c0_i32, %c0_i32_0 : i32, i32
  }
  func.func @transform_3(%arg0: i32, %arg1: i32) -> (i32, i32) {
    %c0_i32 = arith.constant 0 : i32
    %c0_i32_0 = arith.constant 0 : i32
    return %c0_i32, %arg1 : i32, i32
  }
  func.func @transform_4(%arg0: i32, %arg1: i32) -> (i32, i32) {
    %c0_i32 = arith.constant 0 : i32
    %c0_i32_0 = arith.constant 0 : i32
    return %c0_i32, %arg1 : i32, i32
  }
  func.func @transform_5(%arg0: i32, %arg1: i32) -> (i32, i32) {
    %c0_i32 = arith.constant 0 : i32
    return %arg0, %arg1 : i32, i32
  }
}

module attributes {stable_mosaic.version = 11 : i64} {
  func.func @kernel(%arg0: i32, %arg1: i32, %arg2: memref<2x32xf32, #tpu.memory_space<vmem>>, %arg3: memref<1x32xf32, #tpu.memory_space<vmem>>, %arg4: memref<1x32xf32, #tpu.memory_space<vmem>>, %arg5: memref<32x16xbf16, #tpu.memory_space<vmem>>, %arg6: memref<1x16xf32, #tpu.memory_space<vmem>>, %arg7: memref<2x16xf32, #tpu.memory_space<vmem>>) attributes {dimension_semantics = [#tpu.dimension_semantics<parallel>, #tpu.dimension_semantics<parallel>], iteration_bounds = array<i64: 1, 1>, scalar_prefetch = 0 : i64, scratch_operands = 0 : i64, tpu.core_type = #tpu.core_type<tc>, window_params = [{transform_indices = @transform_0, window_bounds = array<i64: 2, 32>}, {pipeline_mode = #tpu.pipeline_mode<synchronous>, transform_indices = @transform_1, window_bounds = array<i64: 1, 32>}, {pipeline_mode = #tpu.pipeline_mode<synchronous>, transform_indices = @transform_2, window_bounds = array<i64: 1, 32>}, {transform_indices = @transform_3, window_bounds = array<i64: 32, 16>}, {transform_indices = @transform_4, window_bounds = array<i64: 1, 16>}, {transform_indices = @transform_5, window_bounds = array<i64: 2, 16>}]} {
    %c0 = arith.constant 0 : index
    %c0_0 = arith.constant 0 : index
    %0 = vector.load %arg2[%c0, %c0_0] : memref<2x32xf32, #tpu.memory_space<vmem>>, vector<2x32xf32>
    %c0_1 = arith.constant 0 : index
    %c0_2 = arith.constant 0 : index
    %1 = vector.load %arg3[%c0_1, %c0_2] : memref<1x32xf32, #tpu.memory_space<vmem>>, vector<1x32xf32>
    %c0_3 = arith.constant 0 : index
    %c0_4 = arith.constant 0 : index
    %2 = vector.load %arg4[%c0_3, %c0_4] : memref<1x32xf32, #tpu.memory_space<vmem>>, vector<1x32xf32>
    %cst = arith.constant dense<0.000000e+00> : vector<2xf32>
    %3 = vector.multi_reduction <add>, %0, %cst [1] : vector<2x32xf32> to vector<2xf32>
    %4 = vector.shape_cast %3 : vector<2xf32> to vector<2x1xf32>
    %cst_5 = arith.constant 3.200000e+01 : f32
    %5 = vector.broadcast %cst_5 : f32 to vector<2x1xf32>
    %6 = arith.divf %4, %5 : vector<2x1xf32>
    %7 = vector.broadcast %6 : vector<2x1xf32> to vector<2x32xf32>
    %8 = arith.subf %0, %7 : vector<2x32xf32>
    %9 = arith.mulf %8, %8 : vector<2x32xf32>
    %cst_6 = arith.constant dense<0.000000e+00> : vector<2xf32>
    %10 = vector.multi_reduction <add>, %9, %cst_6 [1] : vector<2x32xf32> to vector<2xf32>
    %11 = vector.shape_cast %10 : vector<2xf32> to vector<2x1xf32>
    %cst_7 = arith.constant 3.200000e+01 : f32
    %12 = vector.broadcast %cst_7 : f32 to vector<2x1xf32>
    %13 = arith.divf %11, %12 : vector<2x1xf32>
    %14 = vector.broadcast %6 : vector<2x1xf32> to vector<2x32xf32>
    %15 = arith.subf %0, %14 : vector<2x32xf32>
    %cst_8 = arith.constant 9.99999974E-6 : f32
    %16 = vector.broadcast %cst_8 : f32 to vector<2x1xf32>
    %17 = arith.addf %13, %16 : vector<2x1xf32>
    %18 = math.rsqrt %17 : vector<2x1xf32>
    %19 = vector.broadcast %18 : vector<2x1xf32> to vector<2x32xf32>
    %20 = arith.mulf %15, %19 : vector<2x32xf32>
    %21 = vector.broadcast %1 : vector<1x32xf32> to vector<2x32xf32>
    %22 = arith.mulf %20, %21 : vector<2x32xf32>
    %23 = vector.broadcast %2 : vector<1x32xf32> to vector<2x32xf32>
    %24 = arith.addf %22, %23 : vector<2x32xf32>
    %25 = arith.truncf %24 : vector<2x32xf32> to vector<2x32xbf16>
    %c0_9 = arith.constant 0 : index
    %c0_10 = arith.constant 0 : index
    %26 = vector.load %arg5[%c0_9, %c0_10] : memref<32x16xbf16, #tpu.memory_space<vmem>>, vector<32x16xbf16>
    %cst_11 = arith.constant dense<0.000000e+00> : vector<2x16xf32>
    %27 = tpu.matmul %25, %26, %cst_11 {dimension_numbers = #tpu.dot_dimension_numbers<[1], [0], [0], [1], [0, 0, 1, 1], [], []>} : vector<2x32xbf16>, vector<32x16xbf16>, vector<2x16xf32> -> vector<2x16xf32>
    %c0_12 = arith.constant 0 : index
    %c0_13 = arith.constant 0 : index
    %28 = vector.load %arg6[%c0_12, %c0_13] : memref<1x16xf32, #tpu.memory_space<vmem>>, vector<1x16xf32>
    %29 = vector.broadcast %28 : vector<1x16xf32> to vector<2x16xf32>
    %30 = arith.addf %27, %29 : vector<2x16xf32>
    %c0_14 = arith.constant 0 : index
    %c0_15 = arith.constant 0 : index
    %31 = vector.load %arg7[%c0_14, %c0_15] : memref<2x16xf32, #tpu.memory_space<vmem>>, vector<2x16xf32>
    tpu.vector_store %arg7[%c0_14, %c0_15], %30 {strides = array<i32>} : memref<2x16xf32, #tpu.memory_space<vmem>>, vector<2x16xf32>,
    return
  }
  func.func @transform_0(%arg0: i32, %arg1: i32) -> (i32, i32) {
    %c0_i32 = arith.constant 0 : i32
    %c0_i32_0 = arith.constant 0 : i32
    return %arg0, %c0_i32 : i32, i32
  }
  func.func @transform_1(%arg0: i32, %arg1: i32) -> (i32, i32) {
    %c0_i32 = arith.constant 0 : i32
    %c0_i32_0 = arith.constant 0 : i32
    %c0_i32_1 = arith.constant 0 : i32
    return %c0_i32, %c0_i32_0 : i32, i32
  }
  func.func @transform_2(%arg0: i32, %arg1: i32) -> (i32, i32) {
    %c0_i32 = arith.constant 0 : i32
    %c0_i32_0 = arith.constant 0 : i32
    %c0_i32_1 = arith.constant 0 : i32
    return %c0_i32, %c0_i32_0 : i32, i32
  }
  func.func @transform_3(%arg0: i32, %arg1: i32) -> (i32, i32) {
    %c0_i32 = arith.constant 0 : i32
    %c0_i32_0 = arith.constant 0 : i32
    return %c0_i32, %arg1 : i32, i32
  }
  func.func @transform_4(%arg0: i32, %arg1: i32) -> (i32, i32) {
    %c0_i32 = arith.constant 0 : i32
    %c0_i32_0 = arith.constant 0 : i32
    return %c0_i32, %arg1 : i32, i32
  }
  func.func @transform_5(%arg0: i32, %arg1: i32) -> (i32, i32) {
    %c0_i32 = arith.constant 0 : i32
    return %arg0, %arg1 : i32, i32
  }
}

</mosaic_0001>

<bundles_post_ra>
// kernel: vit3d_forward.13
= control target key start
LH: loop header
LB: loop body
LE: loop exit
PB: predicated region body
PF: predicated region fallthrough
CT: control target
= control target key end

     0   :  { %vm19_vm0 = vcmask 261120   ;;  %v398_v40 = vmov 0.0   ;;  %s566_s1 = inlined_call_operand.vmem [shape: bf16[256,32], index: 1, kind: input, shape index: {}]   ;;  %s567_s0 = inlined_call_operand.vmem [shape: f32[64,256], index: 0, kind: input, shape index: {}]   ;;  %s568_s2 = inlined_call_operand.vmem [shape: f32[1,32], index: 2, kind: input, shape index: {}]   ;;  %s569_s3 = inlined_call_operand.vmem [shape: f32[64,32], index: 3, kind: output, shape index: {}]  }
   0x1   :  { %v382_v0 = vld [vmem:[%s566_s1 + $0x78] sm:$0xff]   ;;  %v384_v2 = vld [vmem:[%s566_s1 + $0x70] sm:$0xff]   ;;  %v386_v4 = vld [vmem:[%s566_s1 + $0x68] sm:$0xff]   ;;  %20 = vst.msk [vmem:[#allocation2] sm:$0xff] %vm19_vm0, %v398_v40 }
   0x2   :  { %v383_v1 = vld [vmem:[%s566_s1 + $0x38] sm:$0xff]   ;;  %325 = vmatprep.subr.bf16.mxu0 %v382_v0  ;;  %365 = vmatprep.subr.bf16.mxu1 %v382_v0  ;;  %v385_v3 = vld [vmem:[%s566_s1 + $0x30] sm:$0xff]   ;;  %v387_v5 = vld [vmem:[%s566_s1 + $0x28] sm:$0xff]   ;;  %21 = vst.msk [vmem:[#allocation2 + $0x8] sm:$0xff] %vm19_vm0, %v398_v40 }
   0x3   :  { %326 = vmatpush3.bf16.msra.mxu0 %v383_v1  ;;  %373 = vmatpush3.bf16.msra.mxu1 %v383_v1  ;;  %v388_v6 = vld [vmem:[%s566_s1 + $0x60] sm:$0xff]   ;;  %v390_v8 = vld [vmem:[%s566_s1 + $0x58] sm:$0xff]   ;;  %v392_v10 = vld [vmem:[%s566_s1 + $0x50] sm:$0xff]   ;;  %22 = vst.msk [vmem:[#allocation2 + $0x10] sm:$0xff] %vm19_vm0, %v398_v40 }
   0x4   :  { %327 = vmatprep.subr.bf16.mxu0 %v384_v2  ;;  %366 = vmatprep.subr.bf16.mxu1 %v384_v2  ;;  %v389_v7 = vld [vmem:[%s566_s1 + $0x20] sm:$0xff]   ;;  %v391_v9 = vld [vmem:[%s566_s1 + $0x18] sm:$0xff]   ;;  %v37_v11 = vld [vmem:[%s567_s0 + $0x8] sm:$0xff]  ;;  %23 = vst.msk [vmem:[#allocation2 + $0x18] sm:$0xff] %vm19_vm0, %v398_v40 }
   0x5   :  { %v39_v12 = vld [vmem:[%s567_s0 + $0x18] sm:$0xff]  ;;  %v45_v13 = vld [vmem:[%s567_s0 + $0x48] sm:$0xff]  ;;  %v393_v17 = vld [vmem:[%s566_s1 + $0x10] sm:$0xff]   ;;  %24 = vst.msk [vmem:[#allocation2 + $0x20] sm:$0xff] %vm19_vm0, %v398_v40 }
   0x6   :  { %v53_v14 = vpack.c.bf16 %v39_v12, %v37_v11  ;;  %v47_v15 = vld [vmem:[%s567_s0 + $0x58] sm:$0xff]  ;;  %v394_v18 = vld [vmem:[%s566_s1 + $0x48] sm:$0xff]   ;;  %v396_v20 = vld [vmem:[%s566_s1 + $0x40] sm:$0xff]   ;;  %25 = vst.msk [vmem:[#allocation2 + $0x28] sm:$0xff] %vm19_vm0, %v398_v40 }
   0x7   :  { %328 = vmatpush3.bf16.msra.mxu0 %v385_v3  ;;  %374 = vmatpush3.bf16.msra.mxu1 %v385_v3  ;;  %v57_v16 = vpack.c.bf16 %v47_v15, %v45_v13  ;;  %v395_v19 = vld [vmem:[%s566_s1 + $0x8] sm:$0xff]   ;;  %v397_v21 = vld [vmem:[%s566_s1] sm:$0xff]   ;;  %v38_v23 = vld [vmem:[%s567_s0 + $0x10] sm:$0xff]  ;;  %26 = vst.msk [vmem:[#allocation2 + $0x30] sm:$0xff] %vm19_vm0, %v398_v40 }
   0x8   :  { %329 = vmatprep.subr.bf16.mxu0 %v386_v4  ;;  %367 = vmatprep.subr.bf16.mxu1 %v386_v4  ;;  %v36_v22 = vld [vmem:[%s567_s0] sm:$0xff]  ;;  %v46_v25 = vld [vmem:[%s567_s0 + $0x50] sm:$0xff]  ;;  %v41_v26 = vld [vmem:[%s567_s0 + $0x28] sm:$0xff]  ;;  %27 = vst.msk [vmem:[#allocation2 + $0x38] sm:$0xff] %vm19_vm0, %v398_v40 }
   0x9   :  { %220 = vmatprep.mubr.bf16.mxu0 %v53_v14  ;;  %236 = vmatprep.mubr.bf16.mxu1 %v57_v16  ;;  %v44_v24 = vld [vmem:[%s567_s0 + $0x40] sm:$0xff]  ;;  %v43_v27 = vld [vmem:[%s567_s0 + $0x38] sm:$0xff]  ;;  %v49_v28 = vld [vmem:[%s567_s0 + $0x68] sm:$0xff]  ;;  %v52_v30 = vpack.c.bf16 %v38_v23, %v36_v22 }
   0xa   :  { %v51_v29 = vld [vmem:[%s567_s0 + $0x78] sm:$0xff]  ;;  %v56_v31 = vpack.c.bf16 %v46_v25, %v44_v24  ;;  %v55_v32 = vpack.c.bf16 %v43_v27, %v41_v26  ;;  %v40_v34 = vld [vmem:[%s567_s0 + $0x20] sm:$0xff]  ;;  %v42_v35 = vld [vmem:[%s567_s0 + $0x30] sm:$0xff] }
   0xb   :  { %330 = vmatpush3.bf16.msra.mxu0 %v387_v5  ;;  %375 = vmatpush3.bf16.msra.mxu1 %v387_v5  ;;  %v59_v33 = vpack.c.bf16 %v51_v29, %v49_v28  ;;  %v48_v36 = vld [vmem:[%s567_s0 + $0x60] sm:$0xff]  ;;  %v50_v37 = vld [vmem:[%s567_s0 + $0x70] sm:$0xff]  ;;  %v54_v38 = vpack.c.bf16 %v42_v35, %v40_v34  ;;  %v29_v53 = vld [vmem:[#allocation2 + $0x8] sm:$0xff] }
   0xc   :  { %331 = vmatprep.subr.bf16.mxu0 %v388_v6  ;;  %368 = vmatprep.subr.bf16.mxu1 %v388_v6  ;;  %v58_v39 = vpack.c.bf16 %v50_v37, %v48_v36  ;;  %v28_v43 = vld [vmem:[#allocation2] sm:$0xff]  ;;  %v30_v63 = vld [vmem:[#allocation2 + $0x10] sm:$0xff] }
   0xd   :  { %v32_v45 = vld [vmem:[#allocation2 + $0x20] sm:$0xff]  ;;  %v33_v55 = vld [vmem:[#allocation2 + $0x28] sm:$0xff] }
   0xe   :  { %v34_v1 = vld [vmem:[#allocation2 + $0x30] sm:$0xff]  ;;  %v324_v5 = vld [vmem:[%s568_s2] ss:$0 sm:$0xff] }
   0xf   :  { %332 = vmatpush3.bf16.msra.mxu0 %v389_v7  ;;  %376 = vmatpush3.bf16.msra.mxu1 %v389_v7  ;;  %v35_v14 = vld [vmem:[#allocation2 + $0x38] sm:$0xff] }
  0x10   :  { %333 = vmatprep.subr.bf16.mxu0 %v390_v8  ;;  %369 = vmatprep.subr.bf16.mxu1 %v390_v8 }
  0x13   :  { %334 = vmatpush3.bf16.msra.mxu0 %v391_v9  ;;  %377 = vmatpush3.bf16.msra.mxu1 %v391_v9 }
  0x14   :  { %335 = vmatprep.subr.bf16.mxu0 %v392_v10  ;;  %370 = vmatprep.subr.bf16.mxu1 %v392_v10  ;;  %v31_v10 = vld [vmem:[#allocation2 + $0x18] sm:$0xff] }
  0x17   :  { %336 = vmatpush3.bf16.msra.mxu0 %v393_v17  ;;  %378 = vmatpush3.bf16.msra.mxu1 %v393_v17 }
  0x18   :  { %337 = vmatprep.subr.bf16.mxu0 %v394_v18  ;;  %371 = vmatprep.subr.bf16.mxu1 %v394_v18 }
  0x1b   :  { %338 = vmatpush3.bf16.msra.mxu0 %v395_v19  ;;  %379 = vmatpush3.bf16.msra.mxu1 %v395_v19 }
  0x1c   :  { %339 = vmatprep.subr.bf16.mxu0 %v396_v20  ;;  %372 = vmatprep.subr.bf16.mxu1 %v396_v20 }
  0x1f   :  { %340 = vmatpush3.bf16.msra.mxu0 %v397_v21  ;;  %380 = vmatpush3.bf16.msra.mxu1 %v397_v21 }
  0x22   :  { %221 = vmatmul.mubr.bf16.vlgmr.msra.gmra.mxu0 %v52_v30  ;;  %237 = vmatmul.mubr.bf16.vlgmr.msra.gmra.mxu1 %v56_v31 }
  0x23   :  { %228 = vmatprep.mubr.bf16.mxu0 %v55_v32  ;;  %244 = vmatprep.mubr.bf16.mxu1 %v59_v33 }
  0x2a   :  { %229 = vmatmul.mubr.bf16.gmra.mxu0 %v54_v38  ;;  %245 = vmatmul.mubr.bf16.gmra.mxu1 %v58_v39 }
  0xe2   :  { %v341_v41 = vpop.f32.mrf.mxu0  ;;  %v353_v42 = vpop.f32.mrf.mxu1 }
  0xe4   :  { %v342_v44 = vpop.f32.mrf.mxu0  ;;  %v354_v46 = vpop.f32.mrf.mxu1 }
  0xe5   :  { %v343_v47 = vadd.f32 %v342_v44, %v341_v41  ;;  %v355_v48 = vadd.f32 %v354_v46, %v353_v42 }
  0xe6   :  { %v344_v49 = vpop.f32.mrf.mxu0  ;;  %v356_v50 = vpop.f32.mrf.mxu1 }
  0xe7   :  { %v253_v51 = vadd.f32 %v343_v47, %v28_v43  ;;  %v257_v52 = vadd.f32 %v355_v48, %v32_v45 }
  0xe8   :  { %v345_v54 = vpop.f32.mrf.mxu0  ;;  %v357_v56 = vpop.f32.mrf.mxu1 }
  0xe9   :  { %262 = vst.msk [vmem:[#allocation2] sm:$0xff] %vm19_vm0, %v253_v51  ;;  %266 = vst.msk [vmem:[#allocation2 + $0x20] sm:$0xff] %vm19_vm0, %v257_v52  ;;  %v346_v57 = vadd.f32 %v345_v54, %v344_v49  ;;  %v358_v58 = vadd.f32 %v357_v56, %v356_v50 }
  0xea   :  { %v347_v59 = vpop.f32.mrf.mxu0  ;;  %v359_v60 = vpop.f32.mrf.mxu1 }
  0xeb   :  { %v254_v61 = vadd.f32 %v346_v57, %v29_v53  ;;  %v258_v62 = vadd.f32 %v358_v58, %v33_v55 }
  0xec   :  { %v348_v0 = vpop.f32.mrf.mxu0  ;;  %v360_v2 = vpop.f32.mrf.mxu1 }
  0xed   :  { %263 = vst.msk [vmem:[#allocation2 + $0x8] sm:$0xff] %vm19_vm0, %v254_v61  ;;  %267 = vst.msk [vmem:[#allocation2 + $0x28] sm:$0xff] %vm19_vm0, %v258_v62  ;;  %v349_v3 = vadd.f32 %v348_v0, %v347_v59  ;;  %v361_v4 = vadd.f32 %v360_v2, %v359_v60 }
  0xee   :  { %v350_v6 = vpop.f32.mrf.mxu0  ;;  %v362_v7 = vpop.f32.mrf.mxu1 }
  0xef   :  { %v255_v8 = vadd.f32 %v349_v3, %v30_v63  ;;  %v259_v9 = vadd.f32 %v361_v4, %v34_v1 }
  0xf0   :  { %v273_v11 = vld [vmem:[#allocation2] sm:$0xff]  ;;  %v351_v13 = vpop.f32.mrf.mxu0  ;;  %v363_v15 = vpop.f32.mrf.mxu1 }
  0xf1   :  { %v277_v12 = vld [vmem:[#allocation2 + $0x20] sm:$0xff]  ;;  %v288_v16 = vadd.f32 %v324_v5, %v273_v11  ;;  %264 = vst.msk [vmem:[#allocation2 + $0x10] sm:$0xff] %vm19_vm0, %v255_v8  ;;  %268 = vst.msk [vmem:[#allocation2 + $0x30] sm:$0xff] %vm19_vm0, %v259_v9  ;;  %v352_v18 = vadd.f32 %v351_v13, %v350_v6  ;;  %v364_v19 = vadd.f32 %v363_v15, %v362_v7 }
  0xf2   :  { %v292_v17 = vadd.f32 %v324_v5, %v277_v12 }
  0xf3   :  { %296 = vst.msk [vmem:[%s569_s3] sm:$0xff] %vm19_vm0, %v288_v16  ;;  %v256_v20 = vadd.f32 %v352_v18, %v31_v10  ;;  %v260_v21 = vadd.f32 %v364_v19, %v35_v14 }
  0xf4   :  { %300 = vst.msk [vmem:[%s569_s3 + $0x20] sm:$0xff] %vm19_vm0, %v292_v17  ;;  %v274_v22 = vld [vmem:[#allocation2 + $0x8] sm:$0xff] }
  0xf5   :  { %v278_v23 = vld [vmem:[#allocation2 + $0x28] sm:$0xff]  ;;  %v289_v24 = vadd.f32 %v324_v5, %v274_v22  ;;  %265 = vst.msk [vmem:[#allocation2 + $0x18] sm:$0xff] %vm19_vm0, %v256_v20  ;;  %269 = vst.msk [vmem:[#allocation2 + $0x38] sm:$0xff] %vm19_vm0, %v260_v21 }
  0xf6   :  { %v293_v25 = vadd.f32 %v324_v5, %v278_v23 }
  0xf7   :  { %297 = vst.msk [vmem:[%s569_s3 + $0x8] sm:$0xff] %vm19_vm0, %v289_v24 }
  0xf8   :  { %301 = vst.msk [vmem:[%s569_s3 + $0x28] sm:$0xff] %vm19_vm0, %v293_v25  ;;  %v275_v26 = vld [vmem:[#allocation2 + $0x10] sm:$0xff] }
  0xf9   :  { %v279_v27 = vld [vmem:[#allocation2 + $0x30] sm:$0xff]  ;;  %v290_v28 = vadd.f32 %v324_v5, %v275_v26 }
  0xfa   :  { %v294_v29 = vadd.f32 %v324_v5, %v279_v27 }
  0xfb   :  { %298 = vst.msk [vmem:[%s569_s3 + $0x10] sm:$0xff] %vm19_vm0, %v290_v28 }
  0xfc   :  { %302 = vst.msk [vmem:[%s569_s3 + $0x30] sm:$0xff] %vm19_vm0, %v294_v29  ;;  %v276_v30 = vld [vmem:[#allocation2 + $0x18] sm:$0xff] }
  0xfd   :  { %v280_v31 = vld [vmem:[#allocation2 + $0x38] sm:$0xff]  ;;  %v291_v32 = vadd.f32 %v324_v5, %v276_v30 }
  0xfe   :  { %v295_v33 = vadd.f32 %v324_v5, %v280_v31 }
  0xff   :  { %299 = vst.msk [vmem:[%s569_s3 + $0x18] sm:$0xff] %vm19_vm0, %v291_v32 }
 0x100   :  { %303 = vst.msk [vmem:[%s569_s3 + $0x38] sm:$0xff] %vm19_vm0, %v295_v33 }

// kernel: vit3d_forward.14
= control target key start
LH: loop header
LB: loop body
LE: loop exit
PB: predicated region body
PF: predicated region fallthrough
CT: control target
= control target key end

     0   :  { %s569_s15 = smov 0   ;;  %s571_s16 = smov 0   ;;  %s645_s0 = inlined_call_operand.vmem [shape: f32[2,33,32], index: 0, kind: input, shape index: {}]   ;;  %s646_s1 = inlined_call_operand.vmem [shape: f32[33,32], index: 1, kind: input, shape index: {}]   ;;  %s647_s2 = inlined_call_operand.vmem [shape: f32[1,32], index: 2, kind: input, shape index: {}]   ;;  %s648_s3 = inlined_call_operand.vmem [shape: f32[1,32], index: 3, kind: input, shape index: {}]   ;;  %s649_s4 = inlined_call_operand.vmem [shape: f32[2,33,32], index: 4, kind: output, shape index: {}]  }
   0x1   :  { %s573_s17 = smov 0  }
   0x2 LB: > { %s26_s18 = sadd.s32 1, %s538_s16  ;;  %p478_p0 = scmp.ge.s32.totalorder %s542_s17, 1  ;;  %s542_s17 = sphi %s573_s17, %s14_s17   ;;  %s538_s16 = sphi %s571_s16, %s651_s16   ;;  %s534_s15 = sphi %s569_s15, %s650_s15  }
   0x3   : > { %p28_p1 = scmp.ge.s32.totalorder %s26_s18, 2  ;;  %p194_p2 = scmp.lt.s32.totalorder %s542_s17, 3 }
   0x5   : > { %s653_s18 = smov (%p28_p1, %s26_s18), 0  ;;  %p195_p3 = pnand %p478_p0, %p194_p2 }
   0x6   : > { %p234_p4 = scmp.lt.s32.totalorder (!%p195_p3), %s534_s15, 1 }
   0x7   : > { %198 = sbr.rel (%p195_p3) target bundleno = 337 (0x151), region = 36 }
   0xc   : > { %s655_s15 = smov (!%p234_p4, %s534_s15), 1  ;;  %v264_v0 = vld [vmem:[%s646_s1] sm:$0xff]  ;;  %v266_v1 = vld [vmem:[%s646_s1 + $0x10] sm:$0xff]  ;;  %v265_v2 = vld [vmem:[%s646_s1 + $0x8] sm:$0xff]  ;;  %vm276_vm0 = vcmask 261120   ;;  %vm289_vm1 = vcmask 253952  }
   0xd   : > { %s485_s19 = smul.u32 40, %s655_s15  ;;  %v267_v3 = vld [vmem:[%s646_s1 + $0x18] sm:$0xff]  ;;  %v268_v13 = vld [vmem:[%s646_s1 + $0x20] sm:$0x1] }
   0xe   : > { %v481_v61 = vld [vmem:[%s647_s2] ss:$0 sm:$0xff] }
   0xf   : > { %s241_s28 = scalar_lea.vmem %s645_s0, %s485_s19  ;;  %v482_v63 = vld [vmem:[%s648_s3] ss:$0 sm:$0xff]  ;;  %s257_s13 = scalar_lea.vmem %s649_s4, %s485_s19 }
  0x10   : > { %v259_v4 = vld [vmem:[%s241_s28] sm:$0xff]  ;;  %v261_v5 = vld [vmem:[%s241_s28 + $0x10] sm:$0xff]  ;;  %v260_v6 = vld [vmem:[%s241_s28 + $0x8] sm:$0xff] }
  0x11   : > { %v269_v7 = vadd.f32 %v264_v0, %v259_v4  ;;  %v271_v8 = vadd.f32 %v266_v1, %v261_v5  ;;  %v270_v9 = vadd.f32 %v265_v2, %v260_v6  ;;  %v262_v10 = vld [vmem:[%s241_s28 + $0x18] sm:$0xff]  ;;  %v263_v12 = vld [vmem:[%s241_s28 + $0x20] sm:$0x1] }
  0x12   : > { %v272_v11 = vadd.f32 %v267_v3, %v262_v10  ;;  %v273_v18 = vadd.f32 %v268_v13, %v263_v12 }
  0x13   : > { %v277_v14 = vsel %vm276_vm0, %v269_v7, 0.0  ;;  %v283_v15 = vsel %vm276_vm0, %v271_v8, 0.0  ;;  %v280_v16 = vsel %vm276_vm0, %v270_v9, 0.0 }
  0x14   : > { %278 = vadd.xlane.f32.xlu0 %v277_v14  ;;  %284 = vadd.xlane.f32.xlu1 %v283_v15  ;;  %v286_v17 = vsel %vm276_vm0, %v272_v11, 0.0  ;;  %v290_v19 = vsel %vm289_vm1, %v273_v18, 0.0 }
  0x18   : > { %281 = vadd.xlane.f32.xlu0 %v280_v16  ;;  %287 = vadd.xlane.f32.xlu1 %v286_v17 }
  0x1c   : > { %291 = vadd.xlane.f32.xlu0 %v290_v19 }
  0x9d   : > { %v279_v20 = vpop.xlane.xlu0 %278  ;;  %v285_v21 = vpop.xlane.xlu1 %284 }
  0x9e   : > { %v294_v22 = vmul.f32 0.03125, %v279_v20  ;;  %v296_v23 = vmul.f32 0.03125, %v285_v21 }
  0xa0   : > { %v299_v24 = vsub.f32 %v269_v7, %v294_v22  ;;  %v301_v25 = vsub.f32 %v271_v8, %v296_v23 }
  0xa1   : > { %v282_v26 = vpop.xlane.xlu0 %281  ;;  %v288_v27 = vpop.xlane.xlu1 %287 }
  0xa2   : > { %v295_v28 = vmul.f32 0.03125, %v282_v26  ;;  %v297_v29 = vmul.f32 0.03125, %v288_v27  ;;  %v304_v30 = vmul.f32 %v299_v24, %v299_v24  ;;  %v306_v31 = vmul.f32 %v301_v25, %v301_v25 }
  0xa4   : > { %v300_v32 = vsub.f32 %v270_v9, %v295_v28  ;;  %v302_v33 = vsub.f32 %v272_v11, %v297_v29  ;;  %v309_v34 = vsel %vm276_vm0, %v304_v30, 0.0  ;;  %v315_v37 = vsel %vm276_vm0, %v306_v31, 0.0 }
  0xa5   : > { %310 = vadd.xlane.f32.xlu1 %v309_v34  ;;  %v292_v35 = vpop.xlane.xlu0 %291 }
  0xa6   : > { %v298_v36 = vmul.f32 0.03125, %v292_v35  ;;  %v305_v38 = vmul.f32 %v300_v32, %v300_v32  ;;  %v307_v39 = vmul.f32 %v302_v33, %v302_v33 }
  0xa8   : > { %v303_v40 = vsub.f32 %v273_v18, %v298_v36  ;;  %v312_v41 = vsel %vm276_vm0, %v305_v38, 0.0  ;;  %v318_v42 = vsel %vm276_vm0, %v307_v39, 0.0 }
  0xa9   : > { %316 = vadd.xlane.f32.xlu1 %v315_v37  ;;  %313 = vadd.xlane.f32.xlu0 %v312_v41 }
  0xaa   : > { %v308_v43 = vmul.f32 %v303_v40, %v303_v40 }
  0xac   : > { %v321_v44 = vsel %vm289_vm1, %v308_v43, 0.0 }
  0xad   : > { %319 = vadd.xlane.f32.xlu0 %v318_v42  ;;  %322 = vadd.xlane.f32.xlu1 %v321_v44 }
 0x12e   : > { %v311_v45 = vpop.xlane.xlu1 %310 }
 0x12f   : > { %v324_v46 = vmul.f32 0.03125, %v311_v45 }
 0x131   : > { %v329_v47 = vadd.f32 1e-05, %v324_v46 }
 0x132   : > { %v317_v48 = vpop.xlane.xlu1 %316  ;;  %v314_v49 = vpop.xlane.xlu0 %313 }
 0x133   : > { %510 = vrsqrt.f32 %v329_v47  ;;  %v326_v50 = vmul.f32 0.03125, %v317_v48  ;;  %v325_v51 = vmul.f32 0.03125, %v314_v49 }
 0x135   : > { %v331_v52 = vadd.f32 1e-05, %v326_v50  ;;  %v330_v53 = vadd.f32 1e-05, %v325_v51 }
 0x136   : > { %v323_v54 = vpop.xlane.xlu1 %322  ;;  %v320_v55 = vpop.xlane.xlu0 %319 }
 0x137   : > { %512 = vrsqrt.f32 %v331_v52  ;;  %v328_v56 = vmul.f32 0.03125, %v323_v54  ;;  %v327_v57 = vmul.f32 0.03125, %v320_v55 }
 0x138   : > { %514 = vrsqrt.f32 %v330_v53 }
 0x139   : > { %v333_v58 = vadd.f32 1e-05, %v328_v56  ;;  %v332_v59 = vadd.f32 1e-05, %v327_v57 }
 0x13b   : > { %516 = vrsqrt.f32 %v333_v58 }
 0x13c   : > { %518 = vrsqrt.f32 %v332_v59 }
 0x140   : > { %v511_v60 = vpop.eup %510 }
 0x141   : > { %v339_v62 = vmul.f32 %v511_v60, %v299_v24 }
 0x143   : > { %v350_v0 = vmul.f32 %v481_v61, %v339_v62 }
 0x144   : > { %v513_v1 = vpop.eup %512 }
 0x145   : > { %v515_v2 = vpop.eup %514  ;;  %v361_v3 = vadd.f32 %v482_v63, %v350_v0  ;;  %v341_v4 = vmul.f32 %v513_v1, %v301_v25 }
 0x146   : > { %v340_v5 = vmul.f32 %v515_v2, %v300_v32 }
 0x147   : > { %366 = vst.msk [vmem:[%s257_s13] sm:$0xff] %vm276_vm0, %v361_v3  ;;  %v352_v6 = vmul.f32 %v481_v61, %v341_v4 }
 0x148   : > { %v517_v7 = vpop.eup %516  ;;  %v351_v8 = vmul.f32 %v481_v61, %v340_v5 }
 0x149   : > { %v519_v9 = vpop.eup %518  ;;  %v363_v10 = vadd.f32 %v482_v63, %v352_v6  ;;  %v343_v11 = vmul.f32 %v517_v7, %v303_v40 }
 0x14a   : > { %v362_v12 = vadd.f32 %v482_v63, %v351_v8  ;;  %v342_v13 = vmul.f32 %v519_v9, %v302_v33 }
 0x14b   : > { %368 = vst.msk [vmem:[%s257_s13 + $0x10] sm:$0xff] %vm276_vm0, %v363_v10  ;;  %v354_v14 = vmul.f32 %v481_v61, %v343_v11 }
 0x14c   : > { %367 = vst.msk [vmem:[%s257_s13 + $0x8] sm:$0xff] %vm276_vm0, %v362_v12  ;;  %v353_v15 = vmul.f32 %v481_v61, %v342_v13 }
 0x14d   : > { %v365_v16 = vadd.f32 %v482_v63, %v354_v14 }
 0x14e   : > { %v364_v17 = vadd.f32 %v482_v63, %v353_v15 }
 0x14f   : > { %370 = vst.msk [vmem:[%s257_s13 + $0x20] sm:$0x1] %vm289_vm1, %v365_v16 }
 0x150   : > { %369 = vst.msk [vmem:[%s257_s13 + $0x18] sm:$0xff] %vm276_vm0, %v364_v17 }
 0x151 PF: > { %s14_s17 = sadd.s32 1, %s542_s17   ;;  %s650_s15 = smov %s538_s16 }
 0x152   : > { %p11_p5 = scmp.ge.s32.totalorder %s14_s17, 4   ;;  %s651_s16 = smov %s653_s18 }
 0x154   :  { %13 = sbr.rel (!%p11_p5) target bundleno = 2 (0x2), region = 69 }

// kernel: vit3d_forward.15
= control target key start
LH: loop header
LB: loop body
LE: loop exit
PB: predicated region body
PF: predicated region fallthrough
CT: control target
= control target key end

     0   :  { %vm44_vm0 = vcmask 261120   ;;  %vm69_vm1 = vcmask 254976   ;;  %v728_v63 = vmov 0.0   ;;  %vm729_vm2 = vmmov 0   ;;  %s999_s0 = inlined_call_operand.vmem [shape: f32[66,32], index: 0, kind: input, shape index: {}]   ;;  %s1000_s5 = inlined_call_operand.vmem [shape: bf16[32,64], index: 5, kind: input, shape index: {}]   ;;  %s1001_s3 = inlined_call_operand.vmem [shape: bf16[32,96], index: 3, kind: input, shape index: {}]   ;;  %s1002_s7 = inlined_call_operand.vmem [shape: bf16[64,96], index: 7, kind: input, shape index: {}]   ;;  %s1003_s1 = inlined_call_operand.vmem [shape: f32[1,32], index: 1, kind: input, shape index: {}]   ;;  %s1004_s2 = inlined_call_operand.vmem [shape: f32[1,32], index: 2, kind: input, shape index: {}]   ;;  %s1005_s6 = inlined_call_operand.vmem [shape: f32[1,64], index: 6, kind: input, shape index: {}]   ;;  %s1006_s4 = inlined_call_operand.vmem [shape: f32[1,96], index: 4, kind: input, shape index: {}]   ;;  %s1007_s8 = inlined_call_operand.vmem [shape: f32[1,96], index: 8, kind: input, shape index: {}]   ;;  %s1008_s9 = inlined_call_operand.vmem [shape: f32[66,96], index: 9, kind: output, shape index: {}]  }
   0x1   :  { %v33_v0 = vld [vmem:[%s999_s0] sm:$0xff]  ;;  %v35_v1 = vld [vmem:[%s999_s0 + $0x10] sm:$0xff]  ;;  %v34_v2 = vld [vmem:[%s999_s0 + $0x8] sm:$0xff]  ;;  %620 = vmatprep.subr.bf16.mxu0 %v728_v63  ;;  %624 = vmatprep.mubr.msk.bf16.mxu0 %vm729_vm2, %v728_v63  ;;  %vm457_vm3 = vcmask 523264   ;;  %vm554_vm4 = vcmask 785408   ;;  %vm563_vm5 = vcmask 779264  }
   0x2   :  { %v45_v3 = vsel %vm44_vm0, %v33_v0, 0.0  ;;  %v51_v4 = vsel %vm44_vm0, %v35_v1, 0.0  ;;  %v36_v5 = vld [vmem:[%s999_s0 + $0x18] sm:$0xff]  ;;  %v48_v6 = vsel %vm44_vm0, %v34_v2, 0.0  ;;  %v37_v8 = vld [vmem:[%s999_s0 + $0x20] sm:$0xff]  ;;  %v38_v9 = vld [vmem:[%s999_s0 + $0x28] sm:$0xff]  ;;  %696 = vmatprep.subr.bf16.mxu1 %v728_v63  ;;  %632 = vmatprep.mubr.msk.bf16.mxu1 %vm729_vm2, %v728_v63 }
   0x3   :  { %46 = vadd.xlane.f32.xlu0 %v45_v3  ;;  %52 = vadd.xlane.f32.xlu1 %v51_v4  ;;  %v54_v7 = vsel %vm44_vm0, %v36_v5, 0.0  ;;  %v57_v10 = vsel %vm44_vm0, %v37_v8, 0.0  ;;  %v60_v11 = vsel %vm44_vm0, %v38_v9, 0.0  ;;  %v39_v12 = vld [vmem:[%s999_s0 + $0x30] sm:$0xff]  ;;  %v40_v13 = vld [vmem:[%s999_s0 + $0x38] sm:$0xff] }
   0x4   :  { %v63_v14 = vsel %vm44_vm0, %v39_v12, 0.0  ;;  %v66_v15 = vsel %vm44_vm0, %v40_v13, 0.0  ;;  %v41_v16 = vld [vmem:[%s999_s0 + $0x40] sm:$0x3] }
   0x5   :  { %v70_v17 = vsel %vm69_vm1, %v41_v16, 0.0 }
   0x7   :  { %49 = vadd.xlane.f32.xlu0 %v48_v6  ;;  %55 = vadd.xlane.f32.xlu1 %v54_v7 }
   0xb   :  { %58 = vadd.xlane.f32.xlu0 %v57_v10  ;;  %61 = vadd.xlane.f32.xlu1 %v60_v11 }
   0xf   :  { %64 = vadd.xlane.f32.xlu0 %v63_v14  ;;  %67 = vadd.xlane.f32.xlu1 %v66_v15 }
  0x13   :  { %71 = vadd.xlane.f32.xlu0 %v70_v17 }
  0x8c   :  { %v47_v18 = vpop.xlane.xlu0 %46  ;;  %v53_v19 = vpop.xlane.xlu1 %52 }
  0x8d   :  { %v74_v20 = vmul.f32 0.03125, %v47_v18  ;;  %v76_v21 = vmul.f32 0.03125, %v53_v19 }
  0x8f   :  { %v816_v22 = vsub.f32 %v33_v0, %v74_v20  ;;  %v818_v23 = vsub.f32 %v35_v1, %v76_v21  ;;  %v702_v0 = vld [vmem:[%s1000_s5 + $0x8] sm:$0xff]   ;;  %v703_v1 = vld [vmem:[%s1000_s5] sm:$0xff]  }
  0x90   :  { %v50_v24 = vpop.xlane.xlu0 %49  ;;  %v56_v25 = vpop.xlane.xlu1 %55  ;;  %621 = vmatpush3.bf16.msra.mxu0 %v702_v0  ;;  %698 = vmatpush3.bf16.msra.mxu1 %v702_v0 }
  0x91   :  { %v75_v26 = vmul.f32 0.03125, %v50_v24  ;;  %v77_v27 = vmul.f32 0.03125, %v56_v25  ;;  %v92_v28 = vmul.f32 %v816_v22, %v816_v22  ;;  %v94_v29 = vmul.f32 %v818_v23, %v818_v23  ;;  %622 = vmatprep.subr.bf16.mxu0 %v728_v63  ;;  %697 = vmatprep.subr.bf16.mxu1 %v728_v63 }
  0x93   :  { %v824_v30 = vsub.f32 %v34_v2, %v75_v26  ;;  %v826_v31 = vsub.f32 %v36_v5, %v77_v27  ;;  %v101_v32 = vsel %vm44_vm0, %v92_v28, 0.0  ;;  %v107_v35 = vsel %vm44_vm0, %v94_v29, 0.0 }
  0x94   :  { %102 = vadd.xlane.f32.xlu1 %v101_v32  ;;  %v59_v33 = vpop.xlane.xlu0 %58  ;;  %v62_v34 = vpop.xlane.xlu1 %61  ;;  %623 = vmatpush3.bf16.msra.mxu0 %v703_v1 }
  0x95   :  { %v78_v36 = vmul.f32 0.03125, %v59_v33  ;;  %v79_v37 = vmul.f32 0.03125, %v62_v34  ;;  %v93_v38 = vmul.f32 %v824_v30, %v824_v30  ;;  %v95_v39 = vmul.f32 %v826_v31, %v826_v31  ;;  %699 = vmatpush3.bf16.msra.mxu1 %v703_v1  ;;  %668 = vmatprep.subr.bf16.mxu0 %v728_v63  ;;  %v569_v34 = vld [vmem:[%s1003_s1] ss:$0 sm:$0xff] }
  0x96   :  { %644 = vmatprep.subr.bf16.mxu1 %v728_v63 }
  0x97   :  { %v834_v40 = vsub.f32 %v37_v8, %v78_v36  ;;  %v836_v41 = vsub.f32 %v38_v9, %v79_v37  ;;  %v104_v42 = vsel %vm44_vm0, %v93_v38, 0.0  ;;  %v110_v45 = vsel %vm44_vm0, %v95_v39, 0.0 }
  0x98   :  { %108 = vadd.xlane.f32.xlu1 %v107_v35  ;;  %105 = vadd.xlane.f32.xlu0 %v104_v42  ;;  %v65_v43 = vpop.xlane.xlu0 %64  ;;  %v68_v44 = vpop.xlane.xlu1 %67  ;;  %v570_v42 = vld [vmem:[%s1004_s2] ss:$0 sm:$0xff] }
  0x99   :  { %v80_v46 = vmul.f32 0.03125, %v65_v43  ;;  %v81_v47 = vmul.f32 0.03125, %v68_v44  ;;  %v96_v48 = vmul.f32 %v834_v40, %v834_v40  ;;  %v97_v49 = vmul.f32 %v836_v41, %v836_v41 }
  0x9b   :  { %v844_v50 = vsub.f32 %v39_v12, %v80_v46  ;;  %v846_v51 = vsub.f32 %v40_v13, %v81_v47  ;;  %v113_v52 = vsel %vm44_vm0, %v96_v48, 0.0  ;;  %v116_v55 = vsel %vm44_vm0, %v97_v49, 0.0 }
  0x9c   :  { %111 = vadd.xlane.f32.xlu0 %v110_v45  ;;  %114 = vadd.xlane.f32.xlu1 %v113_v52  ;;  %v72_v53 = vpop.xlane.xlu0 %71 }
  0x9d   :  { %v82_v54 = vmul.f32 0.03125, %v72_v53  ;;  %v98_v56 = vmul.f32 %v844_v50, %v844_v50  ;;  %v99_v57 = vmul.f32 %v846_v51, %v846_v51 }
  0x9f   :  { %v854_v58 = vsub.f32 %v41_v16, %v82_v54  ;;  %v119_v59 = vsel %vm44_vm0, %v98_v56, 0.0  ;;  %v122_v60 = vsel %vm44_vm0, %v99_v57, 0.0 }
  0xa0   :  { %117 = vadd.xlane.f32.xlu0 %v116_v55  ;;  %120 = vadd.xlane.f32.xlu1 %v119_v59 }
  0xa1   :  { %v100_v61 = vmul.f32 %v854_v58, %v854_v58 }
  0xa3   :  { %v125_v62 = vsel %vm69_vm1, %v100_v61, 0.0 }
  0xa4   :  { %123 = vadd.xlane.f32.xlu0 %v122_v60  ;;  %126 = vadd.xlane.f32.xlu1 %v125_v62 }
 0x11d   :  { %v103_v2 = vpop.xlane.xlu1 %102 }
 0x11e   :  { %v128_v3 = vmul.f32 0.03125, %v103_v2  ;;  %v704_v2 = vld [vmem:[%s1001_s3 + $0x8] sm:$0xff]  }
 0x120   :  { %v137_v4 = vadd.f32 1e-05, %v128_v3 }
 0x121   :  { %v109_v5 = vpop.xlane.xlu1 %108  ;;  %v106_v6 = vpop.xlane.xlu0 %105 }
 0x122   :  { %710 = vrsqrt.f32 %v137_v4  ;;  %v130_v7 = vmul.f32 0.03125, %v109_v5  ;;  %v129_v8 = vmul.f32 0.03125, %v106_v6 }
 0x124   :  { %v139_v9 = vadd.f32 1e-05, %v130_v7  ;;  %v138_v10 = vadd.f32 1e-05, %v129_v8 }
 0x125   :  { %v115_v11 = vpop.xlane.xlu1 %114  ;;  %v112_v12 = vpop.xlane.xlu0 %111 }
 0x126   :  { %v132_v13 = vmul.f32 0.03125, %v115_v11  ;;  %v131_v14 = vmul.f32 0.03125, %v112_v12  ;;  %712 = vrsqrt.f32 %v138_v10 }
 0x127   :  { %714 = vrsqrt.f32 %v139_v9 }
 0x128   :  { %v141_v15 = vadd.f32 1e-05, %v132_v13  ;;  %v140_v16 = vadd.f32 1e-05, %v131_v14  ;;  %v709_v14 = vld [vmem:[%s1002_s7] sm:$0xff]  }
 0x129   :  { %v121_v17 = vpop.xlane.xlu1 %120  ;;  %v118_v18 = vpop.xlane.xlu0 %117 }
 0x12a   :  { %716 = vrsqrt.f32 %v141_v15  ;;  %v134_v19 = vmul.f32 0.03125, %v121_v17  ;;  %v133_v20 = vmul.f32 0.03125, %v118_v18  ;;  %v571_v15 = vld [vmem:[%s1005_s6] ss:$0 sm:$0xff] }
 0x12b   :  { %718 = vrsqrt.f32 %v140_v16 }
 0x12c   :  { %v142_v21 = vadd.f32 1e-05, %v133_v20  ;;  %v143_v24 = vadd.f32 1e-05, %v134_v19 }
 0x12d   :  { %v127_v25 = vpop.xlane.xlu1 %126  ;;  %v124_v26 = vpop.xlane.xlu0 %123 }
 0x12e   :  { %v135_v27 = vmul.f32 0.03125, %v124_v26  ;;  %720 = vrsqrt.f32 %v142_v21  ;;  %v136_v29 = vmul.f32 0.03125, %v127_v25 }
 0x12f   :  { %v711_v28 = vpop.eup %710  ;;  %722 = vrsqrt.f32 %v143_v24 }
 0x130   :  { %v144_v32 = vadd.f32 1e-05, %v135_v27  ;;  %v155_v33 = vmul.f32 %v711_v28, %v816_v22  ;;  %v145_v35 = vadd.f32 1e-05, %v136_v29 }
 0x132   :  { %724 = vrsqrt.f32 %v144_v32  ;;  %v170_v39 = vmul.f32 %v569_v34, %v155_v33 }
 0x133   :  { %v713_v36 = vpop.eup %712  ;;  %726 = vrsqrt.f32 %v145_v35 }
 0x134   :  { %v715_v37 = vpop.eup %714  ;;  %v156_v38 = vmul.f32 %v713_v36, %v824_v30  ;;  %v185_v46 = vadd.f32 %v570_v42, %v170_v39  ;;  %v706_v30 = vld [vmem:[%s1002_s7 + $0x18] sm:$0xff]  }
 0x135   :  { %v157_v22 = vmul.f32 %v715_v37, %v818_v23 }
 0x136   :  { %v171_v44 = vmul.f32 %v569_v34, %v156_v38 }
 0x137   :  { %v717_v43 = vpop.eup %716  ;;  %v172_v55 = vmul.f32 %v569_v34, %v157_v22 }
 0x138   :  { %v719_v45 = vpop.eup %718  ;;  %v186_v47 = vadd.f32 %v570_v42, %v171_v44  ;;  %v159_v49 = vmul.f32 %v717_v43, %v834_v40 }
 0x139   :  { %v158_v48 = vmul.f32 %v719_v45, %v826_v31  ;;  %v707_v31 = vld [vmem:[%s1002_s7 + $0x10] sm:$0xff]   ;;  %v187_v61 = vadd.f32 %v570_v42, %v172_v55 }
 0x13a   :  { %v194_v52 = vpack.c.bf16 %v186_v47, %v185_v46  ;;  %v174_v57 = vmul.f32 %v569_v34, %v159_v49 }
 0x13b   :  { %v173_v53 = vmul.f32 %v569_v34, %v158_v48  ;;  %v721_v54 = vpop.eup %720 }
 0x13c   :  { %625 = vmatmul.mubr.msk.bf16.vlgmr.msra.gmra.mxu0 %vm44_vm0, %v194_v52  ;;  %v160_v56 = vmul.f32 %v721_v54, %v836_v41  ;;  %v723_v23 = vpop.eup %722  ;;  %v189_v62 = vadd.f32 %v570_v42, %v174_v57 }
 0x13d   :  { %628 = vmatprep.mubr.msk.bf16.mxu0 %vm729_vm2, %v728_v63  ;;  %669 = vmatpush3.bf16.msra.mxu0 %v706_v30  ;;  %v188_v40 = vadd.f32 %v570_v42, %v173_v53  ;;  %v161_v41 = vmul.f32 %v723_v23, %v844_v50  ;;  %v705_v50 = vld [vmem:[%s1001_s3] sm:$0xff]  }
 0x13e   :  { %v175_v59 = vmul.f32 %v569_v34, %v160_v56  ;;  %670 = vmatprep.subr.bf16.mxu0 %v728_v63 }
 0x13f   :  { %v725_v60 = vpop.eup %724  ;;  %v195_v3 = vpack.c.bf16 %v188_v40, %v187_v61  ;;  %v176_v7 = vmul.f32 %v569_v34, %v161_v41 }
 0x140   :  { %v190_v0 = vadd.f32 %v570_v42, %v175_v59  ;;  %v162_v1 = vmul.f32 %v725_v60, %v846_v51  ;;  %v727_v6 = vpop.eup %726 }
 0x141   :  { %671 = vmatpush3.bf16.msra.mxu0 %v707_v31  ;;  %v163_v8 = vmul.f32 %v727_v6, %v854_v58  ;;  %v191_v9 = vadd.f32 %v570_v42, %v176_v7  ;;  %v708_v58 = vld [vmem:[%s1002_s7 + $0x8] sm:$0xff]  }
 0x142   :  { %v196_v4 = vpack.c.bf16 %v190_v0, %v189_v62  ;;  %v177_v5 = vmul.f32 %v569_v34, %v162_v1  ;;  %672 = vmatprep.subr.bf16.mxu0 %v728_v63 }
 0x143   :  { %v178_v11 = vmul.f32 %v569_v34, %v163_v8 }
 0x144   :  { %629 = vmatmul.mubr.msk.bf16.gmra.mxu0 %vm44_vm0, %v195_v3  ;;  %633 = vmatmul.mubr.msk.bf16.vlgmr.msra.gmra.mxu1 %vm44_vm0, %v196_v4  ;;  %v192_v51 = vadd.f32 %v570_v42, %v177_v5 }
 0x145   :  { %636 = vmatprep.mubr.msk.bf16.mxu1 %vm729_vm2, %v728_v63  ;;  %645 = vmatpush3.bf16.msra.mxu1 %v704_v2  ;;  %v193_v12 = vadd.f32 %v570_v42, %v178_v11 }
 0x146   :  { %646 = vmatprep.subr.bf16.mxu1 %v728_v63  ;;  %676 = vmatprep.mubr.msk.bf16.mxu0 %vm729_vm2, %v728_v63  ;;  %v197_v10 = vpack.c.bf16 %v192_v51, %v191_v9 }
 0x147   :  { %v198_v13 = vpack.c.bf16 %v193_v12, %v193_v12  ;;  %673 = vmatpush3.bf16.msra.mxu0 %v708_v58 }
 0x148   :  { %674 = vmatprep.subr.bf16.mxu0 %v728_v63 }
 0x149   :  { %647 = vmatpush3.bf16.msra.mxu1 %v705_v50 }
 0x14b   :  { %675 = vmatpush3.bf16.msra.mxu0 %v709_v14 }
 0x14c   :  { %637 = vmatmul.mubr.msk.bf16.gmra.mxu1 %vm44_vm0, %v197_v10 }
 0x14d   :  { %640 = vmatprep.mubr.msk.bf16.mxu1 %vm729_vm2, %v728_v63 }
 0x154   :  { %641 = vmatmul.mubr.msk.bf16.gmra.mxu1 %vm44_vm0, %v198_v13 }
 0x155   :  { %648 = vmatprep.mubr.msk.bf16.mxu1 %vm729_vm2, %v728_v63 }
 0x15c   :  { %649 = vmatmul.mubr.msk.bf16.vlgmr.msra.gmra.mxu1 %vm44_vm0, %v194_v52 }
 0x15d   :  { %652 = vmatprep.mubr.msk.bf16.mxu1 %vm729_vm2, %v728_v63 }
 0x164   :  { %653 = vmatmul.mubr.msk.bf16.gmra.mxu1 %vm44_vm0, %v195_v3 }
 0x165   :  { %656 = vmatprep.mubr.msk.bf16.mxu1 %vm729_vm2, %v728_v63 }
 0x16c   :  { %657 = vmatmul.mubr.msk.bf16.gmra.mxu1 %vm44_vm0, %v196_v4 }
 0x16d   :  { %660 = vmatprep.mubr.msk.bf16.mxu1 %vm729_vm2, %v728_v63 }
 0x174   :  { %661 = vmatmul.mubr.msk.bf16.gmra.mxu1 %vm44_vm0, %v197_v10 }
 0x175   :  { %664 = vmatprep.mubr.msk.bf16.mxu1 %vm729_vm2, %v728_v63 }
 0x17c   :  { %665 = vmatmul.mubr.msk.bf16.gmra.mxu1 %vm44_vm0, %v198_v13 }
 0x1fc   :  { %v271_v16 = vpop.f32.mrf.mxu0 }
 0x1fd   :  { %v272_v18 = vadd.f32 %v571_v15, %v271_v16  ;;  %v587_v16 = vld [vmem:[%s1007_s8] ss:$0 sm:$0xff] }
 0x1fe   :  { %v626_v17 = vpop.f32.mrf.mxu0 }
 0x1ff   :  { %v309_v24 = vmax.f32 %v272_v18, 0.0 }
 0x200   :  { %v274_v19 = vpop.f32.mrf.mxu0 }
 0x201   :  { %v275_v20 = vadd.f32 %v571_v15, %v274_v19 }
 0x202   :  { %v627_v21 = vpop.f32.mrf.mxu0 }
 0x203   :  { %v310_v25 = vmax.f32 %v275_v20, 0.0 }
 0x204   :  { %v279_v26 = vpop.f32.mrf.mxu0  ;;  %v287_v27 = vpop.f32.mrf.mxu1 }
 0x205   :  { %v413_v28 = vpack.c.bf16 %v310_v25, %v309_v24  ;;  %v280_v33 = vadd.f32 %v571_v15, %v279_v26  ;;  %v288_v46 = vadd.f32 %v571_v15, %v287_v27 }
 0x206   :  { %v630_v29 = vpop.f32.mrf.mxu0  ;;  %v634_v32 = vpop.f32.mrf.mxu1 }
 0x207   :  { %677 = vmatmul.mubr.msk.bf16.vlgmr.msra.gmra.mxu0 %vm457_vm3, %v413_v28  ;;  %v311_v39 = vmax.f32 %v280_v33, 0.0  ;;  %v313_v30 = vmax.f32 %v288_v46, 0.0 }
 0x208   :  { %v282_v34 = vpop.f32.mrf.mxu0  ;;  %v290_v35 = vpop.f32.mrf.mxu1  ;;  %680 = vmatprep.mubr.msk.bf16.mxu0 %vm729_vm2, %v728_v63 }
 0x209   :  { %v283_v36 = vadd.f32 %v571_v15, %v282_v34  ;;  %v291_v45 = vadd.f32 %v571_v15, %v290_v35 }
 0x20a   :  { %v631_v37 = vpop.f32.mrf.mxu0  ;;  %v635_v38 = vpop.f32.mrf.mxu1 }
 0x20b   :  { %v312_v42 = vmax.f32 %v283_v36, 0.0  ;;  %v314_v48 = vmax.f32 %v291_v45, 0.0 }
 0x20c   :  { %v295_v43 = vpop.f32.mrf.mxu1 }
 0x20d   :  { %v414_v44 = vpack.c.bf16 %v312_v42, %v311_v39  ;;  %v415_v53 = vpack.c.bf16 %v314_v48, %v313_v30  ;;  %v296_v56 = vadd.f32 %v571_v15, %v295_v43 }
 0x20e   :  { %v638_v22 = vpop.f32.mrf.mxu1 }
 0x20f   :  { %681 = vmatmul.mubr.msk.bf16.gmra.mxu0 %vm457_vm3, %v414_v44  ;;  %v315_v40 = vmax.f32 %v296_v56, 0.0 }
 0x210   :  { %v298_v47 = vpop.f32.mrf.mxu1  ;;  %684 = vmatprep.mubr.msk.bf16.mxu0 %vm729_vm2, %v728_v63 }
 0x211   :  { %v299_v54 = vadd.f32 %v571_v15, %v298_v47 }
 0x212   :  { %v639_v49 = vpop.f32.mrf.mxu1 }
 0x213   :  { %v316_v23 = vmax.f32 %v299_v54, 0.0 }
 0x214   :  { %v303_v52 = vpop.f32.mrf.mxu1 }
 0x215   :  { %v416_v60 = vpack.c.bf16 %v316_v23, %v315_v40  ;;  %v304_v61 = vadd.f32 %v571_v15, %v303_v52  ;;  %v579_v15 = vld [vmem:[%s1006_s4] ss:$0 sm:$0xff] }
 0x216   :  { %v642_v55 = vpop.f32.mrf.mxu1 }
 0x217   :  { %685 = vmatmul.mubr.msk.bf16.gmra.mxu0 %vm457_vm3, %v415_v53  ;;  %v317_v41 = vmax.f32 %v304_v61, 0.0 }
 0x218   :  { %v306_v57 = vpop.f32.mrf.mxu1  ;;  %688 = vmatprep.mubr.msk.bf16.mxu0 %vm729_vm2, %v728_v63 }
 0x219   :  { %v417_v3 = vpack.c.bf16 %v317_v41, %v317_v41 }
 0x21a   :  { %v643_v31 = vpop.f32.mrf.mxu1 }
 0x21c   :  { %v375_v59 = vpop.f32.mrf.mxu1 }
 0x21d   :  { %v376_v18 = vadd.f32 %v579_v15, %v375_v59 }
 0x21e   :  { %v650_v62 = vpop.f32.mrf.mxu1 }
 0x21f   :  { %689 = vmatmul.mubr.msk.bf16.gmra.mxu0 %vm457_vm3, %v416_v60 }
 0x220   :  { %v378_v0 = vpop.f32.mrf.mxu1  ;;  %692 = vmatprep.mubr.msk.bf16.mxu0 %vm729_vm2, %v728_v63 }
 0x221   :  { %v379_v25 = vadd.f32 %v579_v15, %v378_v0 }
 0x222   :  { %v651_v1 = vpop.f32.mrf.mxu1 }
 0x224   :  { %v383_v2 = vpop.f32.mrf.mxu1 }
 0x225   :  { %v384_v32 = vadd.f32 %v579_v15, %v383_v2 }
 0x226   :  { %v654_v4 = vpop.f32.mrf.mxu1 }
 0x227   :  { %693 = vmatmul.mubr.msk.bf16.gmra.mxu0 %vm457_vm3, %v417_v3 }
 0x228   :  { %v386_v5 = vpop.f32.mrf.mxu1 }
 0x229   :  { %v387_v37 = vadd.f32 %v579_v15, %v386_v5 }
 0x22a   :  { %v655_v6 = vpop.f32.mrf.mxu1 }
 0x22c   :  { %v391_v7 = vpop.f32.mrf.mxu1 }
 0x22d   :  { %v392_v44 = vadd.f32 %v579_v15, %v391_v7 }
 0x22e   :  { %v658_v50 = vpop.f32.mrf.mxu1 }
 0x230   :  { %v394_v51 = vpop.f32.mrf.mxu1 }
 0x231   :  { %v395_v48 = vadd.f32 %v579_v15, %v394_v51 }
 0x232   :  { %v659_v8 = vpop.f32.mrf.mxu1 }
 0x234   :  { %v399_v9 = vpop.f32.mrf.mxu1 }
 0x235   :  { %v400_v54 = vadd.f32 %v579_v15, %v399_v9 }
 0x236   :  { %v662_v10 = vpop.f32.mrf.mxu1 }
 0x238   :  { %v402_v11 = vpop.f32.mrf.mxu1 }
 0x239   :  { %v403_v31 = vadd.f32 %v579_v15, %v402_v11 }
 0x23a   :  { %v663_v12 = vpop.f32.mrf.mxu1 }
 0x23c   :  { %v407_v13 = vpop.f32.mrf.mxu1 }
 0x23d   :  { %v408_v62 = vadd.f32 %v579_v15, %v407_v13 }
 0x23e   :  { %v666_v58 = vpop.f32.mrf.mxu1 }
 0x240   :  { %v410_v63 = vpop.f32.mrf.mxu1 }
 0x242   :  { %v667_v14 = vpop.f32.mrf.mxu1 }
 0x2c7   :  { %v507_v17 = vpop.f32.mrf.mxu0 }
 0x2c8   :  { %v508_v19 = vadd.f32 %v587_v16, %v507_v17 }
 0x2c9   :  { %v678_v20 = vpop.f32.mrf.mxu0 }
 0x2ca   :  { %v545_v21 = vadd.f32 %v508_v19, %v376_v18 }
 0x2cb   :  { %v510_v24 = vpop.f32.mrf.mxu0 }
 0x2cc   :  { %555 = vst.msk [vmem:[%s1008_s9] sm:$0xff] %vm554_vm4, %v545_v21  ;;  %v511_v26 = vadd.f32 %v587_v16, %v510_v24 }
 0x2cd   :  { %v679_v27 = vpop.f32.mrf.mxu0 }
 0x2ce   :  { %v546_v28 = vadd.f32 %v511_v26, %v379_v25 }
 0x2cf   :  { %v515_v29 = vpop.f32.mrf.mxu0 }
 0x2d0   :  { %556 = vst.msk [vmem:[%s1008_s9 + $0x8] sm:$0xff] %vm554_vm4, %v546_v28  ;;  %v516_v33 = vadd.f32 %v587_v16, %v515_v29 }
 0x2d1   :  { %v682_v34 = vpop.f32.mrf.mxu0 }
 0x2d2   :  { %v547_v35 = vadd.f32 %v516_v33, %v384_v32 }
 0x2d3   :  { %v518_v36 = vpop.f32.mrf.mxu0 }
 0x2d4   :  { %557 = vst.msk [vmem:[%s1008_s9 + $0x10] sm:$0xff] %vm554_vm4, %v547_v35  ;;  %v519_v38 = vadd.f32 %v587_v16, %v518_v36 }
 0x2d5   :  { %v683_v39 = vpop.f32.mrf.mxu0 }
 0x2d6   :  { %v548_v42 = vadd.f32 %v519_v38, %v387_v37 }
 0x2d7   :  { %v523_v43 = vpop.f32.mrf.mxu0 }
 0x2d8   :  { %558 = vst.msk [vmem:[%s1008_s9 + $0x18] sm:$0xff] %vm554_vm4, %v548_v42  ;;  %v524_v45 = vadd.f32 %v587_v16, %v523_v43 }
 0x2d9   :  { %v686_v22 = vpop.f32.mrf.mxu0 }
 0x2da   :  { %v549_v46 = vadd.f32 %v524_v45, %v392_v44 }
 0x2db   :  { %v526_v47 = vpop.f32.mrf.mxu0 }
 0x2dc   :  { %559 = vst.msk [vmem:[%s1008_s9 + $0x20] sm:$0xff] %vm554_vm4, %v549_v46  ;;  %v527_v49 = vadd.f32 %v587_v16, %v526_v47 }
 0x2dd   :  { %v687_v30 = vpop.f32.mrf.mxu0 }
 0x2de   :  { %v550_v52 = vadd.f32 %v527_v49, %v395_v48 }
 0x2df   :  { %v531_v53 = vpop.f32.mrf.mxu0 }
 0x2e0   :  { %560 = vst.msk [vmem:[%s1008_s9 + $0x28] sm:$0xff] %vm554_vm4, %v550_v52  ;;  %v532_v55 = vadd.f32 %v587_v16, %v531_v53 }
 0x2e1   :  { %v690_v56 = vpop.f32.mrf.mxu0 }
 0x2e2   :  { %v551_v57 = vadd.f32 %v532_v55, %v400_v54 }
 0x2e3   :  { %v534_v23 = vpop.f32.mrf.mxu0 }
 0x2e4   :  { %561 = vst.msk [vmem:[%s1008_s9 + $0x30] sm:$0xff] %vm554_vm4, %v551_v57  ;;  %v535_v40 = vadd.f32 %v587_v16, %v534_v23 }
 0x2e5   :  { %v691_v59 = vpop.f32.mrf.mxu0 }
 0x2e6   :  { %v552_v60 = vadd.f32 %v535_v40, %v403_v31 }
 0x2e7   :  { %v539_v61 = vpop.f32.mrf.mxu0 }
 0x2e8   :  { %562 = vst.msk [vmem:[%s1008_s9 + $0x38] sm:$0xff] %vm554_vm4, %v552_v60  ;;  %v540_v0 = vadd.f32 %v587_v16, %v539_v61 }
 0x2e9   :  { %v694_v41 = vpop.f32.mrf.mxu0 }
 0x2ea   :  { %v553_v1 = vadd.f32 %v540_v0, %v408_v62 }
 0x2eb   :  { %v542_v2 = vpop.f32.mrf.mxu0 }
 0x2ec   :  { %564 = vst.msk [vmem:[%s1008_s9 + $0x40] sm:$0x3] %vm563_vm5, %v553_v1 }
 0x2ed   :  { %v695_v3 = vpop.f32.mrf.mxu0 }

// kernel: vit3d_forward.16
= control target key start
LH: loop header
LB: loop body
LE: loop exit
PB: predicated region body
PF: predicated region fallthrough
CT: control target
= control target key end

     0   :  { %s870_s6 = smov 0   ;;  %s1020_s0 = inlined_call_operand.vmem [shape: f32[2,33,96], index: 0, kind: input, shape index: {}]   ;;  %s1021_s1 = inlined_call_operand.vmem [shape: f32[2,33,32], index: 1, kind: output, shape index: {}]  }
   0x1 LB: > { %s668_s7 = sadd.s32 4294967295, %s849_s6   ;;  %p672_p0 = scmp.ge.s32.totalorder %s849_s6, 1  ;;  %s849_s6 = sphi %s870_s6, %s11_s6  }
   0x2   : > { %p87_p1 = scmp.lt.s32.totalorder %s849_s6, 3 }
   0x4   : > { %p88_p2 = pnand %p672_p0, %p87_p1 }
   0x5   : > { %p107_p3 = scmp.lt.s32.totalorder (!%p88_p2), %s668_s7, 1  ;;  %s852_s12 = smov (!%p88_p2), 96  }
   0x6   : > { %91 = sbr.rel (%p88_p2) target bundleno = 1533 (0x5fd), region = 24  ;;  %s854_s13 = smov (!%p88_p2), 64  }
   0x7   : > { %s856_s14 = smov (!%p88_p2), 80   ;;  %s857_s15 = smov (!%p88_p2), 112  }
   0x8   : > { %s858_s19 = smov (!%p88_p2), 48   ;;  %s859_s20 = smov (!%p88_p2), 16  }
   0xb   : > { %v851_v0 = vmov 0.0   ;;  %s1023_s7 = smov (!%p107_p3, %s668_s7), 1  ;;  %vm853_vm0 = vmmov 0   ;;  %vm135_vm1 = vcmask 130048   ;;  %vm210_vm2 = vcmask 269312  }
   0xc   : > { %713 = vmatprep.subr.bf16.mxu0 %v851_v0  ;;  %731 = vmatprep.subr.bf16.mxu1 %v851_v0  ;;  %s785_s8 = smul.u32 40, %s1023_s7  ;;  %vm223_vm3 = vcmask 262144   ;;  %vm287_vm4 = vcmask 1040384   ;;  %v855_v47 = vmov 0   ;;  %vm353_vm5 = vcmask 122880  }
   0xd   : > { %719 = vmatprep.mubr.msk.bf16.mxu0 %vm853_vm0, %v851_v0  ;;  %737 = vmatprep.mubr.msk.bf16.mxu1 %vm853_vm0, %v851_v0  ;;  %v929_v48 = vsel %vm287_vm4, 65535, %v855_v47  ;;  %vm606_vm6 = vcmask 261248   ;;  %vm611_vm7 = vcmask 254080  }
   0xe   : > { %s888_s11 = scalar_lea.vmem %s1020_s0, %s785_s8  ;;  %s975_s18 = scalar_lea.vmem %s1021_s1, %s785_s8 }
   0xf   : > { %v122_v1 = vld [vmem:[%s888_s11 + $0x20] sm:$0x1]  ;;  %v120_v2 = vld [vmem:[%s888_s11 + $0x10] sm:$0xff]  ;;  %v121_v3 = vld [vmem:[%s888_s11 + $0x18] sm:$0xff] }
  0x10   : > { %v125_v4 = vpack.c.bf16 %v122_v1, %v122_v1  ;;  %v118_v5 = vld [vmem:[%s888_s11] sm:$0xff]  ;;  %v119_v6 = vld [vmem:[%s888_s11 + $0x8] sm:$0xff]  ;;  %v897_v8 = vpack.c.bf16 %v121_v3, %v120_v2 }
  0x11   : > { %v895_v7 = vpack.c.bf16 %v119_v6, %v118_v5  ;;  %v359_v63 = vld [vmem:[%s888_s11 + $0x20] sm:$0x1] }
  0x12   : > { %133 = vrot.lane.b32.xlu0 %v125_v4, %s852_s12  ;;  %v941_v1 = vpack.c.bf16 %v359_v63, %v359_v63 }
  0x13   : > { %129 = vrot.lane.b32.xlu1 %v895_v7, %s852_s12 }
  0x16   : > { %131 = vrot.lane.b32.xlu0 %v897_v8, %s852_s12 }
  0x84   : > { %v134_v9 = vpop.permute.xlu0 %133 }
  0x85   : > { %v152_v10 = vsel %vm135_vm1, %v134_v9, 0  ;;  %v130_v13 = vpop.permute.xlu1 %129 }
  0x86   : > { %714 = vmatpush3.bf16.xpose.msra.mxu0 %v152_v10  ;;  %v146_v14 = vsel %vm135_vm1, %v130_v13, 0 }
  0x87   : > { %715 = vmatprep.subr.bf16.mxu0 %v851_v0 }
  0x88   : > { %v132_v11 = vpop.permute.xlu0 %131 }
  0x89   : > { %v149_v12 = vsel %vm135_vm1, %v132_v11, 0 }
  0x8e   : > { %716 = vmatpush3.bf16.xpose.msra.mxu0 %v149_v12 }
  0x8f   : > { %717 = vmatprep.subr.bf16.mxu0 %v851_v0 }
  0x96   : > { %718 = vmatpush3.bf16.xpose.msra.mxu0 %v146_v14 }
  0x97   : > { %767 = vmatprep.subr.bf16.mxu0 %v851_v0 }
  0x9d   : > { %720 = vmatmul.mubr.msk.bf16.vlgmr.msra.gmra.mxu0 %vm135_vm1, %v895_v7 }
  0x9e   : > { %723 = vmatprep.mubr.msk.bf16.mxu0 %vm853_vm0, %v851_v0 }
  0xa5   : > { %724 = vmatmul.mubr.msk.bf16.gmra.mxu0 %vm135_vm1, %v897_v8 }
  0xa6   : > { %727 = vmatprep.mubr.msk.bf16.mxu0 %vm853_vm0, %v851_v0 }
  0xad   : > { %728 = vmatmul.mubr.msk.bf16.gmra.mxu0 %vm135_vm1, %v125_v4 }
  0xae   : > { %773 = vmatprep.mubr.msk.bf16.mxu0 %vm853_vm0, %v851_v0 }
 0x15d   : > { %v188_v15 = vpop.f32.mrf.mxu0 }
 0x15e   : > { %v211_v16 = vsel %vm210_vm2, %v188_v15, -inf }
 0x15f   : > { %212 = vmax.xlane.f32.xlu1 %v211_v16  ;;  %v721_v17 = vpop.f32.mrf.mxu0 }
 0x161   : > { %v191_v18 = vpop.f32.mrf.mxu0 }
 0x162   : > { %v214_v19 = vsel %vm210_vm2, %v191_v18, -inf }
 0x163   : > { %215 = vmax.xlane.f32.xlu0 %v214_v19  ;;  %v722_v20 = vpop.f32.mrf.mxu0 }
 0x165   : > { %v196_v21 = vpop.f32.mrf.mxu0 }
 0x166   : > { %v217_v22 = vsel %vm210_vm2, %v196_v21, -inf }
 0x167   : > { %218 = vmax.xlane.f32.xlu0 %v217_v22  ;;  %v725_v23 = vpop.f32.mrf.mxu0 }
 0x169   : > { %v199_v24 = vpop.f32.mrf.mxu0 }
 0x16a   : > { %v220_v25 = vsel %vm210_vm2, %v199_v24, -inf }
 0x16b   : > { %221 = vmax.xlane.f32.xlu1 %v220_v25  ;;  %v726_v26 = vpop.f32.mrf.mxu0 }
 0x16d   : > { %v204_v27 = vpop.f32.mrf.mxu0 }
 0x16e   : > { %v224_v28 = vsel %vm223_vm3, %v204_v27, -inf }
 0x16f   : > { %225 = vmax.xlane.f32.xlu0 %v224_v28  ;;  %v729_v29 = vpop.f32.mrf.mxu0 }
 0x171   : > { %v207_v30 = vpop.f32.mrf.mxu0 }
 0x173   : > { %v730_v31 = vpop.f32.mrf.mxu0 }
 0x17c   : > { %272 = vrot.lane.b32.xlu1 %v897_v8, %s854_s13 }
 0x180   : > { %270 = vrot.lane.b32.xlu1 %v895_v7, %s854_s13 }
 0x185   : > { %274 = vrot.lane.b32.xlu0 %v125_v4, %s854_s13 }
 0x1e8   : > { %v213_v32 = vpop.xlane.xlu1 %212 }
 0x1e9   : > { %v227_v33 = vsub.f32 %v188_v15, %v213_v32 }
 0x1eb   : > { %v232_v34 = vmul.f32 1.442695, %v227_v33 }
 0x1ec   : > { %v216_v35 = vpop.xlane.xlu0 %215 }
 0x1ed   : > { %803 = vpow2.f32 %v232_v34  ;;  %v228_v36 = vsub.f32 %v191_v18, %v216_v35 }
 0x1ef   : > { %v234_v37 = vmul.f32 1.442695, %v228_v36 }
 0x1f0   : > { %v219_v38 = vpop.xlane.xlu0 %218 }
 0x1f1   : > { %805 = vpow2.f32 %v234_v37  ;;  %v229_v39 = vsub.f32 %v196_v21, %v219_v38 }
 0x1f3   : > { %v236_v40 = vmul.f32 1.442695, %v229_v39 }
 0x1f4   : > { %v222_v41 = vpop.xlane.xlu1 %221 }
 0x1f5   : > { %807 = vpow2.f32 %v236_v40  ;;  %v230_v42 = vsub.f32 %v199_v24, %v222_v41 }
 0x1f7   : > { %v238_v43 = vmul.f32 1.442695, %v230_v42 }
 0x1f8   : > { %v226_v44 = vpop.xlane.xlu0 %225  ;;  %v273_v54 = vpop.permute.xlu1 %272 }
 0x1f9   : > { %809 = vpow2.f32 %v238_v43  ;;  %v231_v45 = vsub.f32 %v204_v27, %v226_v44 }
 0x1fa   : > { %v804_v46 = vpop.eup %803 }
 0x1fb   : > { %v240_v49 = vmul.f32 1.442695, %v231_v45  ;;  %v242_v50 = vsel %vm210_vm2, %v804_v46, 0.0 }
 0x1fc   : > { %243 = vadd.xlane.f32.xlu1 %v242_v50  ;;  %v275_v51 = vpop.permute.xlu0 %274  ;;  %v271_v58 = vpop.permute.xlu1 %270 }
 0x1fd   : > { %811 = vpow2.f32 %v240_v49  ;;  %v291_v52 = vand.u32 %v929_v48, %v275_v51 }
 0x1fe   : > { %v806_v53 = vpop.eup %805 }
 0x1ff   : > { %v245_v55 = vsel %vm210_vm2, %v806_v53, 0.0  ;;  %732 = vmatpush3.bf16.msra.mxu1 %v291_v52 }
 0x200   : > { %246 = vadd.xlane.f32.xlu0 %v245_v55  ;;  %733 = vmatprep.subr.bf16.mxu1 %v851_v0 }
 0x202   : > { %v808_v56 = vpop.eup %807 }
 0x203   : > { %v248_v57 = vsel %vm210_vm2, %v808_v56, 0.0  ;;  %734 = vmatpush3.bf16.msra.mxu1 %v273_v54 }
 0x204   : > { %249 = vadd.xlane.f32.xlu1 %v248_v57  ;;  %735 = vmatprep.subr.bf16.mxu1 %v851_v0 }
 0x206   : > { %v810_v59 = vpop.eup %809 }
 0x207   : > { %v251_v60 = vsel %vm210_vm2, %v810_v59, 0.0  ;;  %736 = vmatpush3.bf16.msra.mxu1 %v271_v58 }
 0x208   : > { %252 = vadd.xlane.f32.xlu0 %v251_v60  ;;  %749 = vmatprep.subr.bf16.mxu1 %v851_v0 }
 0x20a   : > { %v812_v61 = vpop.eup %811 }
 0x20b   : > { %v254_v62 = vsel %vm223_vm3, %v812_v61, 0.0 }
 0x20c   : > { %255 = vadd.xlane.f32.xlu1 %v254_v62 }
 0x21d   : > { %374 = vrot.lane.b32.xlu1 %v897_v8, %s856_s14 }
 0x21e   : > { %376 = vrot.lane.b32.xlu0 %v941_v1, %s856_s14 }
 0x221   : > { %366 = vrot.lane.b32.xlu1 %v895_v7, %s857_s15 }
 0x222   : > { %372 = vrot.lane.b32.xlu0 %v895_v7, %s856_s14 }
 0x225   : > { %370 = vrot.lane.b32.xlu1 %v941_v1, %s857_s15 }
 0x226   : > { %368 = vrot.lane.b32.xlu0 %v897_v8, %s857_s15 }
 0x285   : > { %v244_v2 = vpop.xlane.xlu1 %243 }
 0x286   : > { %813 = vrcp.f32 %v244_v2 }
 0x289   : > { %v247_v3 = vpop.xlane.xlu0 %246 }
 0x28a   : > { %815 = vrcp.f32 %v247_v3 }
 0x28d   : > { %v250_v4 = vpop.xlane.xlu1 %249 }
 0x28e   : > { %817 = vrcp.f32 %v250_v4 }
 0x291   : > { %v253_v5 = vpop.xlane.xlu0 %252 }
 0x292   : > { %819 = vrcp.f32 %v253_v5 }
 0x293   : > { %v814_v6 = vpop.eup %813 }
 0x294   : > { %v262_v12 = vmul.f32 %v814_v6, %v804_v46 }
 0x295   : > { %v256_v9 = vpop.xlane.xlu1 %255  ;;  %v377_v11 = vpop.permute.xlu0 %376 }
 0x296   : > { %821 = vrcp.f32 %v256_v9  ;;  %v394_v14 = vsel %vm135_vm1, %v377_v11, 0 }
 0x297   : > { %v816_v10 = vpop.eup %815 }
 0x298   : > { %v263_v13 = vmul.f32 %v816_v10, %v806_v53 }
 0x299   : > { %v375_v18 = vpop.permute.xlu1 %374  ;;  %v373_v25 = vpop.permute.xlu0 %372 }
 0x29a   : > { %v267_v15 = vpack.c.bf16 %v263_v13, %v262_v12  ;;  %v391_v21 = vsel %vm135_vm1, %v375_v18, 0  ;;  %v388_v26 = vsel %vm135_vm1, %v373_v25, 0 }
 0x29b   : > { %v818_v16 = vpop.eup %817 }
 0x29c   : > { %738 = vmatmul.mubr.msk.bf16.vlgmr.msra.gmra.mxu1 %vm210_vm2, %v267_v15  ;;  %v264_v19 = vmul.f32 %v818_v16, %v808_v56 }
 0x29d   : > { %750 = vmatpush3.bf16.xpose.msra.mxu1 %v394_v14  ;;  %741 = vmatprep.mubr.msk.bf16.mxu1 %vm853_vm0, %v851_v0  ;;  %v367_v28 = vpop.permute.xlu1 %366  ;;  %v369_v29 = vpop.permute.xlu0 %368 }
 0x29e   : > { %751 = vmatprep.subr.bf16.mxu1 %v851_v0 }
 0x29f   : > { %v820_v17 = vpop.eup %819 }
 0x2a0   : > { %v265_v20 = vmul.f32 %v820_v17, %v810_v59 }
 0x2a1   : > { %v371_v30 = vpop.permute.xlu1 %370 }
 0x2a2   : > { %v268_v22 = vpack.c.bf16 %v265_v20, %v264_v19 }
 0x2a3   : > { %v822_v23 = vpop.eup %821 }
 0x2a4   : > { %742 = vmatmul.mubr.msk.bf16.gmra.mxu1 %vm210_vm2, %v268_v22  ;;  %v266_v24 = vmul.f32 %v822_v23, %v812_v61 }
 0x2a5   : > { %752 = vmatpush3.bf16.xpose.msra.mxu1 %v391_v21  ;;  %745 = vmatprep.mubr.msk.bf16.mxu1 %vm853_vm0, %v851_v0 }
 0x2a6   : > { %753 = vmatprep.subr.bf16.mxu1 %v851_v0  ;;  %v269_v27 = vpack.c.bf16 %v266_v24, %v266_v24 }
 0x2ac   : > { %746 = vmatmul.mubr.msk.bf16.gmra.mxu1 %vm210_vm2, %v269_v27 }
 0x2ad   : > { %754 = vmatpush3.bf16.xpose.msra.mxu1 %v388_v26  ;;  %755 = vmatprep.mubr.msk.bf16.mxu1 %vm853_vm0, %v851_v0 }
 0x2b4   : > { %756 = vmatmul.mubr.msk.bf16.vlgmr.msra.gmra.mxu1 %vm135_vm1, %v367_v28 }
 0x2b5   : > { %759 = vmatprep.mubr.msk.bf16.mxu1 %vm853_vm0, %v851_v0 }
 0x2bc   : > { %760 = vmatmul.mubr.msk.bf16.gmra.mxu1 %vm135_vm1, %v369_v29 }
 0x2bd   : > { %763 = vmatprep.mubr.msk.bf16.mxu1 %vm853_vm0, %v851_v0 }
 0x2c4   : > { %764 = vmatmul.mubr.msk.bf16.gmra.mxu1 %vm135_vm1, %v371_v30 }
 0x35c   : > { %v327_v31 = vpop.f32.mrf.mxu1 }
 0x35d   : > { %349 = vst.msk [vmem:[%s975_s18] sm:$0xff] %vm135_vm1, %v327_v31 }
 0x35e   : > { %v739_v32 = vpop.f32.mrf.mxu1 }
 0x360   : > { %v330_v33 = vpop.f32.mrf.mxu1 }
 0x361   : > { %350 = vst.msk [vmem:[%s975_s18 + $0x8] sm:$0xff] %vm135_vm1, %v330_v33 }
 0x362   : > { %v740_v34 = vpop.f32.mrf.mxu1 }
 0x364   : > { %v335_v35 = vpop.f32.mrf.mxu1 }
 0x365   : > { %351 = vst.msk [vmem:[%s975_s18 + $0x10] sm:$0xff] %vm135_vm1, %v335_v35 }
 0x366   : > { %v743_v36 = vpop.f32.mrf.mxu1 }
 0x368   : > { %v338_v37 = vpop.f32.mrf.mxu1 }
 0x369   : > { %352 = vst.msk [vmem:[%s975_s18 + $0x18] sm:$0xff] %vm135_vm1, %v338_v37 }
 0x36a   : > { %v744_v38 = vpop.f32.mrf.mxu1 }
 0x36c   : > { %v343_v39 = vpop.f32.mrf.mxu1 }
 0x36d   : > { %354 = vst.msk [vmem:[%s975_s18 + $0x20] sm:$0x1] %vm353_vm5, %v343_v39 }
 0x36e   : > { %v747_v40 = vpop.f32.mrf.mxu1 }
 0x370   : > { %v346_v41 = vpop.f32.mrf.mxu1 }
 0x372   : > { %v748_v42 = vpop.f32.mrf.mxu1 }
 0x374   : > { %v430_v43 = vpop.f32.mrf.mxu1 }
 0x375   : > { %v452_v44 = vsel %vm210_vm2, %v430_v43, -inf }
 0x376   : > { %453 = vmax.xlane.f32.xlu0 %v452_v44  ;;  %v757_v45 = vpop.f32.mrf.mxu1 }
 0x378   : > { %v433_v46 = vpop.f32.mrf.mxu1 }
 0x379   : > { %v455_v47 = vsel %vm210_vm2, %v433_v46, -inf }
 0x37a   : > { %456 = vmax.xlane.f32.xlu1 %v455_v47  ;;  %v758_v49 = vpop.f32.mrf.mxu1 }
 0x37c   : > { %v438_v50 = vpop.f32.mrf.mxu1 }
 0x37d   : > { %v458_v51 = vsel %vm210_vm2, %v438_v50, -inf }
 0x37e   : > { %459 = vmax.xlane.f32.xlu0 %v458_v51  ;;  %v761_v52 = vpop.f32.mrf.mxu1 }
 0x380   : > { %v441_v53 = vpop.f32.mrf.mxu1 }
 0x381   : > { %v461_v54 = vsel %vm210_vm2, %v441_v53, -inf }
 0x382   : > { %462 = vmax.xlane.f32.xlu0 %v461_v54  ;;  %v762_v55 = vpop.f32.mrf.mxu1 }
 0x384   : > { %v446_v56 = vpop.f32.mrf.mxu1 }
 0x385   : > { %v464_v57 = vsel %vm223_vm3, %v446_v56, -inf }
 0x386   : > { %465 = vmax.xlane.f32.xlu1 %v464_v57  ;;  %v765_v58 = vpop.f32.mrf.mxu1 }
 0x388   : > { %v449_v59 = vpop.f32.mrf.mxu1 }
 0x38a   : > { %v766_v60 = vpop.f32.mrf.mxu1 }
 0x397   : > { %514 = vrot.lane.b32.xlu1 %v941_v1, %s858_s19 }
 0x3ff   : > { %v454_v61 = vpop.xlane.xlu0 %453 }
 0x400   : > { %v467_v62 = vsub.f32 %v430_v43, %v454_v61 }
 0x402   : > { %v472_v63 = vmul.f32 1.442695, %v467_v62 }
 0x403   : > { %v457_v2 = vpop.xlane.xlu1 %456 }
 0x404   : > { %823 = vpow2.f32 %v472_v63  ;;  %v468_v3 = vsub.f32 %v433_v46, %v457_v2 }
 0x406   : > { %v474_v4 = vmul.f32 1.442695, %v468_v3 }
 0x407   : > { %v460_v5 = vpop.xlane.xlu0 %459 }
 0x408   : > { %825 = vpow2.f32 %v474_v4  ;;  %v469_v6 = vsub.f32 %v438_v50, %v460_v5 }
 0x40a   : > { %v476_v9 = vmul.f32 1.442695, %v469_v6 }
 0x40b   : > { %v463_v10 = vpop.xlane.xlu0 %462 }
 0x40c   : > { %827 = vpow2.f32 %v476_v9  ;;  %v470_v11 = vsub.f32 %v441_v53, %v463_v10 }
 0x40e   : > { %v478_v12 = vmul.f32 1.442695, %v470_v11 }
 0x40f   : > { %v466_v13 = vpop.xlane.xlu1 %465 }
 0x410   : > { %829 = vpow2.f32 %v478_v12  ;;  %v471_v14 = vsub.f32 %v446_v56, %v466_v13 }
 0x411   : > { %v824_v15 = vpop.eup %823 }
 0x412   : > { %v480_v1 = vmul.f32 1.442695, %v471_v14  ;;  %v482_v16 = vsel %vm210_vm2, %v824_v15, 0.0 }
 0x413   : > { %483 = vadd.xlane.f32.xlu0 %v482_v16  ;;  %v515_v17 = vpop.permute.xlu1 %514 }
 0x414   : > { %831 = vpow2.f32 %v480_v1  ;;  %v528_v18 = vand.u32 %v515_v17, %v929_v48 }
 0x415   : > { %v826_v19 = vpop.eup %825 }
 0x416   : > { %v485_v20 = vsel %vm210_vm2, %v826_v19, 0.0  ;;  %768 = vmatpush3.bf16.msra.mxu0 %v528_v18 }
 0x417   : > { %486 = vadd.xlane.f32.xlu1 %v485_v20  ;;  %769 = vmatprep.subr.bf16.mxu0 %v851_v0 }
 0x419   : > { %v828_v21 = vpop.eup %827 }
 0x41a   : > { %v488_v22 = vsel %vm210_vm2, %v828_v21, 0.0 }
 0x41b   : > { %489 = vadd.xlane.f32.xlu0 %v488_v22 }
 0x41d   : > { %v830_v23 = vpop.eup %829 }
 0x41e   : > { %v491_v24 = vsel %vm210_vm2, %v830_v23, 0.0 }
 0x41f   : > { %492 = vadd.xlane.f32.xlu1 %v491_v24 }
 0x421   : > { %v832_v25 = vpop.eup %831 }
 0x422   : > { %v494_v26 = vsel %vm223_vm3, %v832_v25, 0.0 }
 0x423   : > { %495 = vadd.xlane.f32.xlu0 %v494_v26 }
 0x430   : > { %510 = vrot.lane.b32.xlu1 %v895_v7, %s858_s19 }
 0x439   : > { %512 = vrot.lane.b32.xlu0 %v897_v8, %s858_s19 }
 0x49c   : > { %v484_v27 = vpop.xlane.xlu0 %483 }
 0x4a0   : > { %v487_v48 = vpop.xlane.xlu1 %486 }
 0x4a1   : > { %833 = vrcp.f32 %v487_v48 }
 0x4a2   : > { %835 = vrcp.f32 %v484_v27 }
 0x4a4   : > { %v490_v28 = vpop.xlane.xlu0 %489 }
 0x4a8   : > { %v493_v29 = vpop.xlane.xlu1 %492 }
 0x4a9   : > { %837 = vrcp.f32 %v493_v29 }
 0x4aa   : > { %839 = vrcp.f32 %v490_v28 }
 0x4ac   : > { %v496_v30 = vpop.xlane.xlu0 %495  ;;  %v511_v35 = vpop.permute.xlu1 %510 }
 0x4ad   : > { %841 = vrcp.f32 %v496_v30 }
 0x4ae   : > { %v834_v31 = vpop.eup %833 }
 0x4af   : > { %v836_v33 = vpop.eup %835  ;;  %v503_v34 = vmul.f32 %v834_v31, %v826_v19 }
 0x4b0   : > { %v513_v32 = vpop.permute.xlu0 %512  ;;  %v502_v7 = vmul.f32 %v836_v33, %v824_v15 }
 0x4b1   : > { %770 = vmatpush3.bf16.msra.mxu0 %v513_v32 }
 0x4b2   : > { %771 = vmatprep.subr.bf16.mxu0 %v851_v0  ;;  %v507_v8 = vpack.c.bf16 %v503_v34, %v502_v7 }
 0x4b5   : > { %772 = vmatpush3.bf16.msra.mxu0 %v511_v35 }
 0x4b6   : > { %v838_v36 = vpop.eup %837 }
 0x4b7   : > { %v840_v37 = vpop.eup %839  ;;  %v505_v38 = vmul.f32 %v838_v36, %v830_v23 }
 0x4b8   : > { %774 = vmatmul.mubr.msk.bf16.vlgmr.msra.gmra.mxu0 %vm210_vm2, %v507_v8  ;;  %v504_v39 = vmul.f32 %v840_v37, %v828_v21 }
 0x4b9   : > { %777 = vmatprep.mubr.msk.bf16.mxu0 %vm853_vm0, %v851_v0 }
 0x4ba   : > { %v508_v40 = vpack.c.bf16 %v505_v38, %v504_v39  ;;  %v842_v41 = vpop.eup %841 }
 0x4bb   : > { %v506_v42 = vmul.f32 %v842_v41, %v832_v25 }
 0x4bd   : > { %v509_v43 = vpack.c.bf16 %v506_v42, %v506_v42 }
 0x4c0   : > { %778 = vmatmul.mubr.msk.bf16.gmra.mxu0 %vm210_vm2, %v508_v40 }
 0x4c1   : > { %781 = vmatprep.mubr.msk.bf16.mxu0 %vm853_vm0, %v851_v0 }
 0x4c8   : > { %782 = vmatmul.mubr.msk.bf16.gmra.mxu0 %vm210_vm2, %v509_v43 }
 0x578   : > { %v564_v44 = vpop.f32.mrf.mxu0 }
 0x579   : > { %591 = vrot.lane.b32.xlu1 %v564_v44, %s859_s20 }
 0x57a   : > { %v775_v45 = vpop.f32.mrf.mxu0 }
 0x57c   : > { %v567_v46 = vpop.f32.mrf.mxu0 }
 0x57d   : > { %593 = vrot.lane.b32.xlu0 %v567_v46, %s859_s20 }
 0x57e   : > { %v776_v47 = vpop.f32.mrf.mxu0 }
 0x580   : > { %v572_v49 = vpop.f32.mrf.mxu0 }
 0x581   : > { %595 = vrot.lane.b32.xlu1 %v572_v49, %s859_s20 }
 0x582   : > { %v779_v50 = vpop.f32.mrf.mxu0 }
 0x584   : > { %v575_v51 = vpop.f32.mrf.mxu0 }
 0x585   : > { %597 = vrot.lane.b32.xlu0 %v575_v51, %s859_s20 }
 0x586   : > { %v780_v0 = vpop.f32.mrf.mxu0 }
 0x588   : > { %v580_v52 = vpop.f32.mrf.mxu0 }
 0x589   : > { %599 = vrot.lane.b32.xlu1 %v580_v52, %s859_s20 }
 0x58a   : > { %v783_v53 = vpop.f32.mrf.mxu0 }
 0x58c   : > { %v583_v54 = vpop.f32.mrf.mxu0 }
 0x58e   : > { %v784_v55 = vpop.f32.mrf.mxu0 }
 0x5eb   : > { %v592_v56 = vpop.permute.xlu1 %591 }
 0x5ec   : > { %607 = vst.msk [vmem:[%s975_s18] sm:$0xff] %vm606_vm6, %v592_v56 }
 0x5ef   : > { %v594_v57 = vpop.permute.xlu0 %593 }
 0x5f0   : > { %608 = vst.msk [vmem:[%s975_s18 + $0x8] sm:$0xff] %vm606_vm6, %v594_v57 }
 0x5f3   : > { %v596_v58 = vpop.permute.xlu1 %595 }
 0x5f4   : > { %609 = vst.msk [vmem:[%s975_s18 + $0x10] sm:$0xff] %vm606_vm6, %v596_v58 }
 0x5f7   : > { %v598_v59 = vpop.permute.xlu0 %597 }
 0x5f8   : > { %610 = vst.msk [vmem:[%s975_s18 + $0x18] sm:$0xff] %vm606_vm6, %v598_v59 }
 0x5fb   : > { %v600_v60 = vpop.permute.xlu1 %599 }
 0x5fc   : > { %612 = vst.msk [vmem:[%s975_s18 + $0x20] sm:$0x1] %vm611_vm7, %v600_v60 }
 0x5fd PF: > { %s11_s6 = sadd.s32 1, %s849_s6  }
 0x5fe   : > { %p8_p4 = scmp.ge.s32.totalorder %s11_s6, 4  }
 0x600   :  { %10 = sbr.rel (!%p8_p4) target bundleno = 1 (0x1), region = 54 }

// kernel: vit3d_forward.17
= control target key start
LH: loop header
LB: loop body
LE: loop exit
PB: predicated region body
PF: predicated region fallthrough
CT: control target
= control target key end

     0   :  { %14 = vsyncpa [#allocation3], 0  ;;  %s994_s0 = inlined_call_operand.vmem [shape: f32[66,32], index: 0, kind: input, shape index: {}, may-alias: {0,1}]   ;;  %s995_s1 = inlined_call_operand.vmem [shape: f32[66,32], index: 1, kind: input, shape index: {}, may-alias: {0,1}]   ;;  %s996_s2 = inlined_call_operand.vmem [shape: f32[66,32], index: 2, kind: input, shape index: {}]   ;;  %s997_s3 = inlined_call_operand.vmem [shape: bf16[32,32], index: 3, kind: input, shape index: {}]   ;;  %s998_s4 = inlined_call_operand.hbm [shape: f32[1,32], index: 4, kind: input, shape index: {}]   ;;  %s999_s5 = inlined_call_operand.vmem [shape: bf16[32,64], index: 5, kind: input, shape index: {}]   ;;  %s1000_s6 = inlined_call_operand.hbm [shape: f32[1,64], index: 6, kind: input, shape index: {}]   ;;  %s1001_s7 = inlined_call_operand.vmem [shape: bf16[64,32], index: 7, kind: input, shape index: {}]   ;;  %s1002_s8 = inlined_call_operand.hbm [shape: f32[1,32], index: 8, kind: input, shape index: {}]   ;;  %s1003_s9 = inlined_call_operand.vmem [shape: f32[66,32], index: 9, kind: output, shape index: {}]  }
   0x1   :  { %15 = vsyncpa [#allocation5], 0  ;;  %s707_s30 = smov [#allocation4]   ;;  %s708_s11 = smov [#allocation2]  }
   0x2   :  { %s42_s10 = sshll.u32 %s707_s30, 4  ;;  %s30_s12 = sshll.u32 %s708_s11, 4  ;;  %s43_s10 = int_to_ptr.vmem [resolvable:$true] %s42_s10  ;;  %s31_s12 = int_to_ptr.vmem [resolvable:$true] %s30_s12 }
   0x3   :  { %s651_s13 = scalar_lea.vmem %s43_s10, 16  ;;  %s655_s14 = scalar_lea.vmem %s43_s10, 32 }
   0x4   :  { %p652_p0 = scmp.ne.s32.totalorder %s43_s10, %s651_s13  ;;  %p656_p1 = scmp.lt.s32.totalorder %s43_s10, %s43_s10 }
   0x5   :  { %p657_p2 = scmp.lt.s32.totalorder %s655_s14, %s651_s13 }
   0x7   :  { %p658_p3 = por %p657_p2, %p656_p1 }
   0x9   :  { %p659_p4 = pnand %p658_p3, %p652_p0 }
   0xb   :  { %662 = shalt.err (!%p659_p4)
}
   0xc   :  { %45 = dma.hbm_to_vmem [thread:$0]  %s1000_s6, 16, %s43_s10, [#allocation5]  }
   0xd   :  { %s671_s17 = scalar_lea.vmem %s31_s12, 16  ;;  %s675_s18 = scalar_lea.vmem %s31_s12, 32 }
   0xe   :  { %p672_p5 = scmp.ne.s32.totalorder %s31_s12, %s671_s17  ;;  %p676_p6 = scmp.lt.s32.totalorder %s31_s12, %s31_s12 }
   0xf   :  { %p677_p7 = scmp.lt.s32.totalorder %s675_s18, %s671_s17 }
  0x11   :  { %p678_p8 = por %p677_p7, %p676_p6 }
  0x13   :  { %p679_p9 = pnand %p678_p8, %p672_p5 }
  0x15   :  { %682 = shalt.err (!%p679_p9)
}
  0x16   :  { %33 = dma.hbm_to_vmem [thread:$0]  %s998_s4, 16, %s31_s12, [#allocation3]  }
  0x17   :  { %s709_s21 = smov [#allocation6]  }
  0x18   :  { %s54_s22 = sshll.u32 %s709_s21, 4  ;;  %s55_s22 = int_to_ptr.vmem [resolvable:$true] %s54_s22 }
  0x19   :  { %s691_s23 = scalar_lea.vmem %s55_s22, 16  ;;  %s695_s24 = scalar_lea.vmem %s55_s22, 32 }
  0x1a   :  { %p692_p10 = scmp.ne.s32.totalorder %s55_s22, %s691_s23  ;;  %p696_p11 = scmp.lt.s32.totalorder %s55_s22, %s55_s22 }
  0x1b   :  { %p697_p12 = scmp.lt.s32.totalorder %s695_s24, %s691_s23 }
  0x1d   :  { %p698_p13 = por %p697_p12, %p696_p11 }
  0x1f   :  { %p699_p0 = pnand %p698_p13, %p692_p10 }
  0x21   :  { %702 = shalt.err (!%p699_p0)
}
  0x22   :  { %57 = dma.hbm_to_vmem [thread:$0]  %s1002_s8, 16, %s55_s22, [#allocation5]  }
  0x23   :  { %703 = dma.done.wait [#allocation3], 16  }
  0x24   :  { %704 = vsyncadd [#allocation3], 4294967280 }
  0x25   :  { %705 = dma.done.wait [#allocation5], 32  }
  0x26   :  { %706 = vsyncadd [#allocation5], 4294967264  ;;  %v710_v0 = vmov 0.0   ;;  %vm711_vm0 = vmmov 0   ;;  %v635_v1 = vld [vmem:[%s999_s5 + $0x8] sm:$0xff]   ;;  %v636_v2 = vld [vmem:[%s999_s5] sm:$0xff]  }
  0x27   :  { %550 = vmatprep.subr.bf16.mxu0 %v710_v0  ;;  %554 = vmatprep.mubr.msk.bf16.mxu0 %vm711_vm0, %v710_v0  ;;  %v82_v3 = vld [vmem:[%s995_s1] sm:$0xff]  ;;  %v83_v4 = vld [vmem:[%s995_s1 + $0x8] sm:$0xff]  ;;  %vm119_vm1 = vcmask 261120   ;;  %v638_v10 = vld [vmem:[%s1001_s7 + $0x18] sm:$0xff]   ;;  %vm370_vm2 = vcmask 523264   ;;  %vm493_vm3 = vcmask 254976  }
  0x28   :  { %626 = vmatprep.subr.bf16.mxu1 %v710_v0  ;;  %562 = vmatprep.mubr.msk.bf16.mxu1 %vm711_vm0, %v710_v0  ;;  %v86_v5 = vld [vmem:[%s995_s1 + $0x20] sm:$0xff]  ;;  %v87_v6 = vld [vmem:[%s995_s1 + $0x28] sm:$0xff]  ;;  %v91_v7 = vpack.c.bf16 %v83_v4, %v82_v3  ;;  %v84_v11 = vld [vmem:[%s995_s1 + $0x10] sm:$0xff] }
  0x29   :  { %551 = vmatpush3.bf16.msra.mxu0 %v635_v1  ;;  %628 = vmatpush3.bf16.msra.mxu1 %v635_v1  ;;  %v93_v8 = vpack.c.bf16 %v87_v6, %v86_v5  ;;  %v637_v9 = vld [vmem:[%s997_s3 + $0x8] sm:$0xff]   ;;  %v85_v12 = vld [vmem:[%s995_s1 + $0x18] sm:$0xff]  ;;  %v88_v13 = vld [vmem:[%s995_s1 + $0x30] sm:$0xff] }
  0x2a   :  { %552 = vmatprep.subr.bf16.mxu0 %v710_v0  ;;  %627 = vmatprep.subr.bf16.mxu1 %v710_v0  ;;  %v89_v14 = vld [vmem:[%s995_s1 + $0x38] sm:$0xff]  ;;  %v639_v15 = vld [vmem:[%s997_s3] sm:$0xff]   ;;  %v640_v16 = vld [vmem:[%s1001_s7 + $0x10] sm:$0xff]   ;;  %v92_v17 = vpack.c.bf16 %v85_v12, %v84_v11 }
  0x2b   :  { %v94_v18 = vpack.c.bf16 %v89_v14, %v88_v13  ;;  %v90_v19 = vld [vmem:[%s995_s1 + $0x40] sm:$0x3]  ;;  %v641_v21 = vld [vmem:[%s1001_s7 + $0x8] sm:$0xff]   ;;  %v70_v26 = vld [vmem:[%s994_s0 + $0x10] sm:$0xff] }
  0x2c   :  { %v95_v20 = vpack.c.bf16 %v90_v19, %v90_v19  ;;  %v68_v22 = vld [vmem:[%s994_s0] sm:$0xff]  ;;  %v69_v23 = vld [vmem:[%s994_s0 + $0x8] sm:$0xff]  ;;  %v71_v27 = vld [vmem:[%s994_s0 + $0x18] sm:$0xff] }
  0x2d   :  { %553 = vmatpush3.bf16.msra.mxu0 %v636_v2  ;;  %629 = vmatpush3.bf16.msra.mxu1 %v636_v2  ;;  %v77_v24 = vpack.c.bf16 %v69_v23, %v68_v22  ;;  %v642_v25 = vld [vmem:[%s1001_s7] sm:$0xff]   ;;  %v78_v28 = vpack.c.bf16 %v71_v27, %v70_v26  ;;  %v73_v30 = vld [vmem:[%s994_s0 + $0x28] sm:$0xff]  ;;  %v74_v32 = vld [vmem:[%s994_s0 + $0x30] sm:$0xff] }
  0x2e   :  { %574 = vmatprep.subr.bf16.mxu1 %v710_v0  ;;  %598 = vmatprep.subr.bf16.mxu0 %v710_v0  ;;  %v72_v29 = vld [vmem:[%s994_s0 + $0x20] sm:$0xff]  ;;  %v75_v33 = vld [vmem:[%s994_s0 + $0x38] sm:$0xff] }
  0x2f   :  { %v79_v31 = vpack.c.bf16 %v73_v30, %v72_v29  ;;  %v80_v34 = vpack.c.bf16 %v75_v33, %v74_v32  ;;  %v76_v35 = vld [vmem:[%s994_s0 + $0x40] sm:$0x3]  ;;  %v501_v37 = vld [vmem:[#allocation4] ss:$0 sm:$0xff] }
  0x30   :  { %555 = vmatmul.mubr.msk.bf16.vlgmr.msra.gmra.mxu0 %vm119_vm1, %v91_v7  ;;  %563 = vmatmul.mubr.msk.bf16.vlgmr.msra.gmra.mxu1 %vm119_vm1, %v93_v8  ;;  %v81_v36 = vpack.c.bf16 %v76_v35, %v76_v35 }
  0x31   :  { %558 = vmatprep.mubr.msk.bf16.mxu0 %vm711_vm0, %v710_v0  ;;  %566 = vmatprep.mubr.msk.bf16.mxu1 %vm711_vm0, %v710_v0 }
  0x32   :  { %575 = vmatpush3.bf16.msra.mxu1 %v637_v9  ;;  %599 = vmatpush3.bf16.msra.mxu0 %v638_v10 }
  0x33   :  { %576 = vmatprep.subr.bf16.mxu1 %v710_v0  ;;  %600 = vmatprep.subr.bf16.mxu0 %v710_v0 }
  0x36   :  { %577 = vmatpush3.bf16.msra.mxu1 %v639_v15  ;;  %601 = vmatpush3.bf16.msra.mxu0 %v640_v16 }
  0x37   :  { %602 = vmatprep.subr.bf16.mxu0 %v710_v0 }
  0x38   :  { %559 = vmatmul.mubr.msk.bf16.gmra.mxu0 %vm119_vm1, %v92_v17  ;;  %567 = vmatmul.mubr.msk.bf16.gmra.mxu1 %vm119_vm1, %v94_v18 }
  0x39   :  { %570 = vmatprep.mubr.msk.bf16.mxu1 %vm711_vm0, %v710_v0  ;;  %606 = vmatprep.mubr.msk.bf16.mxu0 %vm711_vm0, %v710_v0 }
  0x3a   :  { %603 = vmatpush3.bf16.msra.mxu0 %v641_v21 }
  0x3b   :  { %604 = vmatprep.subr.bf16.mxu0 %v710_v0 }
  0x3e   :  { %605 = vmatpush3.bf16.msra.mxu0 %v642_v25 }
  0x40   :  { %571 = vmatmul.mubr.msk.bf16.gmra.mxu1 %vm119_vm1, %v95_v20 }
  0x41   :  { %578 = vmatprep.mubr.msk.bf16.mxu1 %vm711_vm0, %v710_v0 }
  0x48   :  { %579 = vmatmul.mubr.msk.bf16.vlgmr.msra.gmra.mxu1 %vm119_vm1, %v77_v24 }
  0x49   :  { %582 = vmatprep.mubr.msk.bf16.mxu1 %vm711_vm0, %v710_v0 }
  0x50   :  { %583 = vmatmul.mubr.msk.bf16.gmra.mxu1 %vm119_vm1, %v78_v28 }
  0x51   :  { %586 = vmatprep.mubr.msk.bf16.mxu1 %vm711_vm0, %v710_v0 }
  0x58   :  { %587 = vmatmul.mubr.msk.bf16.gmra.mxu1 %vm119_vm1, %v79_v31 }
  0x59   :  { %590 = vmatprep.mubr.msk.bf16.mxu1 %vm711_vm0, %v710_v0 }
  0x60   :  { %591 = vmatmul.mubr.msk.bf16.gmra.mxu1 %vm119_vm1, %v80_v34 }
  0x61   :  { %594 = vmatprep.mubr.msk.bf16.mxu1 %vm711_vm0, %v710_v0 }
  0x68   :  { %595 = vmatmul.mubr.msk.bf16.gmra.mxu1 %vm119_vm1, %v81_v36 }
  0xf0   :  { %v169_v38 = vpop.f32.mrf.mxu0  ;;  %v185_v39 = vpop.f32.mrf.mxu1 }
  0xf1   :  { %v170_v42 = vadd.f32 %v501_v37, %v169_v38  ;;  %v186_v1 = vadd.f32 %v501_v37, %v185_v39  ;;  %v910_v38 = vld [vmem:[#allocation6] ss:$0 sm:$0xff] }
  0xf2   :  { %v556_v40 = vpop.f32.mrf.mxu0  ;;  %v564_v41 = vpop.f32.mrf.mxu1 }
  0xf3   :  { %v207_v48 = vmax.f32 %v170_v42, 0.0  ;;  %v211_v6 = vmax.f32 %v186_v1, 0.0  ;;  %v467_v42 = vld [vmem:[%s996_s2] sm:$0xff] }
  0xf4   :  { %v172_v43 = vpop.f32.mrf.mxu0  ;;  %v188_v44 = vpop.f32.mrf.mxu1 }
  0xf5   :  { %v173_v45 = vadd.f32 %v501_v37, %v172_v43  ;;  %v189_v3 = vadd.f32 %v501_v37, %v188_v44 }
  0xf6   :  { %v557_v46 = vpop.f32.mrf.mxu0  ;;  %v565_v47 = vpop.f32.mrf.mxu1 }
  0xf7   :  { %v208_v49 = vmax.f32 %v173_v45, 0.0  ;;  %v212_v7 = vmax.f32 %v189_v3, 0.0 }
  0xf8   :  { %v177_v50 = vpop.f32.mrf.mxu0  ;;  %v193_v51 = vpop.f32.mrf.mxu1 }
  0xf9   :  { %v326_v52 = vpack.c.bf16 %v208_v49, %v207_v48  ;;  %v178_v55 = vadd.f32 %v501_v37, %v177_v50  ;;  %v328_v9 = vpack.c.bf16 %v212_v7, %v211_v6  ;;  %v194_v10 = vadd.f32 %v501_v37, %v193_v51  ;;  %v468_v49 = vld [vmem:[%s996_s2 + $0x8] sm:$0xff]  ;;  %v471_v7 = vld [vmem:[%s996_s2 + $0x20] sm:$0xff] }
  0xfa   :  { %v560_v53 = vpop.f32.mrf.mxu0  ;;  %v568_v54 = vpop.f32.mrf.mxu1 }
  0xfb   :  { %607 = vmatmul.mubr.msk.bf16.vlgmr.msra.gmra.mxu0 %vm370_vm2, %v326_v52  ;;  %v209_v61 = vmax.f32 %v178_v55, 0.0  ;;  %v213_v12 = vmax.f32 %v194_v10, 0.0 }
  0xfc   :  { %v180_v56 = vpop.f32.mrf.mxu0  ;;  %610 = vmatprep.mubr.msk.bf16.mxu0 %vm711_vm0, %v710_v0  ;;  %v196_v57 = vpop.f32.mrf.mxu1 }
  0xfd   :  { %v181_v58 = vadd.f32 %v501_v37, %v180_v56  ;;  %v197_v11 = vadd.f32 %v501_v37, %v196_v57  ;;  %v469_v56 = vld [vmem:[%s996_s2 + $0x10] sm:$0xff] }
  0xfe   :  { %v561_v59 = vpop.f32.mrf.mxu0  ;;  %v569_v60 = vpop.f32.mrf.mxu1 }
  0xff   :  { %v210_v62 = vmax.f32 %v181_v58, 0.0  ;;  %v214_v13 = vmax.f32 %v197_v11, 0.0 }
 0x100   :  { %v201_v63 = vpop.f32.mrf.mxu1 }
 0x101   :  { %v327_v2 = vpack.c.bf16 %v210_v62, %v209_v61  ;;  %v202_v14 = vadd.f32 %v501_v37, %v201_v63  ;;  %v329_v15 = vpack.c.bf16 %v214_v13, %v213_v12  ;;  %v908_v37 = vld [vmem:[#allocation2] ss:$0 sm:$0xff]  ;;  %v470_v63 = vld [vmem:[%s996_s2 + $0x18] sm:$0xff] }
 0x102   :  { %v572_v4 = vpop.f32.mrf.mxu1 }
 0x103   :  { %611 = vmatmul.mubr.msk.bf16.gmra.mxu0 %vm370_vm2, %v327_v2  ;;  %v215_v16 = vmax.f32 %v202_v14, 0.0  ;;  %v472_v14 = vld [vmem:[%s996_s2 + $0x28] sm:$0xff] }
 0x104   :  { %614 = vmatprep.mubr.msk.bf16.mxu0 %vm711_vm0, %v710_v0  ;;  %v204_v5 = vpop.f32.mrf.mxu1 }
 0x105   :  { %v330_v17 = vpack.c.bf16 %v215_v16, %v215_v16 }
 0x106   :  { %v573_v8 = vpop.f32.mrf.mxu1 }
 0x108   :  { %v288_v18 = vpop.f32.mrf.mxu1 }
 0x109   :  { %v289_v39 = vadd.f32 %v908_v37, %v288_v18 }
 0x10a   :  { %v580_v19 = vpop.f32.mrf.mxu1 }
 0x10b   :  { %615 = vmatmul.mubr.msk.bf16.gmra.mxu0 %vm370_vm2, %v328_v9 }
 0x10c   :  { %618 = vmatprep.mubr.msk.bf16.mxu0 %vm711_vm0, %v710_v0  ;;  %v291_v20 = vpop.f32.mrf.mxu1 }
 0x10d   :  { %v292_v46 = vadd.f32 %v908_v37, %v291_v20 }
 0x10e   :  { %v581_v21 = vpop.f32.mrf.mxu1 }
 0x10f   :  { %v473_v21 = vld [vmem:[%s996_s2 + $0x30] sm:$0xff] }
 0x110   :  { %v296_v22 = vpop.f32.mrf.mxu1 }
 0x111   :  { %v297_v51 = vadd.f32 %v908_v37, %v296_v22 }
 0x112   :  { %v584_v23 = vpop.f32.mrf.mxu1 }
 0x113   :  { %619 = vmatmul.mubr.msk.bf16.gmra.mxu0 %vm370_vm2, %v329_v15 }
 0x114   :  { %622 = vmatprep.mubr.msk.bf16.mxu0 %vm711_vm0, %v710_v0  ;;  %v299_v24 = vpop.f32.mrf.mxu1 }
 0x115   :  { %v300_v60 = vadd.f32 %v908_v37, %v299_v24 }
 0x116   :  { %v585_v25 = vpop.f32.mrf.mxu1 }
 0x118   :  { %v304_v26 = vpop.f32.mrf.mxu1 }
 0x119   :  { %v305_v2 = vadd.f32 %v908_v37, %v304_v26 }
 0x11a   :  { %v588_v27 = vpop.f32.mrf.mxu1 }
 0x11b   :  { %623 = vmatmul.mubr.msk.bf16.gmra.mxu0 %vm370_vm2, %v330_v17 }
 0x11c   :  { %v307_v28 = vpop.f32.mrf.mxu1 }
 0x11d   :  { %v308_v11 = vadd.f32 %v908_v37, %v307_v28  ;;  %v474_v28 = vld [vmem:[%s996_s2 + $0x38] sm:$0xff] }
 0x11e   :  { %v589_v29 = vpop.f32.mrf.mxu1 }
 0x120   :  { %v312_v30 = vpop.f32.mrf.mxu1 }
 0x121   :  { %v313_v16 = vadd.f32 %v908_v37, %v312_v30 }
 0x122   :  { %v592_v31 = vpop.f32.mrf.mxu1 }
 0x124   :  { %v904_v32 = vpop.f32.mrf.mxu1 }
 0x125   :  { %v316_v25 = vadd.f32 %v908_v37, %v904_v32 }
 0x126   :  { %v593_v0 = vpop.f32.mrf.mxu1 }
 0x128   :  { %v906_v33 = vpop.f32.mrf.mxu1 }
 0x129   :  { %v321_v30 = vadd.f32 %v908_v37, %v906_v33 }
 0x12a   :  { %v596_v34 = vpop.f32.mrf.mxu1 }
 0x12c   :  { %v323_v35 = vpop.f32.mrf.mxu1 }
 0x12d   :  { %v475_v35 = vld [vmem:[%s996_s2 + $0x40] sm:$0x3] }
 0x12e   :  { %v597_v36 = vpop.f32.mrf.mxu1 }
 0x1bb   :  { %v420_v40 = vpop.f32.mrf.mxu0 }
 0x1bc   :  { %v421_v41 = vadd.f32 %v910_v38, %v420_v40 }
 0x1bd   :  { %v608_v43 = vpop.f32.mrf.mxu0 }
 0x1be   :  { %v458_v44 = vadd.f32 %v421_v41, %v289_v39 }
 0x1bf   :  { %v423_v45 = vpop.f32.mrf.mxu0 }
 0x1c0   :  { %v476_v47 = vadd.f32 %v467_v42, %v458_v44  ;;  %v424_v48 = vadd.f32 %v910_v38, %v423_v45 }
 0x1c1   :  { %v609_v50 = vpop.f32.mrf.mxu0 }
 0x1c2   :  { %485 = vst.msk [vmem:[%s1003_s9] sm:$0xff] %vm119_vm1, %v476_v47  ;;  %v459_v52 = vadd.f32 %v424_v48, %v292_v46 }
 0x1c3   :  { %v428_v53 = vpop.f32.mrf.mxu0 }
 0x1c4   :  { %v477_v54 = vadd.f32 %v468_v49, %v459_v52  ;;  %v429_v55 = vadd.f32 %v910_v38, %v428_v53 }
 0x1c5   :  { %v612_v57 = vpop.f32.mrf.mxu0 }
 0x1c6   :  { %486 = vst.msk [vmem:[%s1003_s9 + $0x8] sm:$0xff] %vm119_vm1, %v477_v54  ;;  %v460_v58 = vadd.f32 %v429_v55, %v297_v51 }
 0x1c7   :  { %v431_v59 = vpop.f32.mrf.mxu0 }
 0x1c8   :  { %v478_v61 = vadd.f32 %v469_v56, %v460_v58  ;;  %v432_v62 = vadd.f32 %v910_v38, %v431_v59 }
 0x1c9   :  { %v613_v1 = vpop.f32.mrf.mxu0 }
 0x1ca   :  { %487 = vst.msk [vmem:[%s1003_s9 + $0x10] sm:$0xff] %vm119_vm1, %v478_v61  ;;  %v461_v3 = vadd.f32 %v432_v62, %v300_v60 }
 0x1cb   :  { %v436_v4 = vpop.f32.mrf.mxu0 }
 0x1cc   :  { %v479_v5 = vadd.f32 %v470_v63, %v461_v3  ;;  %v437_v6 = vadd.f32 %v910_v38, %v436_v4 }
 0x1cd   :  { %v616_v8 = vpop.f32.mrf.mxu0 }
 0x1ce   :  { %488 = vst.msk [vmem:[%s1003_s9 + $0x18] sm:$0xff] %vm119_vm1, %v479_v5  ;;  %v462_v9 = vadd.f32 %v437_v6, %v305_v2 }
 0x1cf   :  { %v439_v10 = vpop.f32.mrf.mxu0 }
 0x1d0   :  { %v480_v12 = vadd.f32 %v471_v7, %v462_v9  ;;  %v440_v13 = vadd.f32 %v910_v38, %v439_v10 }
 0x1d1   :  { %v617_v15 = vpop.f32.mrf.mxu0 }
 0x1d2   :  { %489 = vst.msk [vmem:[%s1003_s9 + $0x20] sm:$0xff] %vm119_vm1, %v480_v12  ;;  %v463_v17 = vadd.f32 %v440_v13, %v308_v11 }
 0x1d3   :  { %v444_v18 = vpop.f32.mrf.mxu0 }
 0x1d4   :  { %v481_v19 = vadd.f32 %v472_v14, %v463_v17  ;;  %v445_v20 = vadd.f32 %v910_v38, %v444_v18 }
 0x1d5   :  { %v620_v22 = vpop.f32.mrf.mxu0 }
 0x1d6   :  { %490 = vst.msk [vmem:[%s1003_s9 + $0x28] sm:$0xff] %vm119_vm1, %v481_v19  ;;  %v464_v23 = vadd.f32 %v445_v20, %v313_v16 }
 0x1d7   :  { %v447_v24 = vpop.f32.mrf.mxu0 }
 0x1d8   :  { %v482_v26 = vadd.f32 %v473_v21, %v464_v23  ;;  %v448_v27 = vadd.f32 %v910_v38, %v447_v24 }
 0x1d9   :  { %v621_v29 = vpop.f32.mrf.mxu0 }
 0x1da   :  { %491 = vst.msk [vmem:[%s1003_s9 + $0x30] sm:$0xff] %vm119_vm1, %v482_v26  ;;  %v465_v31 = vadd.f32 %v448_v27, %v316_v25 }
 0x1db   :  { %v452_v0 = vpop.f32.mrf.mxu0 }
 0x1dc   :  { %v483_v34 = vadd.f32 %v474_v28, %v465_v31  ;;  %v453_v32 = vadd.f32 %v910_v38, %v452_v0 }
 0x1dd   :  { %v624_v36 = vpop.f32.mrf.mxu0 }
 0x1de   :  { %492 = vst.msk [vmem:[%s1003_s9 + $0x38] sm:$0xff] %vm119_vm1, %v483_v34  ;;  %v466_v39 = vadd.f32 %v453_v32, %v321_v30 }
 0x1df   :  { %v455_v40 = vpop.f32.mrf.mxu0 }
 0x1e0   :  { %v484_v41 = vadd.f32 %v475_v35, %v466_v39 }
 0x1e1   :  { %v625_v33 = vpop.f32.mrf.mxu0 }
 0x1e2   :  { %494 = vst.msk [vmem:[%s1003_s9 + $0x40] sm:$0x3] %vm493_vm3, %v484_v41 }
 0x1e3   :  { %499 = vsyncpa [#allocation3], 1 }
 0x1e4   :  { %500 = vsyncpa [#allocation5], 1 }

// kernel: vit3d_forward.18
= control target key start
LH: loop header
LB: loop body
LE: loop exit
PB: predicated region body
PF: predicated region fallthrough
CT: control target
= control target key end

     0   :  { %10 = vsyncpa [#allocation3], 0  ;;  %s816_s0 = inlined_call_operand.vmem [shape: f32[66,32], index: 0, kind: input, shape index: {}]   ;;  %s817_s1 = inlined_call_operand.hbm [shape: f32[1,32], index: 1, kind: input, shape index: {}]   ;;  %s818_s2 = inlined_call_operand.hbm [shape: f32[1,32], index: 2, kind: input, shape index: {}]   ;;  %s819_s3 = inlined_call_operand.vmem [shape: bf16[32,128], index: 3, kind: input, shape index: {}]   ;;  %s820_s4 = inlined_call_operand.hbm [shape: f32[1,128], index: 4, kind: input, shape index: {}]   ;;  %s821_s5 = inlined_call_operand.vmem [shape: f32[66,128], index: 5, kind: output, shape index: {}]  }
   0x1   :  { %11 = vsyncpa [#allocation5], 0  ;;  %s598_s18 = smov [#allocation4]   ;;  %s599_s20 = smov [#allocation2]  }
   0x2   :  { %s30_s19 = sshll.u32 %s598_s18, 4  ;;  %s20_s21 = sshll.u32 %s599_s20, 4  ;;  %s31_s19 = int_to_ptr.vmem [resolvable:$true] %s30_s19  ;;  %s21_s21 = int_to_ptr.vmem [resolvable:$true] %s20_s21 }
   0x3   :  { %s542_s22 = scalar_lea.vmem %s31_s19, 16  ;;  %s546_s23 = scalar_lea.vmem %s31_s19, 32 }
   0x4   :  { %p543_p0 = scmp.ne.s32.totalorder %s31_s19, %s542_s22  ;;  %p547_p1 = scmp.lt.s32.totalorder %s31_s19, %s31_s19 }
   0x5   :  { %p548_p2 = scmp.lt.s32.totalorder %s546_s23, %s542_s22 }
   0x7   :  { %p549_p3 = por %p548_p2, %p547_p1 }
   0x9   :  { %p550_p4 = pnand %p549_p3, %p543_p0 }
   0xb   :  { %553 = shalt.err (!%p550_p4)
}
   0xc   :  { %33 = dma.hbm_to_vmem [thread:$0]  %s818_s2, 16, %s31_s19, [#allocation5]  }
   0xd   :  { %s562_s26 = scalar_lea.vmem %s21_s21, 16  ;;  %s566_s27 = scalar_lea.vmem %s21_s21, 32 }
   0xe   :  { %p563_p5 = scmp.ne.s32.totalorder %s21_s21, %s562_s26  ;;  %p567_p6 = scmp.lt.s32.totalorder %s21_s21, %s21_s21 }
   0xf   :  { %p568_p7 = scmp.lt.s32.totalorder %s566_s27, %s562_s26 }
  0x11   :  { %p569_p8 = por %p568_p7, %p567_p6 }
  0x13   :  { %p570_p9 = pnand %p569_p8, %p563_p5 }
  0x15   :  { %573 = shalt.err (!%p570_p9)
}
  0x16   :  { %23 = dma.hbm_to_vmem [thread:$0]  %s817_s1, 16, %s21_s21, [#allocation3]  }
  0x17   :  { %s600_s30 = smov [#allocation6]  }
  0x18   :  { %s42_s6 = sshll.u32 %s600_s30, 4  ;;  %s43_s6 = int_to_ptr.vmem [resolvable:$true] %s42_s6 }
  0x19   :  { %s582_s7 = scalar_lea.vmem %s43_s6, 16  ;;  %s586_s8 = scalar_lea.vmem %s43_s6, 32 }
  0x1a   :  { %p583_p10 = scmp.ne.s32.totalorder %s43_s6, %s582_s7  ;;  %p587_p11 = scmp.lt.s32.totalorder %s43_s6, %s43_s6 }
  0x1b   :  { %p588_p12 = scmp.lt.s32.totalorder %s586_s8, %s582_s7 }
  0x1d   :  { %p589_p13 = por %p588_p12, %p587_p11 }
  0x1f   :  { %p590_p0 = pnand %p589_p13, %p583_p10 }
  0x21   :  { %593 = shalt.err (!%p590_p0)
}
  0x22   :  { %45 = dma.hbm_to_vmem [thread:$0]  %s820_s4, 16, %s43_s6, [#allocation5]  }
  0x23   :  { %594 = dma.done.wait [#allocation3], 16  }
  0x24   :  { %595 = vsyncadd [#allocation3], 4294967280 }
  0x25   :  { %596 = dma.done.wait [#allocation5], 32  }
  0x26   :  { %597 = vsyncadd [#allocation5], 4294967264  ;;  %vm67_vm0 = vcmask 261120   ;;  %v56_v0 = vld [vmem:[%s816_s0] sm:$0xff]  ;;  %v58_v1 = vld [vmem:[%s816_s0 + $0x10] sm:$0xff]  ;;  %vm92_vm1 = vcmask 254976  }
  0x27   :  { %v57_v2 = vld [vmem:[%s816_s0 + $0x8] sm:$0xff]  ;;  %v68_v3 = vsel %vm67_vm0, %v56_v0, 0.0  ;;  %v74_v4 = vsel %vm67_vm0, %v58_v1, 0.0  ;;  %v59_v5 = vld [vmem:[%s816_s0 + $0x18] sm:$0xff]  ;;  %v62_v8 = vld [vmem:[%s816_s0 + $0x30] sm:$0xff]  ;;  %vm602_vm2 = vmmov 0  }
  0x28   :  { %69 = vadd.xlane.f32.xlu0 %v68_v3  ;;  %75 = vadd.xlane.f32.xlu1 %v74_v4  ;;  %v71_v6 = vsel %vm67_vm0, %v57_v2, 0.0  ;;  %v77_v7 = vsel %vm67_vm0, %v59_v5, 0.0  ;;  %v63_v9 = vld [vmem:[%s816_s0 + $0x38] sm:$0xff]  ;;  %v86_v10 = vsel %vm67_vm0, %v62_v8, 0.0  ;;  %v60_v12 = vld [vmem:[%s816_s0 + $0x20] sm:$0xff]  ;;  %v61_v13 = vld [vmem:[%s816_s0 + $0x28] sm:$0xff] }
  0x29   :  { %v89_v11 = vsel %vm67_vm0, %v63_v9, 0.0  ;;  %v80_v14 = vsel %vm67_vm0, %v60_v12, 0.0  ;;  %v83_v15 = vsel %vm67_vm0, %v61_v13, 0.0  ;;  %v64_v16 = vld [vmem:[%s816_s0 + $0x40] sm:$0x3]  ;;  %v478_v63 = vld [vmem:[%s819_s3 + $0x8] sm:$0xff]  }
  0x2a   :  { %v93_v17 = vsel %vm92_vm1, %v64_v16, 0.0 }
  0x2c   :  { %72 = vadd.xlane.f32.xlu0 %v71_v6  ;;  %78 = vadd.xlane.f32.xlu1 %v77_v7 }
  0x30   :  { %87 = vadd.xlane.f32.xlu0 %v86_v10  ;;  %90 = vadd.xlane.f32.xlu1 %v89_v11 }
  0x34   :  { %81 = vadd.xlane.f32.xlu0 %v80_v14  ;;  %84 = vadd.xlane.f32.xlu1 %v83_v15 }
  0x38   :  { %94 = vadd.xlane.f32.xlu0 %v93_v17 }
  0xb1   :  { %v70_v18 = vpop.xlane.xlu0 %69  ;;  %v76_v19 = vpop.xlane.xlu1 %75 }
  0xb2   :  { %v97_v20 = vmul.f32 0.03125, %v70_v18  ;;  %v99_v21 = vmul.f32 0.03125, %v76_v19 }
  0xb4   :  { %v678_v22 = vsub.f32 %v56_v0, %v97_v20  ;;  %v680_v23 = vsub.f32 %v58_v1, %v99_v21  ;;  %v601_v0 = vmov 0.0   ;;  %v479_v1 = vld [vmem:[%s819_s3] sm:$0xff]  }
  0xb5   :  { %v73_v24 = vpop.xlane.xlu0 %72  ;;  %v79_v25 = vpop.xlane.xlu1 %78  ;;  %445 = vmatprep.subr.bf16.mxu0 %v601_v0  ;;  %449 = vmatprep.mubr.msk.bf16.mxu0 %vm602_vm2, %v601_v0 }
  0xb6   :  { %v98_v26 = vmul.f32 0.03125, %v73_v24  ;;  %v100_v27 = vmul.f32 0.03125, %v79_v25  ;;  %v115_v28 = vmul.f32 %v678_v22, %v678_v22  ;;  %v117_v29 = vmul.f32 %v680_v23, %v680_v23  ;;  %446 = vmatpush3.bf16.msra.mxu0 %v478_v63  ;;  %469 = vmatprep.subr.bf16.mxu1 %v601_v0 }
  0xb7   :  { %447 = vmatprep.subr.bf16.mxu0 %v601_v0  ;;  %471 = vmatpush3.bf16.msra.mxu1 %v478_v63 }
  0xb8   :  { %v686_v30 = vsub.f32 %v57_v2, %v98_v26  ;;  %v688_v31 = vsub.f32 %v59_v5, %v100_v27  ;;  %v124_v32 = vsel %vm67_vm0, %v115_v28, 0.0  ;;  %v130_v35 = vsel %vm67_vm0, %v117_v29, 0.0  ;;  %470 = vmatprep.subr.bf16.mxu1 %v601_v0  ;;  %461 = vmatprep.mubr.msk.bf16.mxu1 %vm602_vm2, %v601_v0 }
  0xb9   :  { %125 = vadd.xlane.f32.xlu1 %v124_v32  ;;  %v88_v33 = vpop.xlane.xlu0 %87  ;;  %v91_v34 = vpop.xlane.xlu1 %90 }
  0xba   :  { %v103_v36 = vmul.f32 0.03125, %v88_v33  ;;  %v104_v37 = vmul.f32 0.03125, %v91_v34  ;;  %v116_v38 = vmul.f32 %v686_v30, %v686_v30  ;;  %v118_v39 = vmul.f32 %v688_v31, %v688_v31  ;;  %448 = vmatpush3.bf16.msra.mxu0 %v479_v1 }
  0xbb   :  { %472 = vmatpush3.bf16.msra.mxu1 %v479_v1 }
  0xbc   :  { %v696_v40 = vsub.f32 %v62_v8, %v103_v36  ;;  %v698_v41 = vsub.f32 %v63_v9, %v104_v37  ;;  %v127_v42 = vsel %vm67_vm0, %v116_v38, 0.0  ;;  %v133_v45 = vsel %vm67_vm0, %v118_v39, 0.0 }
  0xbd   :  { %131 = vadd.xlane.f32.xlu1 %v130_v35  ;;  %128 = vadd.xlane.f32.xlu0 %v127_v42  ;;  %v82_v43 = vpop.xlane.xlu0 %81  ;;  %v85_v44 = vpop.xlane.xlu1 %84  ;;  %v419_v35 = vld [vmem:[#allocation2] ss:$0 sm:$0xff]  ;;  %v420_v42 = vld [vmem:[#allocation4] ss:$0 sm:$0xff] }
  0xbe   :  { %v101_v46 = vmul.f32 0.03125, %v82_v43  ;;  %v102_v47 = vmul.f32 0.03125, %v85_v44  ;;  %v121_v48 = vmul.f32 %v696_v40, %v696_v40  ;;  %v122_v49 = vmul.f32 %v698_v41, %v698_v41 }
  0xc0   :  { %v706_v50 = vsub.f32 %v60_v12, %v101_v46  ;;  %v708_v51 = vsub.f32 %v61_v13, %v102_v47  ;;  %v142_v52 = vsel %vm67_vm0, %v121_v48, 0.0  ;;  %v145_v55 = vsel %vm67_vm0, %v122_v49, 0.0 }
  0xc1   :  { %134 = vadd.xlane.f32.xlu0 %v133_v45  ;;  %143 = vadd.xlane.f32.xlu1 %v142_v52  ;;  %v95_v53 = vpop.xlane.xlu0 %94 }
  0xc2   :  { %v105_v54 = vmul.f32 0.03125, %v95_v53  ;;  %v119_v56 = vmul.f32 %v706_v50, %v706_v50  ;;  %v120_v57 = vmul.f32 %v708_v51, %v708_v51 }
  0xc4   :  { %v716_v58 = vsub.f32 %v64_v16, %v105_v54  ;;  %v136_v59 = vsel %vm67_vm0, %v119_v56, 0.0  ;;  %v139_v60 = vsel %vm67_vm0, %v120_v57, 0.0 }
  0xc5   :  { %146 = vadd.xlane.f32.xlu0 %v145_v55  ;;  %137 = vadd.xlane.f32.xlu1 %v136_v59 }
  0xc6   :  { %v123_v61 = vmul.f32 %v716_v58, %v716_v58 }
  0xc8   :  { %v148_v62 = vsel %vm92_vm1, %v123_v61, 0.0 }
  0xc9   :  { %140 = vadd.xlane.f32.xlu0 %v139_v60  ;;  %149 = vadd.xlane.f32.xlu1 %v148_v62 }
 0x142   :  { %v126_v2 = vpop.xlane.xlu1 %125 }
 0x143   :  { %v151_v3 = vmul.f32 0.03125, %v126_v2 }
 0x145   :  { %v160_v4 = vadd.f32 1e-05, %v151_v3 }
 0x146   :  { %v132_v5 = vpop.xlane.xlu1 %131  ;;  %v129_v6 = vpop.xlane.xlu0 %128 }
 0x147   :  { %480 = vrsqrt.f32 %v160_v4  ;;  %v153_v7 = vmul.f32 0.03125, %v132_v5  ;;  %v152_v8 = vmul.f32 0.03125, %v129_v6 }
 0x149   :  { %v162_v9 = vadd.f32 1e-05, %v153_v7  ;;  %v161_v10 = vadd.f32 1e-05, %v152_v8 }
 0x14a   :  { %v144_v11 = vpop.xlane.xlu1 %143  ;;  %v135_v12 = vpop.xlane.xlu0 %134 }
 0x14b   :  { %v157_v13 = vmul.f32 0.03125, %v144_v11  ;;  %v154_v14 = vmul.f32 0.03125, %v135_v12  ;;  %482 = vrsqrt.f32 %v161_v10 }
 0x14c   :  { %484 = vrsqrt.f32 %v162_v9  ;;  %v421_v9 = vld [vmem:[#allocation6] ss:$0 sm:$0xff] }
 0x14d   :  { %v166_v15 = vadd.f32 1e-05, %v157_v13  ;;  %v163_v16 = vadd.f32 1e-05, %v154_v14 }
 0x14e   :  { %v138_v17 = vpop.xlane.xlu1 %137  ;;  %v147_v18 = vpop.xlane.xlu0 %146 }
 0x14f   :  { %486 = vrsqrt.f32 %v166_v15  ;;  %v155_v19 = vmul.f32 0.03125, %v138_v17  ;;  %v158_v20 = vmul.f32 0.03125, %v147_v18 }
 0x150   :  { %488 = vrsqrt.f32 %v163_v16 }
 0x151   :  { %v167_v21 = vadd.f32 1e-05, %v158_v20  ;;  %v164_v24 = vadd.f32 1e-05, %v155_v19 }
 0x152   :  { %v150_v25 = vpop.xlane.xlu1 %149  ;;  %v141_v26 = vpop.xlane.xlu0 %140 }
 0x153   :  { %v159_v27 = vmul.f32 0.03125, %v150_v25  ;;  %v156_v28 = vmul.f32 0.03125, %v141_v26  ;;  %490 = vrsqrt.f32 %v167_v21 }
 0x154   :  { %v481_v29 = vpop.eup %480  ;;  %492 = vrsqrt.f32 %v164_v24 }
 0x155   :  { %v168_v32 = vadd.f32 1e-05, %v159_v27  ;;  %v165_v33 = vadd.f32 1e-05, %v156_v28  ;;  %v178_v34 = vmul.f32 %v481_v29, %v678_v22 }
 0x157   :  { %494 = vrsqrt.f32 %v168_v32  ;;  %v193_v39 = vmul.f32 %v419_v35, %v178_v34 }
 0x158   :  { %496 = vrsqrt.f32 %v165_v33  ;;  %v483_v36 = vpop.eup %482 }
 0x159   :  { %v485_v37 = vpop.eup %484  ;;  %v179_v38 = vmul.f32 %v483_v36, %v686_v30  ;;  %v208_v47 = vadd.f32 %v420_v42, %v193_v39 }
 0x15a   :  { %v180_v46 = vmul.f32 %v485_v37, %v680_v23 }
 0x15b   :  { %v194_v44 = vmul.f32 %v419_v35, %v179_v38 }
 0x15c   :  { %v487_v43 = vpop.eup %486  ;;  %v195_v55 = vmul.f32 %v419_v35, %v180_v46 }
 0x15d   :  { %v489_v45 = vpop.eup %488  ;;  %v209_v48 = vadd.f32 %v420_v42, %v194_v44  ;;  %v184_v22 = vmul.f32 %v487_v43, %v696_v40 }
 0x15e   :  { %v181_v49 = vmul.f32 %v489_v45, %v688_v31  ;;  %v210_v31 = vadd.f32 %v420_v42, %v195_v55 }
 0x15f   :  { %v217_v52 = vpack.c.bf16 %v209_v48, %v208_v47  ;;  %v199_v56 = vmul.f32 %v419_v35, %v184_v22 }
 0x160   :  { %v196_v53 = vmul.f32 %v419_v35, %v181_v49  ;;  %v491_v54 = vpop.eup %490 }
 0x161   :  { %450 = vmatmul.mubr.msk.bf16.vlgmr.msra.gmra.mxu0 %vm67_vm0, %v217_v52  ;;  %v185_v30 = vmul.f32 %v491_v54, %v698_v41  ;;  %v493_v57 = vpop.eup %492  ;;  %v214_v62 = vadd.f32 %v420_v42, %v199_v56 }
 0x162   :  { %453 = vmatprep.mubr.msk.bf16.mxu0 %vm602_vm2, %v601_v0  ;;  %v211_v59 = vadd.f32 %v420_v42, %v196_v53  ;;  %v182_v1 = vmul.f32 %v493_v57, %v706_v50 }
 0x163   :  { %v200_v60 = vmul.f32 %v419_v35, %v185_v30 }
 0x164   :  { %v495_v23 = vpop.eup %494  ;;  %v218_v3 = vpack.c.bf16 %v211_v59, %v210_v31  ;;  %v197_v6 = vmul.f32 %v419_v35, %v182_v1 }
 0x165   :  { %v497_v61 = vpop.eup %496  ;;  %v186_v40 = vmul.f32 %v495_v23, %v716_v58  ;;  %v215_v63 = vadd.f32 %v420_v42, %v200_v60 }
 0x166   :  { %v183_v2 = vmul.f32 %v497_v61, %v708_v51  ;;  %v212_v50 = vadd.f32 %v420_v42, %v197_v6 }
 0x167   :  { %v220_v41 = vpack.c.bf16 %v215_v63, %v214_v62  ;;  %v201_v5 = vmul.f32 %v419_v35, %v186_v40 }
 0x168   :  { %v198_v4 = vmul.f32 %v419_v35, %v183_v2 }
 0x169   :  { %454 = vmatmul.mubr.msk.bf16.gmra.mxu0 %vm67_vm0, %v218_v3  ;;  %462 = vmatmul.mubr.msk.bf16.vlgmr.msra.gmra.mxu1 %vm67_vm0, %v220_v41  ;;  %v216_v7 = vadd.f32 %v420_v42, %v201_v5 }
 0x16a   :  { %457 = vmatprep.mubr.msk.bf16.mxu0 %vm602_vm2, %v601_v0  ;;  %465 = vmatprep.mubr.msk.bf16.mxu1 %vm602_vm2, %v601_v0  ;;  %v213_v58 = vadd.f32 %v420_v42, %v198_v4 }
 0x16b   :  { %v221_v51 = vpack.c.bf16 %v216_v7, %v216_v7 }
 0x16c   :  { %v219_v8 = vpack.c.bf16 %v213_v58, %v212_v50 }
 0x171   :  { %458 = vmatmul.mubr.msk.bf16.gmra.mxu0 %vm67_vm0, %v219_v8  ;;  %466 = vmatmul.mubr.msk.bf16.gmra.mxu1 %vm67_vm0, %v221_v51 }
 0x221   :  { %v294_v10 = vpop.f32.mrf.mxu0 }
 0x222   :  { %v757_v11 = vadd.f32 %v421_v9, %v294_v10 }
 0x223   :  { %v451_v12 = vpop.f32.mrf.mxu0 }
 0x224   :  { %v429_v13 = vmul.f32 -1.702, %v757_v11 }
 0x225   :  { %v297_v14 = vpop.f32.mrf.mxu0 }
 0x226   :  { %v350_v15 = vmul.f32 1.442695, %v429_v13  ;;  %v760_v16 = vadd.f32 %v421_v9, %v297_v14 }
 0x227   :  { %v452_v0 = vpop.f32.mrf.mxu0 }
 0x228   :  { %498 = vpow2.f32 %v350_v15  ;;  %v430_v17 = vmul.f32 -1.702, %v760_v16 }
 0x229   :  { %v302_v18 = vpop.f32.mrf.mxu0  ;;  %v318_v19 = vpop.f32.mrf.mxu1 }
 0x22a   :  { %v352_v20 = vmul.f32 1.442695, %v430_v17  ;;  %v763_v21 = vadd.f32 %v421_v9, %v302_v18  ;;  %v765_v24 = vadd.f32 %v421_v9, %v318_v19 }
 0x22b   :  { %v455_v25 = vpop.f32.mrf.mxu0  ;;  %v463_v26 = vpop.f32.mrf.mxu1 }
 0x22c   :  { %500 = vpow2.f32 %v352_v20  ;;  %v431_v27 = vmul.f32 -1.702, %v763_v21  ;;  %v435_v28 = vmul.f32 -1.702, %v765_v24 }
 0x22d   :  { %v305_v29 = vpop.f32.mrf.mxu0  ;;  %v321_v32 = vpop.f32.mrf.mxu1 }
 0x22e   :  { %v354_v33 = vmul.f32 1.442695, %v431_v27  ;;  %v362_v34 = vmul.f32 1.442695, %v435_v28  ;;  %v769_v35 = vadd.f32 %v421_v9, %v305_v29  ;;  %v771_v36 = vadd.f32 %v421_v9, %v321_v32 }
 0x22f   :  { %v456_v37 = vpop.f32.mrf.mxu0  ;;  %v464_v38 = vpop.f32.mrf.mxu1 }
 0x230   :  { %502 = vpow2.f32 %v354_v33  ;;  %v432_v39 = vmul.f32 -1.702, %v769_v35  ;;  %v436_v42 = vmul.f32 -1.702, %v771_v36 }
 0x231   :  { %504 = vpow2.f32 %v362_v34  ;;  %v310_v43 = vpop.f32.mrf.mxu0  ;;  %v326_v44 = vpop.f32.mrf.mxu1 }
 0x232   :  { %v356_v45 = vmul.f32 1.442695, %v432_v39  ;;  %v364_v46 = vmul.f32 1.442695, %v436_v42  ;;  %v775_v47 = vadd.f32 %v421_v9, %v310_v43  ;;  %v777_v48 = vadd.f32 %v421_v9, %v326_v44 }
 0x233   :  { %v459_v49 = vpop.f32.mrf.mxu0  ;;  %v467_v22 = vpop.f32.mrf.mxu1 }
 0x234   :  { %506 = vpow2.f32 %v356_v45  ;;  %v433_v52 = vmul.f32 -1.702, %v775_v47  ;;  %v437_v53 = vmul.f32 -1.702, %v777_v48 }
 0x235   :  { %v499_v54 = vpop.eup %498  ;;  %508 = vpow2.f32 %v364_v46  ;;  %v313_v55 = vpop.f32.mrf.mxu0 }
 0x236   :  { %v329_v30 = vpop.f32.mrf.mxu1  ;;  %v368_v56 = vadd.f32 1.0, %v499_v54  ;;  %v358_v57 = vmul.f32 1.442695, %v433_v52  ;;  %v366_v23 = vmul.f32 1.442695, %v437_v53  ;;  %v314_v59 = vadd.f32 %v421_v9, %v313_v55 }
 0x237   :  { %v460_v60 = vpop.f32.mrf.mxu0 }
 0x238   :  { %v468_v61 = vpop.f32.mrf.mxu1  ;;  %510 = vrcp.f32 %v368_v56  ;;  %v434_v31 = vmul.f32 -1.702, %v314_v59 }
 0x239   :  { %v501_v40 = vpop.eup %500  ;;  %512 = vpow2.f32 %v358_v57 }
 0x23a   :  { %v369_v62 = vadd.f32 1.0, %v501_v40  ;;  %514 = vpow2.f32 %v366_v23  ;;  %v360_v63 = vmul.f32 1.442695, %v434_v31 }
 0x23c   :  { %516 = vrcp.f32 %v369_v62 }
 0x23d   :  { %v503_v1 = vpop.eup %502  ;;  %518 = vpow2.f32 %v360_v63 }
 0x23e   :  { %v505_v2 = vpop.eup %504  ;;  %v370_v3 = vadd.f32 1.0, %v503_v1 }
 0x23f   :  { %v374_v41 = vadd.f32 1.0, %v505_v2 }
 0x240   :  { %520 = vrcp.f32 %v370_v3 }
 0x241   :  { %v507_v4 = vpop.eup %506  ;;  %522 = vrcp.f32 %v374_v41 }
 0x242   :  { %v509_v5 = vpop.eup %508  ;;  %v371_v6 = vadd.f32 1.0, %v507_v4 }
 0x243   :  { %v375_v58 = vadd.f32 1.0, %v509_v5 }
 0x244   :  { %524 = vrcp.f32 %v371_v6 }
 0x245   :  { %v511_v7 = vpop.eup %510  ;;  %526 = vrcp.f32 %v375_v58 }
 0x246   :  { %v513_v50 = vpop.eup %512  ;;  %v395_v8 = vmul.f32 %v511_v7, %v757_v11 }
 0x247   :  { %v515_v51 = vpop.eup %514  ;;  %v372_v9 = vadd.f32 1.0, %v513_v50 }
 0x248   :  { %404 = vst [vmem:[%s821_s5] sm:$0xff] %v395_v8  ;;  %v376_v10 = vadd.f32 1.0, %v515_v51 }
 0x249   :  { %v517_v12 = vpop.eup %516  ;;  %528 = vrcp.f32 %v372_v9 }
 0x24a   :  { %v519_v13 = vpop.eup %518  ;;  %v396_v14 = vmul.f32 %v517_v12, %v760_v16  ;;  %530 = vrcp.f32 %v376_v10 }
 0x24b   :  { %v373_v15 = vadd.f32 1.0, %v519_v13 }
 0x24c   :  { %405 = vst [vmem:[%s821_s5 + $0x8] sm:$0xff] %v396_v14 }
 0x24d   :  { %v521_v0 = vpop.eup %520  ;;  %532 = vrcp.f32 %v373_v15 }
 0x24e   :  { %v523_v11 = vpop.eup %522  ;;  %v397_v17 = vmul.f32 %v521_v0, %v763_v21 }
 0x24f   :  { %v401_v18 = vmul.f32 %v523_v11, %v765_v24 }
 0x250   :  { %406 = vst [vmem:[%s821_s5 + $0x10] sm:$0xff] %v397_v17 }
 0x251   :  { %v525_v19 = vpop.eup %524  ;;  %410 = vst [vmem:[%s821_s5 + $0x30] sm:$0xff] %v401_v18 }
 0x252   :  { %v527_v16 = vpop.eup %526  ;;  %v398_v20 = vmul.f32 %v525_v19, %v769_v35 }
 0x253   :  { %v402_v25 = vmul.f32 %v527_v16, %v771_v36 }
 0x254   :  { %407 = vst [vmem:[%s821_s5 + $0x18] sm:$0xff] %v398_v20 }
 0x255   :  { %411 = vst [vmem:[%s821_s5 + $0x38] sm:$0xff] %v402_v25 }
 0x256   :  { %v529_v21 = vpop.eup %528 }
 0x257   :  { %v531_v24 = vpop.eup %530  ;;  %v399_v26 = vmul.f32 %v529_v21, %v775_v47 }
 0x258   :  { %v403_v27 = vmul.f32 %v531_v24, %v777_v48 }
 0x259   :  { %408 = vst [vmem:[%s821_s5 + $0x20] sm:$0xff] %v399_v26 }
 0x25a   :  { %v533_v28 = vpop.eup %532  ;;  %412 = vst [vmem:[%s821_s5 + $0x40] sm:$0x3] %v403_v27 }
 0x25b   :  { %v400_v29 = vmul.f32 %v533_v28, %v314_v59 }
 0x25d   :  { %409 = vst [vmem:[%s821_s5 + $0x28] sm:$0xff] %v400_v29 }
 0x25e   :  { %417 = vsyncpa [#allocation3], 1 }
 0x25f   :  { %418 = vsyncpa [#allocation5], 1 }

// kernel: vit3d_forward.19
= control target key start
LH: loop header
LB: loop body
LE: loop exit
PB: predicated region body
PF: predicated region fallthrough
CT: control target
= control target key end

     0   :  { %v661_v0 = vmov 0.0   ;;  %vm662_vm0 = vmmov 0   ;;  %vm84_vm1 = vcmask 261120   ;;  %vm368_vm2 = vcmask 523264   ;;  %s964_s5 = inlined_call_operand.vmem [shape: bf16[32,64], index: 5, kind: input, shape index: {}]   ;;  %s965_s1 = inlined_call_operand.vmem [shape: f32[66,32], index: 1, kind: input, shape index: {}, may-alias: {1,2}]   ;;  %s966_s3 = inlined_call_operand.vmem [shape: bf16[128,32], index: 3, kind: input, shape index: {}]   ;;  %s967_s7 = inlined_call_operand.vmem [shape: bf16[64,32], index: 7, kind: input, shape index: {}]   ;;  %s968_s0 = inlined_call_operand.vmem [shape: f32[66,128], index: 0, kind: input, shape index: {}]   ;;  %s969_s6 = inlined_call_operand.vmem [shape: f32[1,64], index: 6, kind: input, shape index: {}]   ;;  %s970_s4 = inlined_call_operand.vmem [shape: f32[1,32], index: 4, kind: input, shape index: {}]   ;;  %s971_s8 = inlined_call_operand.vmem [shape: f32[1,32], index: 8, kind: input, shape index: {}]   ;;  %s972_s2 = inlined_call_operand.vmem [shape: f32[66,32], index: 2, kind: input, shape index: {}, may-alias: {1,2}]   ;;  %s973_s9 = inlined_call_operand.vmem [shape: f32[66,32], index: 9, kind: output, shape index: {}]  }
   0x1   :  { %553 = vmatprep.subr.bf16.mxu0 %v661_v0  ;;  %v647_v1 = vld [vmem:[%s964_s5 + $0x8] sm:$0xff]   ;;  %557 = vmatprep.mubr.msk.bf16.mxu0 %vm662_vm0, %v661_v0  ;;  %v648_v2 = vld [vmem:[%s964_s5] sm:$0xff]   ;;  %v649_v9 = vld [vmem:[%s966_s3 + $0x38] sm:$0xff]   ;;  %vm491_vm3 = vcmask 254976  }
   0x2   :  { %641 = vmatprep.subr.bf16.mxu1 %v661_v0  ;;  %565 = vmatprep.mubr.msk.bf16.mxu1 %vm662_vm0, %v661_v0  ;;  %v47_v3 = vld [vmem:[%s965_s1] sm:$0xff]  ;;  %v48_v4 = vld [vmem:[%s965_s1 + $0x8] sm:$0xff]  ;;  %v49_v10 = vld [vmem:[%s965_s1 + $0x10] sm:$0xff] }
   0x3   :  { %554 = vmatpush3.bf16.msra.mxu0 %v647_v1  ;;  %643 = vmatpush3.bf16.msra.mxu1 %v647_v1  ;;  %v51_v5 = vld [vmem:[%s965_s1 + $0x20] sm:$0xff]  ;;  %v52_v6 = vld [vmem:[%s965_s1 + $0x28] sm:$0xff]  ;;  %v56_v7 = vpack.c.bf16 %v48_v4, %v47_v3  ;;  %v50_v11 = vld [vmem:[%s965_s1 + $0x18] sm:$0xff] }
   0x4   :  { %555 = vmatprep.subr.bf16.mxu0 %v661_v0  ;;  %642 = vmatprep.subr.bf16.mxu1 %v661_v0  ;;  %v58_v8 = vpack.c.bf16 %v52_v6, %v51_v5  ;;  %v53_v12 = vld [vmem:[%s965_s1 + $0x30] sm:$0xff]  ;;  %v54_v13 = vld [vmem:[%s965_s1 + $0x38] sm:$0xff]  ;;  %v57_v16 = vpack.c.bf16 %v50_v11, %v49_v10  ;;  %v651_v18 = vld [vmem:[%s966_s3 + $0x28] sm:$0xff]  }
   0x5   :  { %v650_v14 = vld [vmem:[%s966_s3 + $0x30] sm:$0xff]   ;;  %v655_v15 = vld [vmem:[%s967_s7 + $0x18] sm:$0xff]   ;;  %v59_v17 = vpack.c.bf16 %v54_v13, %v53_v12  ;;  %v55_v20 = vld [vmem:[%s965_s1 + $0x40] sm:$0x3] }
   0x6   :  { %v657_v19 = vld [vmem:[%s967_s7 + $0x10] sm:$0xff]   ;;  %v652_v21 = vld [vmem:[%s966_s3 + $0x20] sm:$0xff]   ;;  %v60_v22 = vpack.c.bf16 %v55_v20, %v55_v20  ;;  %v653_v23 = vld [vmem:[%s966_s3 + $0x18] sm:$0xff]  }
   0x7   :  { %556 = vmatpush3.bf16.msra.mxu0 %v648_v2  ;;  %644 = vmatpush3.bf16.msra.mxu1 %v648_v2  ;;  %v654_v24 = vld [vmem:[%s966_s3 + $0x10] sm:$0xff]   ;;  %v656_v25 = vld [vmem:[%s966_s3 + $0x8] sm:$0xff]   ;;  %v658_v26 = vld [vmem:[%s966_s3] sm:$0xff]  }
   0x8   :  { %577 = vmatprep.subr.bf16.mxu1 %v661_v0  ;;  %613 = vmatprep.subr.bf16.mxu0 %v661_v0  ;;  %v659_v27 = vld [vmem:[%s967_s7 + $0x8] sm:$0xff]   ;;  %v33_v28 = vld [vmem:[%s968_s0] sm:$0xff]  ;;  %v35_v32 = vld [vmem:[%s968_s0 + $0x10] sm:$0xff] }
   0x9   :  { %v34_v29 = vld [vmem:[%s968_s0 + $0x8] sm:$0xff]  ;;  %v660_v31 = vld [vmem:[%s967_s7] sm:$0xff]   ;;  %v36_v33 = vld [vmem:[%s968_s0 + $0x18] sm:$0xff] }
   0xa   :  { %558 = vmatmul.mubr.msk.bf16.vlgmr.msra.gmra.mxu0 %vm84_vm1, %v56_v7  ;;  %566 = vmatmul.mubr.msk.bf16.vlgmr.msra.gmra.mxu1 %vm84_vm1, %v58_v8  ;;  %v42_v30 = vpack.c.bf16 %v34_v29, %v33_v28  ;;  %v43_v34 = vpack.c.bf16 %v36_v33, %v35_v32  ;;  %v37_v35 = vld [vmem:[%s968_s0 + $0x20] sm:$0xff]  ;;  %v38_v36 = vld [vmem:[%s968_s0 + $0x28] sm:$0xff]  ;;  %v39_v38 = vld [vmem:[%s968_s0 + $0x30] sm:$0xff] }
   0xb   :  { %561 = vmatprep.mubr.msk.bf16.mxu0 %vm662_vm0, %v661_v0  ;;  %569 = vmatprep.mubr.msk.bf16.mxu1 %vm662_vm0, %v661_v0  ;;  %v44_v37 = vpack.c.bf16 %v38_v36, %v37_v35  ;;  %v40_v39 = vld [vmem:[%s968_s0 + $0x38] sm:$0xff]  ;;  %v41_v41 = vld [vmem:[%s968_s0 + $0x40] sm:$0x3] }
   0xc   :  { %578 = vmatpush3.bf16.msra.mxu1 %v649_v9  ;;  %614 = vmatpush3.bf16.msra.mxu0 %v655_v15  ;;  %v45_v40 = vpack.c.bf16 %v40_v39, %v39_v38  ;;  %v46_v42 = vpack.c.bf16 %v41_v41, %v41_v41  ;;  %v497_v43 = vld [vmem:[%s969_s6] ss:$0 sm:$0xff] }
   0xd   :  { %579 = vmatprep.subr.bf16.mxu1 %v661_v0  ;;  %615 = vmatprep.subr.bf16.mxu0 %v661_v0 }
  0x10   :  { %580 = vmatpush3.bf16.msra.mxu1 %v650_v14  ;;  %616 = vmatpush3.bf16.msra.mxu0 %v657_v19 }
  0x11   :  { %581 = vmatprep.subr.bf16.mxu1 %v661_v0  ;;  %617 = vmatprep.subr.bf16.mxu0 %v661_v0 }
  0x12   :  { %562 = vmatmul.mubr.msk.bf16.gmra.mxu0 %vm84_vm1, %v57_v16  ;;  %570 = vmatmul.mubr.msk.bf16.gmra.mxu1 %vm84_vm1, %v59_v17 }
  0x13   :  { %573 = vmatprep.mubr.msk.bf16.mxu1 %vm662_vm0, %v661_v0  ;;  %621 = vmatprep.mubr.msk.bf16.mxu0 %vm662_vm0, %v661_v0 }
  0x14   :  { %582 = vmatpush3.bf16.msra.mxu1 %v651_v18  ;;  %618 = vmatpush3.bf16.msra.mxu0 %v659_v27 }
  0x15   :  { %583 = vmatprep.subr.bf16.mxu1 %v661_v0  ;;  %619 = vmatprep.subr.bf16.mxu0 %v661_v0 }
  0x18   :  { %584 = vmatpush3.bf16.msra.mxu1 %v652_v21  ;;  %620 = vmatpush3.bf16.msra.mxu0 %v660_v31 }
  0x19   :  { %585 = vmatprep.subr.bf16.mxu1 %v661_v0 }
  0x1a   :  { %574 = vmatmul.mubr.msk.bf16.gmra.mxu1 %vm84_vm1, %v60_v22 }
  0x1b   :  { %593 = vmatprep.mubr.msk.bf16.mxu1 %vm662_vm0, %v661_v0 }
  0x1c   :  { %586 = vmatpush3.bf16.msra.mxu1 %v653_v23 }
  0x1d   :  { %587 = vmatprep.subr.bf16.mxu1 %v661_v0 }
  0x20   :  { %588 = vmatpush3.bf16.msra.mxu1 %v654_v24 }
  0x21   :  { %589 = vmatprep.subr.bf16.mxu1 %v661_v0 }
  0x24   :  { %590 = vmatpush3.bf16.msra.mxu1 %v656_v25 }
  0x25   :  { %591 = vmatprep.subr.bf16.mxu1 %v661_v0 }
  0x28   :  { %592 = vmatpush3.bf16.msra.mxu1 %v658_v26 }
  0x2b   :  { %594 = vmatmul.mubr.bf16.vlgmr.msra.gmra.mxu1 %v42_v30 }
  0x2c   :  { %597 = vmatprep.mubr.msk.bf16.mxu1 %vm662_vm0, %v661_v0 }
  0x33   :  { %598 = vmatmul.mubr.bf16.gmra.mxu1 %v43_v34 }
  0x34   :  { %601 = vmatprep.mubr.msk.bf16.mxu1 %vm662_vm0, %v661_v0 }
  0x3b   :  { %602 = vmatmul.mubr.bf16.gmra.mxu1 %v44_v37 }
  0x3c   :  { %605 = vmatprep.mubr.msk.bf16.mxu1 %vm662_vm0, %v661_v0 }
  0x43   :  { %606 = vmatmul.mubr.bf16.gmra.mxu1 %v45_v40 }
  0x44   :  { %609 = vmatprep.mubr.msk.bf16.mxu1 %vm662_vm0, %v661_v0 }
  0x4b   :  { %610 = vmatmul.mubr.bf16.gmra.mxu1 %v46_v42 }
  0xca   :  { %v134_v44 = vpop.f32.mrf.mxu0  ;;  %v150_v45 = vpop.f32.mrf.mxu1 }
  0xcb   :  { %v135_v48 = vadd.f32 %v497_v43, %v134_v44  ;;  %v151_v7 = vadd.f32 %v497_v43, %v150_v45  ;;  %v880_v44 = vld [vmem:[%s971_s8] ss:$0 sm:$0xff] }
  0xcc   :  { %v559_v46 = vpop.f32.mrf.mxu0  ;;  %v567_v47 = vpop.f32.mrf.mxu1 }
  0xcd   :  { %v172_v54 = vmax.f32 %v135_v48, 0.0  ;;  %v176_v12 = vmax.f32 %v151_v7, 0.0  ;;  %v465_v48 = vld [vmem:[%s972_s2] sm:$0xff] }
  0xce   :  { %v137_v49 = vpop.f32.mrf.mxu0  ;;  %v153_v50 = vpop.f32.mrf.mxu1 }
  0xcf   :  { %v138_v51 = vadd.f32 %v497_v43, %v137_v49  ;;  %v154_v9 = vadd.f32 %v497_v43, %v153_v50 }
  0xd0   :  { %v560_v52 = vpop.f32.mrf.mxu0  ;;  %v568_v53 = vpop.f32.mrf.mxu1 }
  0xd1   :  { %v173_v55 = vmax.f32 %v138_v51, 0.0  ;;  %v177_v13 = vmax.f32 %v154_v9, 0.0 }
  0xd2   :  { %v142_v56 = vpop.f32.mrf.mxu0  ;;  %v158_v57 = vpop.f32.mrf.mxu1 }
  0xd3   :  { %v324_v58 = vpack.c.bf16 %v173_v55, %v172_v54  ;;  %v143_v61 = vadd.f32 %v497_v43, %v142_v56  ;;  %v326_v15 = vpack.c.bf16 %v177_v13, %v176_v12  ;;  %v159_v16 = vadd.f32 %v497_v43, %v158_v57  ;;  %v466_v55 = vld [vmem:[%s972_s2 + $0x8] sm:$0xff]  ;;  %v469_v13 = vld [vmem:[%s972_s2 + $0x20] sm:$0xff] }
  0xd4   :  { %v563_v59 = vpop.f32.mrf.mxu0  ;;  %v571_v60 = vpop.f32.mrf.mxu1 }
  0xd5   :  { %622 = vmatmul.mubr.msk.bf16.vlgmr.msra.gmra.mxu0 %vm368_vm2, %v324_v58  ;;  %v174_v4 = vmax.f32 %v143_v61, 0.0  ;;  %v178_v18 = vmax.f32 %v159_v16, 0.0 }
  0xd6   :  { %v145_v62 = vpop.f32.mrf.mxu0  ;;  %625 = vmatprep.mubr.msk.bf16.mxu0 %vm662_vm0, %v661_v0  ;;  %v161_v63 = vpop.f32.mrf.mxu1 }
  0xd7   :  { %v146_v1 = vadd.f32 %v497_v43, %v145_v62  ;;  %v162_v17 = vadd.f32 %v497_v43, %v161_v63  ;;  %v467_v62 = vld [vmem:[%s972_s2 + $0x10] sm:$0xff] }
  0xd8   :  { %v564_v2 = vpop.f32.mrf.mxu0  ;;  %v572_v3 = vpop.f32.mrf.mxu1 }
  0xd9   :  { %v175_v5 = vmax.f32 %v146_v1, 0.0  ;;  %v179_v19 = vmax.f32 %v162_v17, 0.0 }
  0xda   :  { %v166_v6 = vpop.f32.mrf.mxu1 }
  0xdb   :  { %v325_v8 = vpack.c.bf16 %v175_v5, %v174_v4  ;;  %v167_v20 = vadd.f32 %v497_v43, %v166_v6  ;;  %v327_v21 = vpack.c.bf16 %v179_v19, %v178_v18  ;;  %v875_v43 = vld [vmem:[%s970_s4] ss:$0 sm:$0xff]  ;;  %v468_v6 = vld [vmem:[%s972_s2 + $0x18] sm:$0xff] }
  0xdc   :  { %v575_v10 = vpop.f32.mrf.mxu1 }
  0xdd   :  { %626 = vmatmul.mubr.msk.bf16.gmra.mxu0 %vm368_vm2, %v325_v8  ;;  %v180_v22 = vmax.f32 %v167_v20, 0.0  ;;  %v470_v20 = vld [vmem:[%s972_s2 + $0x28] sm:$0xff] }
  0xde   :  { %629 = vmatprep.mubr.msk.bf16.mxu0 %vm662_vm0, %v661_v0  ;;  %v169_v11 = vpop.f32.mrf.mxu1 }
  0xdf   :  { %v328_v23 = vpack.c.bf16 %v180_v22, %v180_v22 }
  0xe0   :  { %v576_v14 = vpop.f32.mrf.mxu1 }
  0xe5   :  { %630 = vmatmul.mubr.msk.bf16.gmra.mxu0 %vm368_vm2, %v326_v15 }
  0xe6   :  { %633 = vmatprep.mubr.msk.bf16.mxu0 %vm662_vm0, %v661_v0 }
  0xeb   :  { %v286_v24 = vpop.f32.mrf.mxu1 }
  0xec   :  { %v287_v45 = vadd.f32 %v875_v43, %v286_v24 }
  0xed   :  { %634 = vmatmul.mubr.msk.bf16.gmra.mxu0 %vm368_vm2, %v327_v21  ;;  %v595_v25 = vpop.f32.mrf.mxu1 }
  0xee   :  { %637 = vmatprep.mubr.msk.bf16.mxu0 %vm662_vm0, %v661_v0 }
  0xef   :  { %v289_v26 = vpop.f32.mrf.mxu1 }
  0xf0   :  { %v290_v52 = vadd.f32 %v875_v43, %v289_v26 }
  0xf1   :  { %v596_v27 = vpop.f32.mrf.mxu1 }
  0xf2   :  { %v471_v27 = vld [vmem:[%s972_s2 + $0x30] sm:$0xff] }
  0xf3   :  { %v294_v28 = vpop.f32.mrf.mxu1 }
  0xf4   :  { %v295_v57 = vadd.f32 %v875_v43, %v294_v28 }
  0xf5   :  { %638 = vmatmul.mubr.msk.bf16.gmra.mxu0 %vm368_vm2, %v328_v23  ;;  %v599_v29 = vpop.f32.mrf.mxu1 }
  0xf7   :  { %v297_v30 = vpop.f32.mrf.mxu1 }
  0xf8   :  { %v298_v3 = vadd.f32 %v875_v43, %v297_v30 }
  0xf9   :  { %v600_v31 = vpop.f32.mrf.mxu1 }
  0xfb   :  { %v302_v32 = vpop.f32.mrf.mxu1 }
  0xfc   :  { %v303_v8 = vadd.f32 %v875_v43, %v302_v32 }
  0xfd   :  { %v603_v33 = vpop.f32.mrf.mxu1 }
  0xff   :  { %v305_v34 = vpop.f32.mrf.mxu1 }
 0x100   :  { %v306_v17 = vadd.f32 %v875_v43, %v305_v34  ;;  %v472_v34 = vld [vmem:[%s972_s2 + $0x38] sm:$0xff] }
 0x101   :  { %v604_v35 = vpop.f32.mrf.mxu1 }
 0x103   :  { %v310_v36 = vpop.f32.mrf.mxu1 }
 0x104   :  { %v311_v22 = vadd.f32 %v875_v43, %v310_v36 }
 0x105   :  { %v607_v37 = vpop.f32.mrf.mxu1 }
 0x107   :  { %v868_v38 = vpop.f32.mrf.mxu1 }
 0x108   :  { %v314_v31 = vadd.f32 %v875_v43, %v868_v38 }
 0x109   :  { %v608_v0 = vpop.f32.mrf.mxu1 }
 0x10b   :  { %v870_v39 = vpop.f32.mrf.mxu1 }
 0x10c   :  { %v319_v36 = vadd.f32 %v875_v43, %v870_v39 }
 0x10d   :  { %v611_v40 = vpop.f32.mrf.mxu1 }
 0x10f   :  { %v321_v41 = vpop.f32.mrf.mxu1 }
 0x110   :  { %v473_v41 = vld [vmem:[%s972_s2 + $0x40] sm:$0x3] }
 0x111   :  { %v612_v42 = vpop.f32.mrf.mxu1 }
 0x195   :  { %v418_v46 = vpop.f32.mrf.mxu0 }
 0x196   :  { %v419_v47 = vadd.f32 %v880_v44, %v418_v46 }
 0x197   :  { %v623_v49 = vpop.f32.mrf.mxu0 }
 0x198   :  { %v456_v50 = vadd.f32 %v419_v47, %v287_v45 }
 0x199   :  { %v421_v51 = vpop.f32.mrf.mxu0 }
 0x19a   :  { %v474_v53 = vadd.f32 %v465_v48, %v456_v50  ;;  %v422_v54 = vadd.f32 %v880_v44, %v421_v51 }
 0x19b   :  { %v624_v56 = vpop.f32.mrf.mxu0 }
 0x19c   :  { %483 = vst.msk [vmem:[%s973_s9] sm:$0xff] %vm84_vm1, %v474_v53  ;;  %v457_v58 = vadd.f32 %v422_v54, %v290_v52 }
 0x19d   :  { %v426_v59 = vpop.f32.mrf.mxu0 }
 0x19e   :  { %v475_v60 = vadd.f32 %v466_v55, %v457_v58  ;;  %v427_v61 = vadd.f32 %v880_v44, %v426_v59 }
 0x19f   :  { %v627_v63 = vpop.f32.mrf.mxu0 }
 0x1a0   :  { %484 = vst.msk [vmem:[%s973_s9 + $0x8] sm:$0xff] %vm84_vm1, %v475_v60  ;;  %v458_v1 = vadd.f32 %v427_v61, %v295_v57 }
 0x1a1   :  { %v429_v2 = vpop.f32.mrf.mxu0 }
 0x1a2   :  { %v476_v4 = vadd.f32 %v467_v62, %v458_v1  ;;  %v430_v5 = vadd.f32 %v880_v44, %v429_v2 }
 0x1a3   :  { %v628_v7 = vpop.f32.mrf.mxu0 }
 0x1a4   :  { %485 = vst.msk [vmem:[%s973_s9 + $0x10] sm:$0xff] %vm84_vm1, %v476_v4  ;;  %v459_v9 = vadd.f32 %v430_v5, %v298_v3 }
 0x1a5   :  { %v434_v10 = vpop.f32.mrf.mxu0 }
 0x1a6   :  { %v477_v11 = vadd.f32 %v468_v6, %v459_v9  ;;  %v435_v12 = vadd.f32 %v880_v44, %v434_v10 }
 0x1a7   :  { %v631_v14 = vpop.f32.mrf.mxu0 }
 0x1a8   :  { %486 = vst.msk [vmem:[%s973_s9 + $0x18] sm:$0xff] %vm84_vm1, %v477_v11  ;;  %v460_v15 = vadd.f32 %v435_v12, %v303_v8 }
 0x1a9   :  { %v437_v16 = vpop.f32.mrf.mxu0 }
 0x1aa   :  { %v478_v18 = vadd.f32 %v469_v13, %v460_v15  ;;  %v438_v19 = vadd.f32 %v880_v44, %v437_v16 }
 0x1ab   :  { %v632_v21 = vpop.f32.mrf.mxu0 }
 0x1ac   :  { %487 = vst.msk [vmem:[%s973_s9 + $0x20] sm:$0xff] %vm84_vm1, %v478_v18  ;;  %v461_v23 = vadd.f32 %v438_v19, %v306_v17 }
 0x1ad   :  { %v442_v24 = vpop.f32.mrf.mxu0 }
 0x1ae   :  { %v479_v25 = vadd.f32 %v470_v20, %v461_v23  ;;  %v443_v26 = vadd.f32 %v880_v44, %v442_v24 }
 0x1af   :  { %v635_v28 = vpop.f32.mrf.mxu0 }
 0x1b0   :  { %488 = vst.msk [vmem:[%s973_s9 + $0x28] sm:$0xff] %vm84_vm1, %v479_v25  ;;  %v462_v29 = vadd.f32 %v443_v26, %v311_v22 }
 0x1b1   :  { %v445_v30 = vpop.f32.mrf.mxu0 }
 0x1b2   :  { %v480_v32 = vadd.f32 %v471_v27, %v462_v29  ;;  %v446_v33 = vadd.f32 %v880_v44, %v445_v30 }
 0x1b3   :  { %v636_v35 = vpop.f32.mrf.mxu0 }
 0x1b4   :  { %489 = vst.msk [vmem:[%s973_s9 + $0x30] sm:$0xff] %vm84_vm1, %v480_v32  ;;  %v463_v37 = vadd.f32 %v446_v33, %v314_v31 }
 0x1b5   :  { %v450_v0 = vpop.f32.mrf.mxu0 }
 0x1b6   :  { %v481_v40 = vadd.f32 %v472_v34, %v463_v37  ;;  %v451_v38 = vadd.f32 %v880_v44, %v450_v0 }
 0x1b7   :  { %v639_v42 = vpop.f32.mrf.mxu0 }
 0x1b8   :  { %490 = vst.msk [vmem:[%s973_s9 + $0x38] sm:$0xff] %vm84_vm1, %v481_v40  ;;  %v464_v45 = vadd.f32 %v451_v38, %v319_v36 }
 0x1b9   :  { %v453_v46 = vpop.f32.mrf.mxu0 }
 0x1ba   :  { %v482_v47 = vadd.f32 %v473_v41, %v464_v45 }
 0x1bb   :  { %v640_v39 = vpop.f32.mrf.mxu0 }
 0x1bc   :  { %492 = vst.msk [vmem:[%s973_s9 + $0x40] sm:$0x3] %vm491_vm3, %v482_v47 }

// kernel: vit3d_forward.23
= control target key start
LH: loop header
LB: loop body
LE: loop exit
PB: predicated region body
PF: predicated region fallthrough
CT: control target
= control target key end

     0   :  { %10 = vsyncpa [#allocation3], 0  ;;  %s783_s0 = inlined_call_operand.vmem [shape: f32[66,32], index: 0, kind: input, shape index: {}]   ;;  %s784_s1 = inlined_call_operand.vmem [shape: f32[1,32], index: 1, kind: input, shape index: {}]   ;;  %s785_s2 = inlined_call_operand.hbm [shape: f32[1,32], index: 2, kind: input, shape index: {}]   ;;  %s786_s3 = inlined_call_operand.vmem [shape: bf16[32,128], index: 3, kind: input, shape index: {}]   ;;  %s787_s4 = inlined_call_operand.hbm [shape: f32[1,128], index: 4, kind: input, shape index: {}]   ;;  %s788_s5 = inlined_call_operand.vmem [shape: f32[66,128], index: 5, kind: output, shape index: {}]  }
   0x1   :  { %11 = vsyncpa [#allocation5], 0  ;;  %s566_s18 = smov [#allocation2]   ;;  %s567_s20 = smov [#allocation4]  }
   0x2   :  { %s22_s19 = sshll.u32 %s566_s18, 4  ;;  %s34_s21 = sshll.u32 %s567_s20, 4  ;;  %s23_s19 = int_to_ptr.vmem [resolvable:$true] %s22_s19  ;;  %s35_s21 = int_to_ptr.vmem [resolvable:$true] %s34_s21 }
   0x3   :  { %s530_s22 = scalar_lea.vmem %s23_s19, 16  ;;  %s534_s23 = scalar_lea.vmem %s23_s19, 32 }
   0x4   :  { %p531_p0 = scmp.ne.s32.totalorder %s23_s19, %s530_s22  ;;  %p535_p1 = scmp.lt.s32.totalorder %s23_s19, %s23_s19 }
   0x5   :  { %p536_p2 = scmp.lt.s32.totalorder %s534_s23, %s530_s22 }
   0x7   :  { %p537_p3 = por %p536_p2, %p535_p1 }
   0x9   :  { %p538_p4 = pnand %p537_p3, %p531_p0 }
   0xb   :  { %541 = shalt.err (!%p538_p4)
}
   0xc   :  { %25 = dma.hbm_to_vmem [thread:$0]  %s785_s2, 16, %s23_s19, [#allocation3]  }
   0xd   :  { %s550_s26 = scalar_lea.vmem %s35_s21, 16  ;;  %s554_s27 = scalar_lea.vmem %s35_s21, 32 }
   0xe   :  { %p551_p5 = scmp.ne.s32.totalorder %s35_s21, %s550_s26  ;;  %p555_p6 = scmp.lt.s32.totalorder %s35_s21, %s35_s21 }
   0xf   :  { %p556_p7 = scmp.lt.s32.totalorder %s554_s27, %s550_s26 }
  0x11   :  { %p557_p8 = por %p556_p7, %p555_p6 }
  0x13   :  { %p558_p9 = pnand %p557_p8, %p551_p5 }
  0x15   :  { %561 = shalt.err (!%p558_p9)
}
  0x16   :  { %37 = dma.hbm_to_vmem [thread:$0]  %s787_s4, 16, %s35_s21, [#allocation5]  }
  0x17   :  { %562 = dma.done.wait [#allocation3], 16  }
  0x18   :  { %563 = vsyncadd [#allocation3], 4294967280 }
  0x19   :  { %564 = dma.done.wait [#allocation5], 16  }
  0x1a   :  { %565 = vsyncadd [#allocation5], 4294967280  ;;  %vm56_vm0 = vcmask 261120   ;;  %v45_v0 = vld [vmem:[%s783_s0] sm:$0xff]  ;;  %v47_v1 = vld [vmem:[%s783_s0 + $0x10] sm:$0xff]  ;;  %vm81_vm1 = vcmask 254976  }
  0x1b   :  { %v46_v2 = vld [vmem:[%s783_s0 + $0x8] sm:$0xff]  ;;  %v57_v3 = vsel %vm56_vm0, %v45_v0, 0.0  ;;  %v63_v4 = vsel %vm56_vm0, %v47_v1, 0.0  ;;  %v48_v5 = vld [vmem:[%s783_s0 + $0x18] sm:$0xff]  ;;  %v51_v8 = vld [vmem:[%s783_s0 + $0x30] sm:$0xff]  ;;  %vm569_vm2 = vmmov 0  }
  0x1c   :  { %58 = vadd.xlane.f32.xlu0 %v57_v3  ;;  %64 = vadd.xlane.f32.xlu1 %v63_v4  ;;  %v60_v6 = vsel %vm56_vm0, %v46_v2, 0.0  ;;  %v66_v7 = vsel %vm56_vm0, %v48_v5, 0.0  ;;  %v52_v9 = vld [vmem:[%s783_s0 + $0x38] sm:$0xff]  ;;  %v75_v10 = vsel %vm56_vm0, %v51_v8, 0.0  ;;  %v49_v12 = vld [vmem:[%s783_s0 + $0x20] sm:$0xff]  ;;  %v50_v13 = vld [vmem:[%s783_s0 + $0x28] sm:$0xff] }
  0x1d   :  { %v78_v11 = vsel %vm56_vm0, %v52_v9, 0.0  ;;  %v69_v14 = vsel %vm56_vm0, %v49_v12, 0.0  ;;  %v72_v15 = vsel %vm56_vm0, %v50_v13, 0.0  ;;  %v53_v16 = vld [vmem:[%s783_s0 + $0x40] sm:$0x3]  ;;  %v466_v63 = vld [vmem:[%s786_s3 + $0x8] sm:$0xff]  }
  0x1e   :  { %v82_v17 = vsel %vm81_vm1, %v53_v16, 0.0 }
  0x20   :  { %61 = vadd.xlane.f32.xlu0 %v60_v6  ;;  %67 = vadd.xlane.f32.xlu1 %v66_v7 }
  0x24   :  { %76 = vadd.xlane.f32.xlu0 %v75_v10  ;;  %79 = vadd.xlane.f32.xlu1 %v78_v11 }
  0x28   :  { %70 = vadd.xlane.f32.xlu0 %v69_v14  ;;  %73 = vadd.xlane.f32.xlu1 %v72_v15 }
  0x2c   :  { %83 = vadd.xlane.f32.xlu0 %v82_v17 }
  0xa5   :  { %v59_v18 = vpop.xlane.xlu0 %58  ;;  %v65_v19 = vpop.xlane.xlu1 %64 }
  0xa6   :  { %v86_v20 = vmul.f32 0.03125, %v59_v18  ;;  %v88_v21 = vmul.f32 0.03125, %v65_v19 }
  0xa8   :  { %v642_v22 = vsub.f32 %v45_v0, %v86_v20  ;;  %v644_v23 = vsub.f32 %v47_v1, %v88_v21  ;;  %v568_v0 = vmov 0.0   ;;  %v467_v1 = vld [vmem:[%s786_s3] sm:$0xff]  }
  0xa9   :  { %v62_v24 = vpop.xlane.xlu0 %61  ;;  %v68_v25 = vpop.xlane.xlu1 %67  ;;  %434 = vmatprep.subr.bf16.mxu0 %v568_v0  ;;  %438 = vmatprep.mubr.msk.bf16.mxu0 %vm569_vm2, %v568_v0 }
  0xaa   :  { %v87_v26 = vmul.f32 0.03125, %v62_v24  ;;  %v89_v27 = vmul.f32 0.03125, %v68_v25  ;;  %v104_v28 = vmul.f32 %v642_v22, %v642_v22  ;;  %v106_v29 = vmul.f32 %v644_v23, %v644_v23  ;;  %435 = vmatpush3.bf16.msra.mxu0 %v466_v63  ;;  %458 = vmatprep.subr.bf16.mxu1 %v568_v0 }
  0xab   :  { %436 = vmatprep.subr.bf16.mxu0 %v568_v0  ;;  %460 = vmatpush3.bf16.msra.mxu1 %v466_v63 }
  0xac   :  { %v650_v30 = vsub.f32 %v46_v2, %v87_v26  ;;  %v652_v31 = vsub.f32 %v48_v5, %v89_v27  ;;  %v113_v32 = vsel %vm56_vm0, %v104_v28, 0.0  ;;  %v119_v35 = vsel %vm56_vm0, %v106_v29, 0.0  ;;  %459 = vmatprep.subr.bf16.mxu1 %v568_v0  ;;  %450 = vmatprep.mubr.msk.bf16.mxu1 %vm569_vm2, %v568_v0 }
  0xad   :  { %114 = vadd.xlane.f32.xlu1 %v113_v32  ;;  %v77_v33 = vpop.xlane.xlu0 %76  ;;  %v80_v34 = vpop.xlane.xlu1 %79 }
  0xae   :  { %v92_v36 = vmul.f32 0.03125, %v77_v33  ;;  %v93_v37 = vmul.f32 0.03125, %v80_v34  ;;  %v105_v38 = vmul.f32 %v650_v30, %v650_v30  ;;  %v107_v39 = vmul.f32 %v652_v31, %v652_v31  ;;  %437 = vmatpush3.bf16.msra.mxu0 %v467_v1 }
  0xaf   :  { %461 = vmatpush3.bf16.msra.mxu1 %v467_v1 }
  0xb0   :  { %v660_v40 = vsub.f32 %v51_v8, %v92_v36  ;;  %v662_v41 = vsub.f32 %v52_v9, %v93_v37  ;;  %v116_v42 = vsel %vm56_vm0, %v105_v38, 0.0  ;;  %v122_v45 = vsel %vm56_vm0, %v107_v39, 0.0 }
  0xb1   :  { %120 = vadd.xlane.f32.xlu1 %v119_v35  ;;  %117 = vadd.xlane.f32.xlu0 %v116_v42  ;;  %v71_v43 = vpop.xlane.xlu0 %70  ;;  %v74_v44 = vpop.xlane.xlu1 %73  ;;  %v408_v35 = vld [vmem:[%s784_s1] ss:$0 sm:$0xff] }
  0xb2   :  { %v90_v46 = vmul.f32 0.03125, %v71_v43  ;;  %v91_v47 = vmul.f32 0.03125, %v74_v44  ;;  %v110_v48 = vmul.f32 %v660_v40, %v660_v40  ;;  %v111_v49 = vmul.f32 %v662_v41, %v662_v41  ;;  %v409_v42 = vld [vmem:[#allocation2] ss:$0 sm:$0xff] }
  0xb4   :  { %v670_v50 = vsub.f32 %v49_v12, %v90_v46  ;;  %v672_v51 = vsub.f32 %v50_v13, %v91_v47  ;;  %v131_v52 = vsel %vm56_vm0, %v110_v48, 0.0  ;;  %v134_v55 = vsel %vm56_vm0, %v111_v49, 0.0 }
  0xb5   :  { %123 = vadd.xlane.f32.xlu0 %v122_v45  ;;  %132 = vadd.xlane.f32.xlu1 %v131_v52  ;;  %v84_v53 = vpop.xlane.xlu0 %83 }
  0xb6   :  { %v94_v54 = vmul.f32 0.03125, %v84_v53  ;;  %v108_v56 = vmul.f32 %v670_v50, %v670_v50  ;;  %v109_v57 = vmul.f32 %v672_v51, %v672_v51 }
  0xb8   :  { %v680_v58 = vsub.f32 %v53_v16, %v94_v54  ;;  %v125_v59 = vsel %vm56_vm0, %v108_v56, 0.0  ;;  %v128_v60 = vsel %vm56_vm0, %v109_v57, 0.0 }
  0xb9   :  { %135 = vadd.xlane.f32.xlu0 %v134_v55  ;;  %126 = vadd.xlane.f32.xlu1 %v125_v59 }
  0xba   :  { %v112_v61 = vmul.f32 %v680_v58, %v680_v58 }
  0xbc   :  { %v137_v62 = vsel %vm81_vm1, %v112_v61, 0.0 }
  0xbd   :  { %129 = vadd.xlane.f32.xlu0 %v128_v60  ;;  %138 = vadd.xlane.f32.xlu1 %v137_v62 }
 0x136   :  { %v115_v2 = vpop.xlane.xlu1 %114 }
 0x137   :  { %v140_v3 = vmul.f32 0.03125, %v115_v2 }
 0x139   :  { %v149_v4 = vadd.f32 1e-05, %v140_v3 }
 0x13a   :  { %v121_v5 = vpop.xlane.xlu1 %120  ;;  %v118_v6 = vpop.xlane.xlu0 %117 }
 0x13b   :  { %468 = vrsqrt.f32 %v149_v4  ;;  %v142_v7 = vmul.f32 0.03125, %v121_v5  ;;  %v141_v8 = vmul.f32 0.03125, %v118_v6 }
 0x13d   :  { %v151_v9 = vadd.f32 1e-05, %v142_v7  ;;  %v150_v10 = vadd.f32 1e-05, %v141_v8 }
 0x13e   :  { %v133_v11 = vpop.xlane.xlu1 %132  ;;  %v124_v12 = vpop.xlane.xlu0 %123 }
 0x13f   :  { %v146_v13 = vmul.f32 0.03125, %v133_v11  ;;  %v143_v14 = vmul.f32 0.03125, %v124_v12  ;;  %470 = vrsqrt.f32 %v150_v10 }
 0x140   :  { %472 = vrsqrt.f32 %v151_v9  ;;  %v410_v9 = vld [vmem:[#allocation4] ss:$0 sm:$0xff] }
 0x141   :  { %v155_v15 = vadd.f32 1e-05, %v146_v13  ;;  %v152_v16 = vadd.f32 1e-05, %v143_v14 }
 0x142   :  { %v127_v17 = vpop.xlane.xlu1 %126  ;;  %v136_v18 = vpop.xlane.xlu0 %135 }
 0x143   :  { %474 = vrsqrt.f32 %v155_v15  ;;  %v144_v19 = vmul.f32 0.03125, %v127_v17  ;;  %v147_v20 = vmul.f32 0.03125, %v136_v18 }
 0x144   :  { %476 = vrsqrt.f32 %v152_v16 }
 0x145   :  { %v156_v21 = vadd.f32 1e-05, %v147_v20  ;;  %v153_v24 = vadd.f32 1e-05, %v144_v19 }
 0x146   :  { %v139_v25 = vpop.xlane.xlu1 %138  ;;  %v130_v26 = vpop.xlane.xlu0 %129 }
 0x147   :  { %v148_v27 = vmul.f32 0.03125, %v139_v25  ;;  %v145_v28 = vmul.f32 0.03125, %v130_v26  ;;  %478 = vrsqrt.f32 %v156_v21 }
 0x148   :  { %v469_v29 = vpop.eup %468  ;;  %480 = vrsqrt.f32 %v153_v24 }
 0x149   :  { %v157_v32 = vadd.f32 1e-05, %v148_v27  ;;  %v154_v33 = vadd.f32 1e-05, %v145_v28  ;;  %v167_v34 = vmul.f32 %v469_v29, %v642_v22 }
 0x14b   :  { %482 = vrsqrt.f32 %v157_v32  ;;  %v182_v39 = vmul.f32 %v408_v35, %v167_v34 }
 0x14c   :  { %484 = vrsqrt.f32 %v154_v33  ;;  %v471_v36 = vpop.eup %470 }
 0x14d   :  { %v473_v37 = vpop.eup %472  ;;  %v168_v38 = vmul.f32 %v471_v36, %v650_v30  ;;  %v197_v47 = vadd.f32 %v409_v42, %v182_v39 }
 0x14e   :  { %v169_v46 = vmul.f32 %v473_v37, %v644_v23 }
 0x14f   :  { %v183_v44 = vmul.f32 %v408_v35, %v168_v38 }
 0x150   :  { %v475_v43 = vpop.eup %474  ;;  %v184_v55 = vmul.f32 %v408_v35, %v169_v46 }
 0x151   :  { %v477_v45 = vpop.eup %476  ;;  %v198_v48 = vadd.f32 %v409_v42, %v183_v44  ;;  %v173_v49 = vmul.f32 %v475_v43, %v660_v40 }
 0x152   :  { %v170_v22 = vmul.f32 %v477_v45, %v652_v31  ;;  %v199_v31 = vadd.f32 %v409_v42, %v184_v55 }
 0x153   :  { %v206_v52 = vpack.c.bf16 %v198_v48, %v197_v47  ;;  %v188_v56 = vmul.f32 %v408_v35, %v173_v49 }
 0x154   :  { %v185_v53 = vmul.f32 %v408_v35, %v170_v22  ;;  %v479_v54 = vpop.eup %478 }
 0x155   :  { %439 = vmatmul.mubr.msk.bf16.vlgmr.msra.gmra.mxu0 %vm56_vm0, %v206_v52  ;;  %v174_v30 = vmul.f32 %v479_v54, %v662_v41  ;;  %v481_v57 = vpop.eup %480  ;;  %v203_v62 = vadd.f32 %v409_v42, %v188_v56 }
 0x156   :  { %442 = vmatprep.mubr.msk.bf16.mxu0 %vm569_vm2, %v568_v0  ;;  %v200_v59 = vadd.f32 %v409_v42, %v185_v53  ;;  %v171_v1 = vmul.f32 %v481_v57, %v670_v50 }
 0x157   :  { %v189_v60 = vmul.f32 %v408_v35, %v174_v30 }
 0x158   :  { %v483_v23 = vpop.eup %482  ;;  %v207_v3 = vpack.c.bf16 %v200_v59, %v199_v31  ;;  %v186_v6 = vmul.f32 %v408_v35, %v171_v1 }
 0x159   :  { %v485_v61 = vpop.eup %484  ;;  %v175_v40 = vmul.f32 %v483_v23, %v680_v58  ;;  %v204_v63 = vadd.f32 %v409_v42, %v189_v60 }
 0x15a   :  { %v172_v2 = vmul.f32 %v485_v61, %v672_v51  ;;  %v201_v50 = vadd.f32 %v409_v42, %v186_v6 }
 0x15b   :  { %v209_v41 = vpack.c.bf16 %v204_v63, %v203_v62  ;;  %v190_v5 = vmul.f32 %v408_v35, %v175_v40 }
 0x15c   :  { %v187_v4 = vmul.f32 %v408_v35, %v172_v2 }
 0x15d   :  { %443 = vmatmul.mubr.msk.bf16.gmra.mxu0 %vm56_vm0, %v207_v3  ;;  %451 = vmatmul.mubr.msk.bf16.vlgmr.msra.gmra.mxu1 %vm56_vm0, %v209_v41  ;;  %v205_v7 = vadd.f32 %v409_v42, %v190_v5 }
 0x15e   :  { %446 = vmatprep.mubr.msk.bf16.mxu0 %vm569_vm2, %v568_v0  ;;  %454 = vmatprep.mubr.msk.bf16.mxu1 %vm569_vm2, %v568_v0  ;;  %v202_v58 = vadd.f32 %v409_v42, %v187_v4 }
 0x15f   :  { %v210_v51 = vpack.c.bf16 %v205_v7, %v205_v7 }
 0x160   :  { %v208_v8 = vpack.c.bf16 %v202_v58, %v201_v50 }
 0x165   :  { %447 = vmatmul.mubr.msk.bf16.gmra.mxu0 %vm56_vm0, %v208_v8  ;;  %455 = vmatmul.mubr.msk.bf16.gmra.mxu1 %vm56_vm0, %v210_v51 }
 0x215   :  { %v283_v10 = vpop.f32.mrf.mxu0 }
 0x216   :  { %v724_v11 = vadd.f32 %v410_v9, %v283_v10 }
 0x217   :  { %v440_v12 = vpop.f32.mrf.mxu0 }
 0x218   :  { %v418_v13 = vmul.f32 -1.702, %v724_v11 }
 0x219   :  { %v286_v14 = vpop.f32.mrf.mxu0 }
 0x21a   :  { %v339_v15 = vmul.f32 1.442695, %v418_v13  ;;  %v727_v16 = vadd.f32 %v410_v9, %v286_v14 }
 0x21b   :  { %v441_v0 = vpop.f32.mrf.mxu0 }
 0x21c   :  { %486 = vpow2.f32 %v339_v15  ;;  %v419_v17 = vmul.f32 -1.702, %v727_v16 }
 0x21d   :  { %v291_v18 = vpop.f32.mrf.mxu0  ;;  %v307_v19 = vpop.f32.mrf.mxu1 }
 0x21e   :  { %v341_v20 = vmul.f32 1.442695, %v419_v17  ;;  %v730_v21 = vadd.f32 %v410_v9, %v291_v18  ;;  %v732_v24 = vadd.f32 %v410_v9, %v307_v19 }
 0x21f   :  { %v444_v25 = vpop.f32.mrf.mxu0  ;;  %v452_v26 = vpop.f32.mrf.mxu1 }
 0x220   :  { %488 = vpow2.f32 %v341_v20  ;;  %v420_v27 = vmul.f32 -1.702, %v730_v21  ;;  %v424_v28 = vmul.f32 -1.702, %v732_v24 }
 0x221   :  { %v294_v29 = vpop.f32.mrf.mxu0  ;;  %v310_v32 = vpop.f32.mrf.mxu1 }
 0x222   :  { %v343_v33 = vmul.f32 1.442695, %v420_v27  ;;  %v351_v34 = vmul.f32 1.442695, %v424_v28  ;;  %v736_v35 = vadd.f32 %v410_v9, %v294_v29  ;;  %v738_v36 = vadd.f32 %v410_v9, %v310_v32 }
 0x223   :  { %v445_v37 = vpop.f32.mrf.mxu0  ;;  %v453_v38 = vpop.f32.mrf.mxu1 }
 0x224   :  { %490 = vpow2.f32 %v343_v33  ;;  %v421_v39 = vmul.f32 -1.702, %v736_v35  ;;  %v425_v42 = vmul.f32 -1.702, %v738_v36 }
 0x225   :  { %492 = vpow2.f32 %v351_v34  ;;  %v299_v43 = vpop.f32.mrf.mxu0  ;;  %v315_v44 = vpop.f32.mrf.mxu1 }
 0x226   :  { %v345_v45 = vmul.f32 1.442695, %v421_v39  ;;  %v353_v46 = vmul.f32 1.442695, %v425_v42  ;;  %v742_v47 = vadd.f32 %v410_v9, %v299_v43  ;;  %v744_v48 = vadd.f32 %v410_v9, %v315_v44 }
 0x227   :  { %v448_v22 = vpop.f32.mrf.mxu0  ;;  %v456_v49 = vpop.f32.mrf.mxu1 }
 0x228   :  { %494 = vpow2.f32 %v345_v45  ;;  %v422_v52 = vmul.f32 -1.702, %v742_v47  ;;  %v426_v53 = vmul.f32 -1.702, %v744_v48 }
 0x229   :  { %v487_v54 = vpop.eup %486  ;;  %496 = vpow2.f32 %v353_v46  ;;  %v302_v55 = vpop.f32.mrf.mxu0 }
 0x22a   :  { %v318_v30 = vpop.f32.mrf.mxu1  ;;  %v357_v56 = vadd.f32 1.0, %v487_v54  ;;  %v347_v57 = vmul.f32 1.442695, %v422_v52  ;;  %v355_v23 = vmul.f32 1.442695, %v426_v53  ;;  %v303_v59 = vadd.f32 %v410_v9, %v302_v55 }
 0x22b   :  { %v449_v60 = vpop.f32.mrf.mxu0 }
 0x22c   :  { %v457_v61 = vpop.f32.mrf.mxu1  ;;  %498 = vrcp.f32 %v357_v56  ;;  %v423_v31 = vmul.f32 -1.702, %v303_v59 }
 0x22d   :  { %v489_v40 = vpop.eup %488  ;;  %500 = vpow2.f32 %v347_v57 }
 0x22e   :  { %v358_v62 = vadd.f32 1.0, %v489_v40  ;;  %502 = vpow2.f32 %v355_v23  ;;  %v349_v63 = vmul.f32 1.442695, %v423_v31 }
 0x230   :  { %504 = vrcp.f32 %v358_v62 }
 0x231   :  { %v491_v1 = vpop.eup %490  ;;  %506 = vpow2.f32 %v349_v63 }
 0x232   :  { %v493_v2 = vpop.eup %492  ;;  %v359_v3 = vadd.f32 1.0, %v491_v1 }
 0x233   :  { %v363_v41 = vadd.f32 1.0, %v493_v2 }
 0x234   :  { %508 = vrcp.f32 %v359_v3 }
 0x235   :  { %v495_v4 = vpop.eup %494  ;;  %510 = vrcp.f32 %v363_v41 }
 0x236   :  { %v497_v5 = vpop.eup %496  ;;  %v360_v6 = vadd.f32 1.0, %v495_v4 }
 0x237   :  { %v364_v58 = vadd.f32 1.0, %v497_v5 }
 0x238   :  { %512 = vrcp.f32 %v360_v6 }
 0x239   :  { %v499_v7 = vpop.eup %498  ;;  %514 = vrcp.f32 %v364_v58 }
 0x23a   :  { %v501_v50 = vpop.eup %500  ;;  %v384_v8 = vmul.f32 %v499_v7, %v724_v11 }
 0x23b   :  { %v503_v51 = vpop.eup %502  ;;  %v361_v9 = vadd.f32 1.0, %v501_v50 }
 0x23c   :  { %393 = vst [vmem:[%s788_s5] sm:$0xff] %v384_v8  ;;  %v365_v10 = vadd.f32 1.0, %v503_v51 }
 0x23d   :  { %v505_v12 = vpop.eup %504  ;;  %516 = vrcp.f32 %v361_v9 }
 0x23e   :  { %v507_v13 = vpop.eup %506  ;;  %v385_v14 = vmul.f32 %v505_v12, %v727_v16  ;;  %518 = vrcp.f32 %v365_v10 }
 0x23f   :  { %v362_v15 = vadd.f32 1.0, %v507_v13 }
 0x240   :  { %394 = vst [vmem:[%s788_s5 + $0x8] sm:$0xff] %v385_v14 }
 0x241   :  { %v509_v0 = vpop.eup %508  ;;  %520 = vrcp.f32 %v362_v15 }
 0x242   :  { %v511_v11 = vpop.eup %510  ;;  %v386_v17 = vmul.f32 %v509_v0, %v730_v21 }
 0x243   :  { %v390_v18 = vmul.f32 %v511_v11, %v732_v24 }
 0x244   :  { %395 = vst [vmem:[%s788_s5 + $0x10] sm:$0xff] %v386_v17 }
 0x245   :  { %v513_v19 = vpop.eup %512  ;;  %399 = vst [vmem:[%s788_s5 + $0x30] sm:$0xff] %v390_v18 }
 0x246   :  { %v515_v16 = vpop.eup %514  ;;  %v387_v20 = vmul.f32 %v513_v19, %v736_v35 }
 0x247   :  { %v391_v25 = vmul.f32 %v515_v16, %v738_v36 }
 0x248   :  { %396 = vst [vmem:[%s788_s5 + $0x18] sm:$0xff] %v387_v20 }
 0x249   :  { %400 = vst [vmem:[%s788_s5 + $0x38] sm:$0xff] %v391_v25 }
 0x24a   :  { %v517_v21 = vpop.eup %516 }
 0x24b   :  { %v519_v24 = vpop.eup %518  ;;  %v388_v26 = vmul.f32 %v517_v21, %v742_v47 }
 0x24c   :  { %v392_v27 = vmul.f32 %v519_v24, %v744_v48 }
 0x24d   :  { %397 = vst [vmem:[%s788_s5 + $0x20] sm:$0xff] %v388_v26 }
 0x24e   :  { %v521_v28 = vpop.eup %520  ;;  %401 = vst [vmem:[%s788_s5 + $0x40] sm:$0x3] %v392_v27 }
 0x24f   :  { %v389_v29 = vmul.f32 %v521_v28, %v303_v59 }
 0x251   :  { %398 = vst [vmem:[%s788_s5 + $0x28] sm:$0xff] %v389_v29 }
 0x252   :  { %406 = vsyncpa [#allocation3], 1 }
 0x253   :  { %407 = vsyncpa [#allocation5], 1 }

// kernel: vit3d_forward.25
= control target key start
LH: loop header
LB: loop body
LE: loop exit
PB: predicated region body
PF: predicated region fallthrough
CT: control target
= control target key end

     0   :  { %vm25_vm0 = vcmask 254976   ;;  %s238_s0 = inlined_call_operand.vmem [shape: f32[2,32], index: 0, kind: input, shape index: {}]   ;;  %s239_s1 = inlined_call_operand.vmem [shape: f32[1,32], index: 1, kind: input, shape index: {}]   ;;  %s240_s2 = inlined_call_operand.vmem [shape: f32[1,32], index: 2, kind: input, shape index: {}]   ;;  %s241_s3 = inlined_call_operand.vmem [shape: bf16[32,16], index: 3, kind: input, shape index: {}]   ;;  %s242_s4 = inlined_call_operand.vmem [shape: f32[1,16], index: 4, kind: input, shape index: {}]   ;;  %s243_s5 = inlined_call_operand.hbm [shape: f32[2,16], index: 5, kind: output, shape index: {}]  }
   0x1   :  { %v22_v0 = vld [vmem:[%s238_s0] sm:$0x3] }
   0x2   :  { %v26_v1 = vsel %vm25_vm0, %v22_v0, 0.0 }
   0x3   :  { %27 = vadd.xlane.f32.xlu0 %v26_v1 }
   0x4   :  { %10 = vsyncpa [#allocation3], 0  ;;  %v158_v7 = vld [vmem:[%s241_s3 + $0x8] sm:$0xff]   ;;  %v184_v8 = vmov 0.0   ;;  %vm185_vm1 = vmmov 0   ;;  %v159_v9 = vld [vmem:[%s241_s3] sm:$0xff]  }
   0x5   :  { %147 = vmatprep.subr.bf16.mxu0 %v184_v8  ;;  %151 = vmatprep.mubr.msk.bf16.mxu0 %vm185_vm1, %v184_v8  ;;  %v138_v14 = vld [vmem:[%s239_s1] ss:$0 sm:$0xff]  ;;  %vm78_vm2 = vcmask 261120   ;;  %s186_s28 = smov [#allocation2]   ;;  %vm122_vm3 = vcmask 123904  }
   0x6   :  { %148 = vmatpush3.bf16.msra.mxu0 %v158_v7  ;;  %v139_v16 = vld [vmem:[%s240_s2] ss:$0 sm:$0xff]  ;;  %s130_s29 = sshll.u32 %s186_s28, 4  ;;  %s131_s29 = int_to_ptr.vmem [resolvable:$true] %s130_s29 }
   0x7   :  { %149 = vmatprep.subr.bf16.mxu0 %v184_v8  ;;  %v140_v20 = vld [vmem:[%s242_s4] ss:$0 sm:$0xff]  ;;  %s162_s1 = scalar_lea.vmem %s131_s29, 32  ;;  %p167_p1 = scmp.lt.s32.totalorder %s131_s29, %s131_s29 }
   0x8   :  { %p163_p0 = scmp.ne.s32.totalorder %s131_s29, %s162_s1  ;;  %p168_p2 = scmp.lt.s32.totalorder %s162_s1, %s162_s1 }
   0xa   :  { %150 = vmatpush3.bf16.msra.mxu0 %v159_v9  ;;  %p169_p3 = por %p168_p2, %p167_p1 }
   0xc   :  { %p170_p4 = pnand %p169_p3, %p163_p0 }
  0x8c   :  { %v28_v2 = vpop.xlane.xlu0 %27 }
  0x8d   :  { %v30_v3 = vmul.f32 0.03125, %v28_v2 }
  0x8f   :  { %v31_v4 = vsub.f32 %v22_v0, %v30_v3 }
  0x91   :  { %v32_v5 = vmul.f32 %v31_v4, %v31_v4 }
  0x93   :  { %v33_v6 = vsel %vm25_vm0, %v32_v5, 0.0 }
  0x94   :  { %34 = vadd.xlane.f32.xlu0 %v33_v6 }
 0x11d   :  { %v35_v10 = vpop.xlane.xlu0 %34 }
 0x11e   :  { %v36_v11 = vmul.f32 0.03125, %v35_v10 }
 0x120   :  { %v37_v12 = vadd.f32 1e-05, %v36_v11 }
 0x122   :  { %160 = vrsqrt.f32 %v37_v12 }
 0x12f   :  { %v161_v13 = vpop.eup %160 }
 0x130   :  { %v39_v15 = vmul.f32 %v161_v13, %v31_v4 }
 0x132   :  { %v46_v17 = vmul.f32 %v138_v14, %v39_v15 }
 0x134   :  { %v53_v18 = vadd.f32 %v139_v16, %v46_v17 }
 0x136   :  { %v54_v19 = vpack.c.bf16 %v53_v18, %v53_v18 }
 0x138   :  { %152 = vmatmul.mubr.msk.bf16.vlgmr.msra.gmra.mxu0 %vm78_vm2, %v54_v19 }
 0x1f8   :  { %v116_v21 = vpop.f32.mrf.mxu0 }
 0x1f9   :  { %v117_v22 = vadd.f32 %v140_v20, %v116_v21 }
 0x1fa   :  { %v153_v23 = vpop.f32.mrf.mxu0 }
 0x1fb   :  { %123 = vst.msk [vmem:[#allocation2] sm:$0x3] %vm122_vm3, %v117_v22 }
 0x1fc   :  { %v119_v24 = vpop.f32.mrf.mxu0 }
 0x1fd   :  { %173 = shalt.err (!%p170_p4)
}
 0x1fe   :  { %133 = dma.vmem_to_hbm [thread:$0]  %s131_s29, 32, %s243_s5, [#allocation3]   ;;  %v154_v25 = vpop.f32.mrf.mxu0 }
 0x1ff   :  { %182 = dma.done.wait [#allocation3], 32  }
 0x200   :  { %183 = vsyncadd [#allocation3], 4294967264 }
 0x201   :  { %137 = vsyncpa [#allocation3], 1 }

</bundles_post_ra>
